<compile_context>
chip_gen: v7x
topology: tpu7x:2x2x1
jax: 0.10.0
libtpu: 0.0.40
codegen_flags: <defaults>
</compile_context>

<pallas_src>
import functools

import jax
import jax.numpy as jnp
from jax.experimental import pallas as pl
from jax.experimental.pallas import tpu as pltpu


def _round_up(x, m):
    return (x + m - 1) // m * m


# ---------------------------------------------------------------------------
# Fused forward kernel
# ---------------------------------------------------------------------------
def _make_fused_kernel(B, L, D, H_PAD, N_PAD, n_pc_iter=7):
    def kernel(tok_ref, wts_ref, emb_ref, w1a_ref, w1b_ref, b1_ref,
               w2_ref, b2_ref, out_ref):
        # ------------------------------------------------------------------
        # 1) Embedding gather + SIF-weighted sum, sentences A and B stacked.
        #    Scalar-driven gather: token ids and SIF weights live in SMEM and
        #    each referenced embedding row is fetched via a dynamic pl.ds row
        #    slice -- no one-hot-over-vocab compares, no [B, V] intermediates.
        # ------------------------------------------------------------------
        def gather_group(g):
            rows = []
            for b in range(B):
                r = g * B + b
                acc = jnp.zeros((1, D), jnp.float32)
                for l in range(L):                         # L tiny -> unrolled
                    t = tok_ref[r, l]                      # SMEM scalar (i32)
                    w = wts_ref[r, l]                      # SMEM scalar (f32)
                    acc = acc + w * emb_ref[pl.ds(t, 1), :]
                rows.append(acc)
            return jnp.concatenate(rows, axis=0)           # [B, D]

        s3 = jnp.stack([gather_group(0), gather_group(1)], axis=0)  # [2, B, D]

        # ------------------------------------------------------------------
        # 2) First-principal-component removal for BOTH groups at once.
        #    TODO(synk): sklearn TruncatedSVD(n_components=1, n_iter=7)
        #    (randomized SVD, no centering) has no exact Pallas equivalent;
        #    approximated by a deterministic power iteration on S^T S with a
        #    column-sum init, done with VPU broadcasts + XLU reductions only.
        # ------------------------------------------------------------------
        eps = 1e-12
        v = jnp.sum(s3, axis=1, keepdims=True)                        # [2,1,D]
        v = v * jax.lax.rsqrt(jnp.sum(v * v, axis=2, keepdims=True) + eps)
        for _ in range(n_pc_iter):                                    # unrolled
            u = jnp.sum(s3 * v, axis=2, keepdims=True)                # [2,B,1]
            v = jnp.sum(s3 * u, axis=1, keepdims=True)                # [2,1,D]
            v = v * jax.lax.rsqrt(jnp.sum(v * v, axis=2, keepdims=True) + eps)
        proj = jnp.sum(s3 * v, axis=2, keepdims=True)                 # [2,B,1]
        s3 = s3 - proj * v                                            # X - (X pc^T) pc
        sa, sb = s3[0], s3[1]                                         # [B, D] each

        # ------------------------------------------------------------------
        # 3) Classifier.  torch.cat([a*b, |a-b|], dim=1) @ W1 is realised as
        #    two half-K matmuls (w1 split row-wise) -> no feature scratch,
        #    no lane-masked partial stores.  bf16 operands, f32 accumulation.
        # ------------------------------------------------------------------
        prod = (sa * sb).astype(jnp.bfloat16)
        adiff = jnp.abs(sa - sb).astype(jnp.bfloat16)
        h = jnp.tanh(
            jnp.dot(prod, w1a_ref[...], preferred_element_type=jnp.float32)
            + jnp.dot(adiff, w1b_ref[...], preferred_element_type=jnp.float32)
            + b1_ref[...])                                            # [B,H_PAD] f32
        logits = (jnp.dot(h.astype(jnp.bfloat16), w2_ref[...],
                          preferred_element_type=jnp.float32)
                  + b2_ref[...])                                      # [B,N_PAD] f32

        # LogSoftmax over the real classes (padded classes carry a -1e30 bias
        # so exp() underflows to exactly 0 in f32).
        m = jnp.max(logits, axis=1, keepdims=True)
        z = logits - m
        lse = jnp.log(jnp.sum(jnp.exp(z), axis=1, keepdims=True))
        out_ref[...] = z - lse

    return kernel


@functools.partial(jax.jit, static_argnames=("alpha",))
def sif_forward(tok_a, prob_a, mask_a, tok_b, prob_b, mask_b,
                emb_table, w1, b1, w2, b2, *, alpha):
    B, L = tok_a.shape
    V, D = emb_table.shape
    H = w1.shape[1]
    n_out = w2.shape[1]

    H_PAD = _round_up(H, 128)      # 2400 -> 2432 : lane-dense hidden tiles
    N_PAD = _round_up(n_out, 128)  # 3    -> 128  : lane-dense output stores

    # Token ids + SIF weights (alpha/(p+alpha), padded tokens masked to 0),
    # stacked [sentence A ; sentence B] -> one [2B, L] pass through the kernel.
    tok = jnp.concatenate([tok_a, tok_b], axis=0).astype(jnp.int32)         # [2B, L]
    wts = (jnp.concatenate([mask_a, mask_b], axis=0)
           * (alpha / (jnp.concatenate([prob_a, prob_b], axis=0) + alpha))
           ).astype(jnp.float32)                                            # [2B, L]

    # bf16 weights, f32 accumulation.  w1 split row-wise so the feature concat
    # [a*b ; |a-b|] never has to be materialised in VMEM.
    w1a = jnp.zeros((D, H_PAD), jnp.bfloat16).at[:, :H].set(w1[:D].astype(jnp.bfloat16))
    w1b = jnp.zeros((D, H_PAD), jnp.bfloat16).at[:, :H].set(w1[D:].astype(jnp.bfloat16))
    b1_p = jnp.zeros((1, H_PAD), jnp.float32).at[:, :H].set(b1)
    w2_p = jnp.zeros((H_PAD, N_PAD), jnp.bfloat16).at[:H, :n_out].set(w2.astype(jnp.bfloat16))
    b2_p = jnp.full((1, N_PAD), -1e30, jnp.float32).at[:, :n_out].set(b2)

    kernel = _make_fused_kernel(B, L, D, H_PAD, N_PAD)

    smem = pl.BlockSpec(memory_space=pltpu.MemorySpace.SMEM)
    vmem = pl.BlockSpec(memory_space=pltpu.MemorySpace.VMEM)

    flops = int(2 * 2 * B * L * D                  # weighted gather sum
                + 8 * 7 * 2 * B * D                # power iteration
                + 2 * (2 * B * D * H_PAD)          # two half-K hidden matmuls
                + 2 * B * H_PAD * N_PAD)           # output matmul
    bytes_accessed = int(emb_table.size * 4 + (w1a.size + w1b.size + w2_p.size) * 2
                         + b1_p.size * 4 + b2_p.size * 4
                         + tok.size * 4 + wts.size * 4 + B * N_PAD * 4)
    transcendentals = int(B * H_PAD + B * N_PAD + B + 2 * (7 + 1))

    scores = pl.pallas_call(
        kernel,
        out_shape=jax.ShapeDtypeStruct((B, N_PAD), jnp.float32),
        in_specs=[smem, smem, vmem, vmem, vmem, vmem, vmem, vmem],
        out_specs=vmem,
        cost_estimate=pl.CostEstimate(flops=flops,
                                      transcendentals=transcendentals,
                                      bytes_accessed=bytes_accessed),
        # Single grid point: every intermediate stays in vregs / VMEM.
        # TODO(synk): at realistic batch sizes use grid=(pl.cdiv(B, TB),) with
        # dimension_semantics=("parallel",) and constant index_maps for the
        # classifier weights; at realistic vocab sizes keep emb_table in HBM
        # (memory_space=pl.ANY) and DMA-gather only the referenced rows
        # (mandatory on v7x's 64 MiB VMEM).
    )(tok, wts, emb_table, w1a, w1b, b1_p, w2_p, b2_p)
    return scores[:, :n_out]


# ---------------------------------------------------------------------------
# Pure-JAX reference (f32 weights) mirroring the module semantics.
# ---------------------------------------------------------------------------
def reference_forward(tok_a, prob_a, mask_a, tok_b, prob_b, mask_b,
                      emb_table, w1, b1, w2, b2, alpha, n_pc_iter=7):
    def sent_emb(tok, prob, mask):
        w = mask * (alpha / (prob + alpha))
        vecs = emb_table[tok]                                     # [B, L, D]
        return jnp.sum(w[:, :, None] * vecs, axis=1)              # [B, D]

    def remove_pc(s):
        v = jnp.sum(s, axis=0, keepdims=True)
        v = v * jax.lax.rsqrt(jnp.sum(v * v, axis=1, keepdims=True) + 1e-12)
        for _ in range(n_pc_iter):
            u = jnp.sum(s * v, axis=1, keepdims=True)
            v = jnp.sum(s * u, axis=0, keepdims=True)
            v = v * jax.lax.rsqrt(jnp.sum(v * v, axis=1, keepdims=True) + 1e-12)
        proj = jnp.sum(s * v, axis=1, keepdims=True)
        return s - proj * v

    sa = remove_pc(sent_emb(tok_a, prob_a, mask_a))
    sb = remove_pc(sent_emb(tok_b, prob_b, mask_b))
    feat = jnp.concatenate([sa * sb, jnp.abs(sa - sb)], axis=1)
    h = jnp.tanh(feat @ w1 + b1)
    logits = h @ w2 + b2
    return jax.nn.log_softmax(logits, axis=1)


if __name__ == "__main__":
    B, L, D = 4, 8, 32          # batch, seq len, word_vec_dim
    H = 2400                    # hidden size fixed by the module
    N_OUT = 3
    VOCAB = 100
    ALPHA = 1e-3

    key = jax.random.PRNGKey(0)
    keys = jax.random.split(key, 9)

    emb_table = jax.random.normal(keys[0], (VOCAB, D), jnp.float32)
    tok_a = jax.random.randint(keys[1], (B, L), 0, VOCAB, dtype=jnp.int32)
    tok_b = jax.random.randint(keys[2], (B, L), 0, VOCAB, dtype=jnp.int32)
    # synthetic per-token unigram probabilities (stand-in for the frequency dict)
    prob_a = jax.random.uniform(keys[3], (B, L), jnp.float32, 0.0, 0.01)
    prob_b = jax.random.uniform(keys[4], (B, L), jnp.float32, 0.0, 0.01)
    # per-sentence lengths -> padding masks (padding gets SIF weight 0, matching
    # the PyTorch `weights.extend([0.0] * ...)` behaviour)
    len_a = jnp.array([8, 6, 8, 5], jnp.int32)
    len_b = jnp.array([7, 8, 4, 8], jnp.int32)
    pos = jnp.arange(L, dtype=jnp.int32)[None, :]
    mask_a = (pos < len_a[:, None]).astype(jnp.float32)
    mask_b = (pos < len_b[:, None]).astype(jnp.float32)

    # classifier params, PyTorch nn.Linear default init (uniform +-1/sqrt(fan_in)),
    # stored [in, out] (transpose of torch weight layout)
    lim1 = 1.0 / jnp.sqrt(2.0 * D)
    w1 = jax.random.uniform(keys[5], (2 * D, H), jnp.float32, -lim1, lim1)
    b1 = jax.random.uniform(keys[6], (H,), jnp.float32, -lim1, lim1)
    lim2 = 1.0 / jnp.sqrt(float(H))
    w2 = jax.random.uniform(keys[7], (H, N_OUT), jnp.float32, -lim2, lim2)
    b2 = jax.random.uniform(keys[8], (N_OUT,), jnp.float32, -lim2, lim2)

    scores = sif_forward(tok_a, prob_a, mask_a, tok_b, prob_b, mask_b,
                         emb_table, w1, b1, w2, b2, alpha=ALPHA)
    scores = jax.block_until_ready(scores)
    assert scores.shape == (B, N_OUT)

    ref = reference_forward(tok_a, prob_a, mask_a, tok_b, prob_b, mask_b,
                            emb_table, w1, b1, w2, b2, ALPHA)
    err = float(jnp.max(jnp.abs(scores - ref)))
    assert err < 5e-2, f"max |kernel - reference| = {err}"
    print("KERNEL_OK")
</pallas_src>

<mosaic_0001>
module attributes {stable_mosaic.version = 11 : i64} {
  func.func @kernel(%arg0: memref<8x8xi32, #tpu.memory_space<smem>>, %arg1: memref<8x8xf32, #tpu.memory_space<smem>>, %arg2: memref<100x32xf32, #tpu.memory_space<vmem>>, %arg3: memref<32x2432xbf16, #tpu.memory_space<vmem>>, %arg4: memref<32x2432xbf16, #tpu.memory_space<vmem>>, %arg5: memref<1x2432xf32, #tpu.memory_space<vmem>>, %arg6: memref<2432x128xbf16, #tpu.memory_space<vmem>>, %arg7: memref<1x128xf32, #tpu.memory_space<vmem>>, %arg8: memref<4x128xf32, #tpu.memory_space<vmem>>) attributes {dimension_semantics = [], scalar_prefetch = 0 : i64, scratch_operands = 0 : i64, tpu.core_type = #tpu.core_type<tc>} {
    %cst = arith.constant 0.000000e+00 : f32
    %0 = vector.broadcast %cst : f32 to vector<1x32xf32>
    %c0 = arith.constant 0 : index
    %c0_0 = arith.constant 0 : index
    %1 = memref.load %arg0[%c0, %c0_0] : memref<8x8xi32, #tpu.memory_space<smem>>
    %c0_1 = arith.constant 0 : index
    %c0_2 = arith.constant 0 : index
    %2 = memref.load %arg1[%c0_1, %c0_2] : memref<8x8xf32, #tpu.memory_space<smem>>
    %3 = arith.index_cast %1 : i32 to index
    %c0_3 = arith.constant 0 : index
    %4 = vector.load %arg2[%3, %c0_3] : memref<100x32xf32, #tpu.memory_space<vmem>>, vector<1x32xf32>
    %5 = vector.broadcast %2 : f32 to vector<1x32xf32>
    %6 = arith.mulf %5, %4 : vector<1x32xf32>
    %7 = arith.addf %0, %6 : vector<1x32xf32>
    %c0_4 = arith.constant 0 : index
    %c1 = arith.constant 1 : index
    %8 = memref.load %arg0[%c0_4, %c1] : memref<8x8xi32, #tpu.memory_space<smem>>
    %c0_5 = arith.constant 0 : index
    %c1_6 = arith.constant 1 : index
    %9 = memref.load %arg1[%c0_5, %c1_6] : memref<8x8xf32, #tpu.memory_space<smem>>
    %10 = arith.index_cast %8 : i32 to index
    %c0_7 = arith.constant 0 : index
    %11 = vector.load %arg2[%10, %c0_7] : memref<100x32xf32, #tpu.memory_space<vmem>>, vector<1x32xf32>
    %12 = vector.broadcast %9 : f32 to vector<1x32xf32>
    %13 = arith.mulf %12, %11 : vector<1x32xf32>
    %14 = arith.addf %7, %13 : vector<1x32xf32>
    %c0_8 = arith.constant 0 : index
    %c2 = arith.constant 2 : index
    %15 = memref.load %arg0[%c0_8, %c2] : memref<8x8xi32, #tpu.memory_space<smem>>
    %c0_9 = arith.constant 0 : index
    %c2_10 = arith.constant 2 : index
    %16 = memref.load %arg1[%c0_9, %c2_10] : memref<8x8xf32, #tpu.memory_space<smem>>
    %17 = arith.index_cast %15 : i32 to index
    %c0_11 = arith.constant 0 : index
    %18 = vector.load %arg2[%17, %c0_11] : memref<100x32xf32, #tpu.memory_space<vmem>>, vector<1x32xf32>
    %19 = vector.broadcast %16 : f32 to vector<1x32xf32>
    %20 = arith.mulf %19, %18 : vector<1x32xf32>
    %21 = arith.addf %14, %20 : vector<1x32xf32>
    %c0_12 = arith.constant 0 : index
    %c3 = arith.constant 3 : index
    %22 = memref.load %arg0[%c0_12, %c3] : memref<8x8xi32, #tpu.memory_space<smem>>
    %c0_13 = arith.constant 0 : index
    %c3_14 = arith.constant 3 : index
    %23 = memref.load %arg1[%c0_13, %c3_14] : memref<8x8xf32, #tpu.memory_space<smem>>
    %24 = arith.index_cast %22 : i32 to index
    %c0_15 = arith.constant 0 : index
    %25 = vector.load %arg2[%24, %c0_15] : memref<100x32xf32, #tpu.memory_space<vmem>>, vector<1x32xf32>
    %26 = vector.broadcast %23 : f32 to vector<1x32xf32>
    %27 = arith.mulf %26, %25 : vector<1x32xf32>
    %28 = arith.addf %21, %27 : vector<1x32xf32>
    %c0_16 = arith.constant 0 : index
    %c4 = arith.constant 4 : index
    %29 = memref.load %arg0[%c0_16, %c4] : memref<8x8xi32, #tpu.memory_space<smem>>
    %c0_17 = arith.constant 0 : index
    %c4_18 = arith.constant 4 : index
    %30 = memref.load %arg1[%c0_17, %c4_18] : memref<8x8xf32, #tpu.memory_space<smem>>
    %31 = arith.index_cast %29 : i32 to index
    %c0_19 = arith.constant 0 : index
    %32 = vector.load %arg2[%31, %c0_19] : memref<100x32xf32, #tpu.memory_space<vmem>>, vector<1x32xf32>
    %33 = vector.broadcast %30 : f32 to vector<1x32xf32>
    %34 = arith.mulf %33, %32 : vector<1x32xf32>
    %35 = arith.addf %28, %34 : vector<1x32xf32>
    %c0_20 = arith.constant 0 : index
    %c5 = arith.constant 5 : index
    %36 = memref.load %arg0[%c0_20, %c5] : memref<8x8xi32, #tpu.memory_space<smem>>
    %c0_21 = arith.constant 0 : index
    %c5_22 = arith.constant 5 : index
    %37 = memref.load %arg1[%c0_21, %c5_22] : memref<8x8xf32, #tpu.memory_space<smem>>
    %38 = arith.index_cast %36 : i32 to index
    %c0_23 = arith.constant 0 : index
    %39 = vector.load %arg2[%38, %c0_23] : memref<100x32xf32, #tpu.memory_space<vmem>>, vector<1x32xf32>
    %40 = vector.broadcast %37 : f32 to vector<1x32xf32>
    %41 = arith.mulf %40, %39 : vector<1x32xf32>
    %42 = arith.addf %35, %41 : vector<1x32xf32>
    %c0_24 = arith.constant 0 : index
    %c6 = arith.constant 6 : index
    %43 = memref.load %arg0[%c0_24, %c6] : memref<8x8xi32, #tpu.memory_space<smem>>
    %c0_25 = arith.constant 0 : index
    %c6_26 = arith.constant 6 : index
    %44 = memref.load %arg1[%c0_25, %c6_26] : memref<8x8xf32, #tpu.memory_space<smem>>
    %45 = arith.index_cast %43 : i32 to index
    %c0_27 = arith.constant 0 : index
    %46 = vector.load %arg2[%45, %c0_27] : memref<100x32xf32, #tpu.memory_space<vmem>>, vector<1x32xf32>
    %47 = vector.broadcast %44 : f32 to vector<1x32xf32>
    %48 = arith.mulf %47, %46 : vector<1x32xf32>
    %49 = arith.addf %42, %48 : vector<1x32xf32>
    %c0_28 = arith.constant 0 : index
    %c7 = arith.constant 7 : index
    %50 = memref.load %arg0[%c0_28, %c7] : memref<8x8xi32, #tpu.memory_space<smem>>
    %c0_29 = arith.constant 0 : index
    %c7_30 = arith.constant 7 : index
    %51 = memref.load %arg1[%c0_29, %c7_30] : memref<8x8xf32, #tpu.memory_space<smem>>
    %52 = arith.index_cast %50 : i32 to index
    %c0_31 = arith.constant 0 : index
    %53 = vector.load %arg2[%52, %c0_31] : memref<100x32xf32, #tpu.memory_space<vmem>>, vector<1x32xf32>
    %54 = vector.broadcast %51 : f32 to vector<1x32xf32>
    %55 = arith.mulf %54, %53 : vector<1x32xf32>
    %56 = arith.addf %49, %55 : vector<1x32xf32>
    %cst_32 = arith.constant 0.000000e+00 : f32
    %57 = vector.broadcast %cst_32 : f32 to vector<1x32xf32>
    %c1_33 = arith.constant 1 : index
    %c0_34 = arith.constant 0 : index
    %58 = memref.load %arg0[%c1_33, %c0_34] : memref<8x8xi32, #tpu.memory_space<smem>>
    %c1_35 = arith.constant 1 : index
    %c0_36 = arith.constant 0 : index
    %59 = memref.load %arg1[%c1_35, %c0_36] : memref<8x8xf32, #tpu.memory_space<smem>>
    %60 = arith.index_cast %58 : i32 to index
    %c0_37 = arith.constant 0 : index
    %61 = vector.load %arg2[%60, %c0_37] : memref<100x32xf32, #tpu.memory_space<vmem>>, vector<1x32xf32>
    %62 = vector.broadcast %59 : f32 to vector<1x32xf32>
    %63 = arith.mulf %62, %61 : vector<1x32xf32>
    %64 = arith.addf %57, %63 : vector<1x32xf32>
    %c1_38 = arith.constant 1 : index
    %c1_39 = arith.constant 1 : index
    %65 = memref.load %arg0[%c1_38, %c1_39] : memref<8x8xi32, #tpu.memory_space<smem>>
    %c1_40 = arith.constant 1 : index
    %c1_41 = arith.constant 1 : index
    %66 = memref.load %arg1[%c1_40, %c1_41] : memref<8x8xf32, #tpu.memory_space<smem>>
    %67 = arith.index_cast %65 : i32 to index
    %c0_42 = arith.constant 0 : index
    %68 = vector.load %arg2[%67, %c0_42] : memref<100x32xf32, #tpu.memory_space<vmem>>, vector<1x32xf32>
    %69 = vector.broadcast %66 : f32 to vector<1x32xf32>
    %70 = arith.mulf %69, %68 : vector<1x32xf32>
    %71 = arith.addf %64, %70 : vector<1x32xf32>
    %c1_43 = arith.constant 1 : index
    %c2_44 = arith.constant 2 : index
    %72 = memref.load %arg0[%c1_43, %c2_44] : memref<8x8xi32, #tpu.memory_space<smem>>
    %c1_45 = arith.constant 1 : index
    %c2_46 = arith.constant 2 : index
    %73 = memref.load %arg1[%c1_45, %c2_46] : memref<8x8xf32, #tpu.memory_space<smem>>
    %74 = arith.index_cast %72 : i32 to index
    %c0_47 = arith.constant 0 : index
    %75 = vector.load %arg2[%74, %c0_47] : memref<100x32xf32, #tpu.memory_space<vmem>>, vector<1x32xf32>
    %76 = vector.broadcast %73 : f32 to vector<1x32xf32>
    %77 = arith.mulf %76, %75 : vector<1x32xf32>
    %78 = arith.addf %71, %77 : vector<1x32xf32>
    %c1_48 = arith.constant 1 : index
    %c3_49 = arith.constant 3 : index
    %79 = memref.load %arg0[%c1_48, %c3_49] : memref<8x8xi32, #tpu.memory_space<smem>>
    %c1_50 = arith.constant 1 : index
    %c3_51 = arith.constant 3 : index
    %80 = memref.load %arg1[%c1_50, %c3_51] : memref<8x8xf32, #tpu.memory_space<smem>>
    %81 = arith.index_cast %79 : i32 to index
    %c0_52 = arith.constant 0 : index
    %82 = vector.load %arg2[%81, %c0_52] : memref<100x32xf32, #tpu.memory_space<vmem>>, vector<1x32xf32>
    %83 = vector.broadcast %80 : f32 to vector<1x32xf32>
    %84 = arith.mulf %83, %82 : vector<1x32xf32>
    %85 = arith.addf %78, %84 : vector<1x32xf32>
    %c1_53 = arith.constant 1 : index
    %c4_54 = arith.constant 4 : index
    %86 = memref.load %arg0[%c1_53, %c4_54] : memref<8x8xi32, #tpu.memory_space<smem>>
    %c1_55 = arith.constant 1 : index
    %c4_56 = arith.constant 4 : index
    %87 = memref.load %arg1[%c1_55, %c4_56] : memref<8x8xf32, #tpu.memory_space<smem>>
    %88 = arith.index_cast %86 : i32 to index
    %c0_57 = arith.constant 0 : index
    %89 = vector.load %arg2[%88, %c0_57] : memref<100x32xf32, #tpu.memory_space<vmem>>, vector<1x32xf32>
    %90 = vector.broadcast %87 : f32 to vector<1x32xf32>
    %91 = arith.mulf %90, %89 : vector<1x32xf32>
    %92 = arith.addf %85, %91 : vector<1x32xf32>
    %c1_58 = arith.constant 1 : index
    %c5_59 = arith.constant 5 : index
    %93 = memref.load %arg0[%c1_58, %c5_59] : memref<8x8xi32, #tpu.memory_space<smem>>
    %c1_60 = arith.constant 1 : index
    %c5_61 = arith.constant 5 : index
    %94 = memref.load %arg1[%c1_60, %c5_61] : memref<8x8xf32, #tpu.memory_space<smem>>
    %95 = arith.index_cast %93 : i32 to index
    %c0_62 = arith.constant 0 : index
    %96 = vector.load %arg2[%95, %c0_62] : memref<100x32xf32, #tpu.memory_space<vmem>>, vector<1x32xf32>
    %97 = vector.broadcast %94 : f32 to vector<1x32xf32>
    %98 = arith.mulf %97, %96 : vector<1x32xf32>
    %99 = arith.addf %92, %98 : vector<1x32xf32>
    %c1_63 = arith.constant 1 : index
    %c6_64 = arith.constant 6 : index
    %100 = memref.load %arg0[%c1_63, %c6_64] : memref<8x8xi32, #tpu.memory_space<smem>>
    %c1_65 = arith.constant 1 : index
    %c6_66 = arith.constant 6 : index
    %101 = memref.load %arg1[%c1_65, %c6_66] : memref<8x8xf32, #tpu.memory_space<smem>>
    %102 = arith.index_cast %100 : i32 to index
    %c0_67 = arith.constant 0 : index
    %103 = vector.load %arg2[%102, %c0_67] : memref<100x32xf32, #tpu.memory_space<vmem>>, vector<1x32xf32>
    %104 = vector.broadcast %101 : f32 to vector<1x32xf32>
    %105 = arith.mulf %104, %103 : vector<1x32xf32>
    %106 = arith.addf %99, %105 : vector<1x32xf32>
    %c1_68 = arith.constant 1 : index
    %c7_69 = arith.constant 7 : index
    %107 = memref.load %arg0[%c1_68, %c7_69] : memref<8x8xi32, #tpu.memory_space<smem>>
    %c1_70 = arith.constant 1 : index
    %c7_71 = arith.constant 7 : index
    %108 = memref.load %arg1[%c1_70, %c7_71] : memref<8x8xf32, #tpu.memory_space<smem>>
    %109 = arith.index_cast %107 : i32 to index
    %c0_72 = arith.constant 0 : index
    %110 = vector.load %arg2[%109, %c0_72] : memref<100x32xf32, #tpu.memory_space<vmem>>, vector<1x32xf32>
    %111 = vector.broadcast %108 : f32 to vector<1x32xf32>
    %112 = arith.mulf %111, %110 : vector<1x32xf32>
    %113 = arith.addf %106, %112 : vector<1x32xf32>
    %cst_73 = arith.constant 0.000000e+00 : f32
    %114 = vector.broadcast %cst_73 : f32 to vector<1x32xf32>
    %c2_74 = arith.constant 2 : index
    %c0_75 = arith.constant 0 : index
    %115 = memref.load %arg0[%c2_74, %c0_75] : memref<8x8xi32, #tpu.memory_space<smem>>
    %c2_76 = arith.constant 2 : index
    %c0_77 = arith.constant 0 : index
    %116 = memref.load %arg1[%c2_76, %c0_77] : memref<8x8xf32, #tpu.memory_space<smem>>
    %117 = arith.index_cast %115 : i32 to index
    %c0_78 = arith.constant 0 : index
    %118 = vector.load %arg2[%117, %c0_78] : memref<100x32xf32, #tpu.memory_space<vmem>>, vector<1x32xf32>
    %119 = vector.broadcast %116 : f32 to vector<1x32xf32>
    %120 = arith.mulf %119, %118 : vector<1x32xf32>
    %121 = arith.addf %114, %120 : vector<1x32xf32>
    %c2_79 = arith.constant 2 : index
    %c1_80 = arith.constant 1 : index
    %122 = memref.load %arg0[%c2_79, %c1_80] : memref<8x8xi32, #tpu.memory_space<smem>>
    %c2_81 = arith.constant 2 : index
    %c1_82 = arith.constant 1 : index
    %123 = memref.load %arg1[%c2_81, %c1_82] : memref<8x8xf32, #tpu.memory_space<smem>>
    %124 = arith.index_cast %122 : i32 to index
    %c0_83 = arith.constant 0 : index
    %125 = vector.load %arg2[%124, %c0_83] : memref<100x32xf32, #tpu.memory_space<vmem>>, vector<1x32xf32>
    %126 = vector.broadcast %123 : f32 to vector<1x32xf32>
    %127 = arith.mulf %126, %125 : vector<1x32xf32>
    %128 = arith.addf %121, %127 : vector<1x32xf32>
    %c2_84 = arith.constant 2 : index
    %c2_85 = arith.constant 2 : index
    %129 = memref.load %arg0[%c2_84, %c2_85] : memref<8x8xi32, #tpu.memory_space<smem>>
    %c2_86 = arith.constant 2 : index
    %c2_87 = arith.constant 2 : index
    %130 = memref.load %arg1[%c2_86, %c2_87] : memref<8x8xf32, #tpu.memory_space<smem>>
    %131 = arith.index_cast %129 : i32 to index
    %c0_88 = arith.constant 0 : index
    %132 = vector.load %arg2[%131, %c0_88] : memref<100x32xf32, #tpu.memory_space<vmem>>, vector<1x32xf32>
    %133 = vector.broadcast %130 : f32 to vector<1x32xf32>
    %134 = arith.mulf %133, %132 : vector<1x32xf32>
    %135 = arith.addf %128, %134 : vector<1x32xf32>
    %c2_89 = arith.constant 2 : index
    %c3_90 = arith.constant 3 : index
    %136 = memref.load %arg0[%c2_89, %c3_90] : memref<8x8xi32, #tpu.memory_space<smem>>
    %c2_91 = arith.constant 2 : index
    %c3_92 = arith.constant 3 : index
    %137 = memref.load %arg1[%c2_91, %c3_92] : memref<8x8xf32, #tpu.memory_space<smem>>
    %138 = arith.index_cast %136 : i32 to index
    %c0_93 = arith.constant 0 : index
    %139 = vector.load %arg2[%138, %c0_93] : memref<100x32xf32, #tpu.memory_space<vmem>>, vector<1x32xf32>
    %140 = vector.broadcast %137 : f32 to vector<1x32xf32>
    %141 = arith.mulf %140, %139 : vector<1x32xf32>
    %142 = arith.addf %135, %141 : vector<1x32xf32>
    %c2_94 = arith.constant 2 : index
    %c4_95 = arith.constant 4 : index
    %143 = memref.load %arg0[%c2_94, %c4_95] : memref<8x8xi32, #tpu.memory_space<smem>>
    %c2_96 = arith.constant 2 : index
    %c4_97 = arith.constant 4 : index
    %144 = memref.load %arg1[%c2_96, %c4_97] : memref<8x8xf32, #tpu.memory_space<smem>>
    %145 = arith.index_cast %143 : i32 to index
    %c0_98 = arith.constant 0 : index
    %146 = vector.load %arg2[%145, %c0_98] : memref<100x32xf32, #tpu.memory_space<vmem>>, vector<1x32xf32>
    %147 = vector.broadcast %144 : f32 to vector<1x32xf32>
    %148 = arith.mulf %147, %146 : vector<1x32xf32>
    %149 = arith.addf %142, %148 : vector<1x32xf32>
    %c2_99 = arith.constant 2 : index
    %c5_100 = arith.constant 5 : index
    %150 = memref.load %arg0[%c2_99, %c5_100] : memref<8x8xi32, #tpu.memory_space<smem>>
    %c2_101 = arith.constant 2 : index
    %c5_102 = arith.constant 5 : index
    %151 = memref.load %arg1[%c2_101, %c5_102] : memref<8x8xf32, #tpu.memory_space<smem>>
    %152 = arith.index_cast %150 : i32 to index
    %c0_103 = arith.constant 0 : index
    %153 = vector.load %arg2[%152, %c0_103] : memref<100x32xf32, #tpu.memory_space<vmem>>, vector<1x32xf32>
    %154 = vector.broadcast %151 : f32 to vector<1x32xf32>
    %155 = arith.mulf %154, %153 : vector<1x32xf32>
    %156 = arith.addf %149, %155 : vector<1x32xf32>
    %c2_104 = arith.constant 2 : index
    %c6_105 = arith.constant 6 : index
    %157 = memref.load %arg0[%c2_104, %c6_105] : memref<8x8xi32, #tpu.memory_space<smem>>
    %c2_106 = arith.constant 2 : index
    %c6_107 = arith.constant 6 : index
    %158 = memref.load %arg1[%c2_106, %c6_107] : memref<8x8xf32, #tpu.memory_space<smem>>
    %159 = arith.index_cast %157 : i32 to index
    %c0_108 = arith.constant 0 : index
    %160 = vector.load %arg2[%159, %c0_108] : memref<100x32xf32, #tpu.memory_space<vmem>>, vector<1x32xf32>
    %161 = vector.broadcast %158 : f32 to vector<1x32xf32>
    %162 = arith.mulf %161, %160 : vector<1x32xf32>
    %163 = arith.addf %156, %162 : vector<1x32xf32>
    %c2_109 = arith.constant 2 : index
    %c7_110 = arith.constant 7 : index
    %164 = memref.load %arg0[%c2_109, %c7_110] : memref<8x8xi32, #tpu.memory_space<smem>>
    %c2_111 = arith.constant 2 : index
    %c7_112 = arith.constant 7 : index
    %165 = memref.load %arg1[%c2_111, %c7_112] : memref<8x8xf32, #tpu.memory_space<smem>>
    %166 = arith.index_cast %164 : i32 to index
    %c0_113 = arith.constant 0 : index
    %167 = vector.load %arg2[%166, %c0_113] : memref<100x32xf32, #tpu.memory_space<vmem>>, vector<1x32xf32>
    %168 = vector.broadcast %165 : f32 to vector<1x32xf32>
    %169 = arith.mulf %168, %167 : vector<1x32xf32>
    %170 = arith.addf %163, %169 : vector<1x32xf32>
    %cst_114 = arith.constant 0.000000e+00 : f32
    %171 = vector.broadcast %cst_114 : f32 to vector<1x32xf32>
    %c3_115 = arith.constant 3 : index
    %c0_116 = arith.constant 0 : index
    %172 = memref.load %arg0[%c3_115, %c0_116] : memref<8x8xi32, #tpu.memory_space<smem>>
    %c3_117 = arith.constant 3 : index
    %c0_118 = arith.constant 0 : index
    %173 = memref.load %arg1[%c3_117, %c0_118] : memref<8x8xf32, #tpu.memory_space<smem>>
    %174 = arith.index_cast %172 : i32 to index
    %c0_119 = arith.constant 0 : index
    %175 = vector.load %arg2[%174, %c0_119] : memref<100x32xf32, #tpu.memory_space<vmem>>, vector<1x32xf32>
    %176 = vector.broadcast %173 : f32 to vector<1x32xf32>
    %177 = arith.mulf %176, %175 : vector<1x32xf32>
    %178 = arith.addf %171, %177 : vector<1x32xf32>
    %c3_120 = arith.constant 3 : index
    %c1_121 = arith.constant 1 : index
    %179 = memref.load %arg0[%c3_120, %c1_121] : memref<8x8xi32, #tpu.memory_space<smem>>
    %c3_122 = arith.constant 3 : index
    %c1_123 = arith.constant 1 : index
    %180 = memref.load %arg1[%c3_122, %c1_123] : memref<8x8xf32, #tpu.memory_space<smem>>
    %181 = arith.index_cast %179 : i32 to index
    %c0_124 = arith.constant 0 : index
    %182 = vector.load %arg2[%181, %c0_124] : memref<100x32xf32, #tpu.memory_space<vmem>>, vector<1x32xf32>
    %183 = vector.broadcast %180 : f32 to vector<1x32xf32>
    %184 = arith.mulf %183, %182 : vector<1x32xf32>
    %185 = arith.addf %178, %184 : vector<1x32xf32>
    %c3_125 = arith.constant 3 : index
    %c2_126 = arith.constant 2 : index
    %186 = memref.load %arg0[%c3_125, %c2_126] : memref<8x8xi32, #tpu.memory_space<smem>>
    %c3_127 = arith.constant 3 : index
    %c2_128 = arith.constant 2 : index
    %187 = memref.load %arg1[%c3_127, %c2_128] : memref<8x8xf32, #tpu.memory_space<smem>>
    %188 = arith.index_cast %186 : i32 to index
    %c0_129 = arith.constant 0 : index
    %189 = vector.load %arg2[%188, %c0_129] : memref<100x32xf32, #tpu.memory_space<vmem>>, vector<1x32xf32>
    %190 = vector.broadcast %187 : f32 to vector<1x32xf32>
    %191 = arith.mulf %190, %189 : vector<1x32xf32>
    %192 = arith.addf %185, %191 : vector<1x32xf32>
    %c3_130 = arith.constant 3 : index
    %c3_131 = arith.constant 3 : index
    %193 = memref.load %arg0[%c3_130, %c3_131] : memref<8x8xi32, #tpu.memory_space<smem>>
    %c3_132 = arith.constant 3 : index
    %c3_133 = arith.constant 3 : index
    %194 = memref.load %arg1[%c3_132, %c3_133] : memref<8x8xf32, #tpu.memory_space<smem>>
    %195 = arith.index_cast %193 : i32 to index
    %c0_134 = arith.constant 0 : index
    %196 = vector.load %arg2[%195, %c0_134] : memref<100x32xf32, #tpu.memory_space<vmem>>, vector<1x32xf32>
    %197 = vector.broadcast %194 : f32 to vector<1x32xf32>
    %198 = arith.mulf %197, %196 : vector<1x32xf32>
    %199 = arith.addf %192, %198 : vector<1x32xf32>
    %c3_135 = arith.constant 3 : index
    %c4_136 = arith.constant 4 : index
    %200 = memref.load %arg0[%c3_135, %c4_136] : memref<8x8xi32, #tpu.memory_space<smem>>
    %c3_137 = arith.constant 3 : index
    %c4_138 = arith.constant 4 : index
    %201 = memref.load %arg1[%c3_137, %c4_138] : memref<8x8xf32, #tpu.memory_space<smem>>
    %202 = arith.index_cast %200 : i32 to index
    %c0_139 = arith.constant 0 : index
    %203 = vector.load %arg2[%202, %c0_139] : memref<100x32xf32, #tpu.memory_space<vmem>>, vector<1x32xf32>
    %204 = vector.broadcast %201 : f32 to vector<1x32xf32>
    %205 = arith.mulf %204, %203 : vector<1x32xf32>
    %206 = arith.addf %199, %205 : vector<1x32xf32>
    %c3_140 = arith.constant 3 : index
    %c5_141 = arith.constant 5 : index
    %207 = memref.load %arg0[%c3_140, %c5_141] : memref<8x8xi32, #tpu.memory_space<smem>>
    %c3_142 = arith.constant 3 : index
    %c5_143 = arith.constant 5 : index
    %208 = memref.load %arg1[%c3_142, %c5_143] : memref<8x8xf32, #tpu.memory_space<smem>>
    %209 = arith.index_cast %207 : i32 to index
    %c0_144 = arith.constant 0 : index
    %210 = vector.load %arg2[%209, %c0_144] : memref<100x32xf32, #tpu.memory_space<vmem>>, vector<1x32xf32>
    %211 = vector.broadcast %208 : f32 to vector<1x32xf32>
    %212 = arith.mulf %211, %210 : vector<1x32xf32>
    %213 = arith.addf %206, %212 : vector<1x32xf32>
    %c3_145 = arith.constant 3 : index
    %c6_146 = arith.constant 6 : index
    %214 = memref.load %arg0[%c3_145, %c6_146] : memref<8x8xi32, #tpu.memory_space<smem>>
    %c3_147 = arith.constant 3 : index
    %c6_148 = arith.constant 6 : index
    %215 = memref.load %arg1[%c3_147, %c6_148] : memref<8x8xf32, #tpu.memory_space<smem>>
    %216 = arith.index_cast %214 : i32 to index
    %c0_149 = arith.constant 0 : index
    %217 = vector.load %arg2[%216, %c0_149] : memref<100x32xf32, #tpu.memory_space<vmem>>, vector<1x32xf32>
    %218 = vector.broadcast %215 : f32 to vector<1x32xf32>
    %219 = arith.mulf %218, %217 : vector<1x32xf32>
    %220 = arith.addf %213, %219 : vector<1x32xf32>
    %c3_150 = arith.constant 3 : index
    %c7_151 = arith.constant 7 : index
    %221 = memref.load %arg0[%c3_150, %c7_151] : memref<8x8xi32, #tpu.memory_space<smem>>
    %c3_152 = arith.constant 3 : index
    %c7_153 = arith.constant 7 : index
    %222 = memref.load %arg1[%c3_152, %c7_153] : memref<8x8xf32, #tpu.memory_space<smem>>
    %223 = arith.index_cast %221 : i32 to index
    %c0_154 = arith.constant 0 : index
    %224 = vector.load %arg2[%223, %c0_154] : memref<100x32xf32, #tpu.memory_space<vmem>>, vector<1x32xf32>
    %225 = vector.broadcast %222 : f32 to vector<1x32xf32>
    %226 = arith.mulf %225, %224 : vector<1x32xf32>
    %227 = arith.addf %220, %226 : vector<1x32xf32>
    %228 = tpu.concatenate %56, %113, %170, %227 in 0 : vector<1x32xf32>, vector<1x32xf32>, vector<1x32xf32>, vector<1x32xf32> -> vector<4x32xf32>
    %cst_155 = arith.constant 0.000000e+00 : f32
    %229 = vector.broadcast %cst_155 : f32 to vector<1x32xf32>
    %c4_156 = arith.constant 4 : index
    %c0_157 = arith.constant 0 : index
    %230 = memref.load %arg0[%c4_156, %c0_157] : memref<8x8xi32, #tpu.memory_space<smem>>
    %c4_158 = arith.constant 4 : index
    %c0_159 = arith.constant 0 : index
    %231 = memref.load %arg1[%c4_158, %c0_159] : memref<8x8xf32, #tpu.memory_space<smem>>
    %232 = arith.index_cast %230 : i32 to index
    %c0_160 = arith.constant 0 : index
    %233 = vector.load %arg2[%232, %c0_160] : memref<100x32xf32, #tpu.memory_space<vmem>>, vector<1x32xf32>
    %234 = vector.broadcast %231 : f32 to vector<1x32xf32>
    %235 = arith.mulf %234, %233 : vector<1x32xf32>
    %236 = arith.addf %229, %235 : vector<1x32xf32>
    %c4_161 = arith.constant 4 : index
    %c1_162 = arith.constant 1 : index
    %237 = memref.load %arg0[%c4_161, %c1_162] : memref<8x8xi32, #tpu.memory_space<smem>>
    %c4_163 = arith.constant 4 : index
    %c1_164 = arith.constant 1 : index
    %238 = memref.load %arg1[%c4_163, %c1_164] : memref<8x8xf32, #tpu.memory_space<smem>>
    %239 = arith.index_cast %237 : i32 to index
    %c0_165 = arith.constant 0 : index
    %240 = vector.load %arg2[%239, %c0_165] : memref<100x32xf32, #tpu.memory_space<vmem>>, vector<1x32xf32>
    %241 = vector.broadcast %238 : f32 to vector<1x32xf32>
    %242 = arith.mulf %241, %240 : vector<1x32xf32>
    %243 = arith.addf %236, %242 : vector<1x32xf32>
    %c4_166 = arith.constant 4 : index
    %c2_167 = arith.constant 2 : index
    %244 = memref.load %arg0[%c4_166, %c2_167] : memref<8x8xi32, #tpu.memory_space<smem>>
    %c4_168 = arith.constant 4 : index
    %c2_169 = arith.constant 2 : index
    %245 = memref.load %arg1[%c4_168, %c2_169] : memref<8x8xf32, #tpu.memory_space<smem>>
    %246 = arith.index_cast %244 : i32 to index
    %c0_170 = arith.constant 0 : index
    %247 = vector.load %arg2[%246, %c0_170] : memref<100x32xf32, #tpu.memory_space<vmem>>, vector<1x32xf32>
    %248 = vector.broadcast %245 : f32 to vector<1x32xf32>
    %249 = arith.mulf %248, %247 : vector<1x32xf32>
    %250 = arith.addf %243, %249 : vector<1x32xf32>
    %c4_171 = arith.constant 4 : index
    %c3_172 = arith.constant 3 : index
    %251 = memref.load %arg0[%c4_171, %c3_172] : memref<8x8xi32, #tpu.memory_space<smem>>
    %c4_173 = arith.constant 4 : index
    %c3_174 = arith.constant 3 : index
    %252 = memref.load %arg1[%c4_173, %c3_174] : memref<8x8xf32, #tpu.memory_space<smem>>
    %253 = arith.index_cast %251 : i32 to index
    %c0_175 = arith.constant 0 : index
    %254 = vector.load %arg2[%253, %c0_175] : memref<100x32xf32, #tpu.memory_space<vmem>>, vector<1x32xf32>
    %255 = vector.broadcast %252 : f32 to vector<1x32xf32>
    %256 = arith.mulf %255, %254 : vector<1x32xf32>
    %257 = arith.addf %250, %256 : vector<1x32xf32>
    %c4_176 = arith.constant 4 : index
    %c4_177 = arith.constant 4 : index
    %258 = memref.load %arg0[%c4_176, %c4_177] : memref<8x8xi32, #tpu.memory_space<smem>>
    %c4_178 = arith.constant 4 : index
    %c4_179 = arith.constant 4 : index
    %259 = memref.load %arg1[%c4_178, %c4_179] : memref<8x8xf32, #tpu.memory_space<smem>>
    %260 = arith.index_cast %258 : i32 to index
    %c0_180 = arith.constant 0 : index
    %261 = vector.load %arg2[%260, %c0_180] : memref<100x32xf32, #tpu.memory_space<vmem>>, vector<1x32xf32>
    %262 = vector.broadcast %259 : f32 to vector<1x32xf32>
    %263 = arith.mulf %262, %261 : vector<1x32xf32>
    %264 = arith.addf %257, %263 : vector<1x32xf32>
    %c4_181 = arith.constant 4 : index
    %c5_182 = arith.constant 5 : index
    %265 = memref.load %arg0[%c4_181, %c5_182] : memref<8x8xi32, #tpu.memory_space<smem>>
    %c4_183 = arith.constant 4 : index
    %c5_184 = arith.constant 5 : index
    %266 = memref.load %arg1[%c4_183, %c5_184] : memref<8x8xf32, #tpu.memory_space<smem>>
    %267 = arith.index_cast %265 : i32 to index
    %c0_185 = arith.constant 0 : index
    %268 = vector.load %arg2[%267, %c0_185] : memref<100x32xf32, #tpu.memory_space<vmem>>, vector<1x32xf32>
    %269 = vector.broadcast %266 : f32 to vector<1x32xf32>
    %270 = arith.mulf %269, %268 : vector<1x32xf32>
    %271 = arith.addf %264, %270 : vector<1x32xf32>
    %c4_186 = arith.constant 4 : index
    %c6_187 = arith.constant 6 : index
    %272 = memref.load %arg0[%c4_186, %c6_187] : memref<8x8xi32, #tpu.memory_space<smem>>
    %c4_188 = arith.constant 4 : index
    %c6_189 = arith.constant 6 : index
    %273 = memref.load %arg1[%c4_188, %c6_189] : memref<8x8xf32, #tpu.memory_space<smem>>
    %274 = arith.index_cast %272 : i32 to index
    %c0_190 = arith.constant 0 : index
    %275 = vector.load %arg2[%274, %c0_190] : memref<100x32xf32, #tpu.memory_space<vmem>>, vector<1x32xf32>
    %276 = vector.broadcast %273 : f32 to vector<1x32xf32>
    %277 = arith.mulf %276, %275 : vector<1x32xf32>
    %278 = arith.addf %271, %277 : vector<1x32xf32>
    %c4_191 = arith.constant 4 : index
    %c7_192 = arith.constant 7 : index
    %279 = memref.load %arg0[%c4_191, %c7_192] : memref<8x8xi32, #tpu.memory_space<smem>>
    %c4_193 = arith.constant 4 : index
    %c7_194 = arith.constant 7 : index
    %280 = memref.load %arg1[%c4_193, %c7_194] : memref<8x8xf32, #tpu.memory_space<smem>>
    %281 = arith.index_cast %279 : i32 to index
    %c0_195 = arith.constant 0 : index
    %282 = vector.load %arg2[%281, %c0_195] : memref<100x32xf32, #tpu.memory_space<vmem>>, vector<1x32xf32>
    %283 = vector.broadcast %280 : f32 to vector<1x32xf32>
    %284 = arith.mulf %283, %282 : vector<1x32xf32>
    %285 = arith.addf %278, %284 : vector<1x32xf32>
    %cst_196 = arith.constant 0.000000e+00 : f32
    %286 = vector.broadcast %cst_196 : f32 to vector<1x32xf32>
    %c5_197 = arith.constant 5 : index
    %c0_198 = arith.constant 0 : index
    %287 = memref.load %arg0[%c5_197, %c0_198] : memref<8x8xi32, #tpu.memory_space<smem>>
    %c5_199 = arith.constant 5 : index
    %c0_200 = arith.constant 0 : index
    %288 = memref.load %arg1[%c5_199, %c0_200] : memref<8x8xf32, #tpu.memory_space<smem>>
    %289 = arith.index_cast %287 : i32 to index
    %c0_201 = arith.constant 0 : index
    %290 = vector.load %arg2[%289, %c0_201] : memref<100x32xf32, #tpu.memory_space<vmem>>, vector<1x32xf32>
    %291 = vector.broadcast %288 : f32 to vector<1x32xf32>
    %292 = arith.mulf %291, %290 : vector<1x32xf32>
    %293 = arith.addf %286, %292 : vector<1x32xf32>
    %c5_202 = arith.constant 5 : index
    %c1_203 = arith.constant 1 : index
    %294 = memref.load %arg0[%c5_202, %c1_203] : memref<8x8xi32, #tpu.memory_space<smem>>
    %c5_204 = arith.constant 5 : index
    %c1_205 = arith.constant 1 : index
    %295 = memref.load %arg1[%c5_204, %c1_205] : memref<8x8xf32, #tpu.memory_space<smem>>
    %296 = arith.index_cast %294 : i32 to index
    %c0_206 = arith.constant 0 : index
    %297 = vector.load %arg2[%296, %c0_206] : memref<100x32xf32, #tpu.memory_space<vmem>>, vector<1x32xf32>
    %298 = vector.broadcast %295 : f32 to vector<1x32xf32>
    %299 = arith.mulf %298, %297 : vector<1x32xf32>
    %300 = arith.addf %293, %299 : vector<1x32xf32>
    %c5_207 = arith.constant 5 : index
    %c2_208 = arith.constant 2 : index
    %301 = memref.load %arg0[%c5_207, %c2_208] : memref<8x8xi32, #tpu.memory_space<smem>>
    %c5_209 = arith.constant 5 : index
    %c2_210 = arith.constant 2 : index
    %302 = memref.load %arg1[%c5_209, %c2_210] : memref<8x8xf32, #tpu.memory_space<smem>>
    %303 = arith.index_cast %301 : i32 to index
    %c0_211 = arith.constant 0 : index
    %304 = vector.load %arg2[%303, %c0_211] : memref<100x32xf32, #tpu.memory_space<vmem>>, vector<1x32xf32>
    %305 = vector.broadcast %302 : f32 to vector<1x32xf32>
    %306 = arith.mulf %305, %304 : vector<1x32xf32>
    %307 = arith.addf %300, %306 : vector<1x32xf32>
    %c5_212 = arith.constant 5 : index
    %c3_213 = arith.constant 3 : index
    %308 = memref.load %arg0[%c5_212, %c3_213] : memref<8x8xi32, #tpu.memory_space<smem>>
    %c5_214 = arith.constant 5 : index
    %c3_215 = arith.constant 3 : index
    %309 = memref.load %arg1[%c5_214, %c3_215] : memref<8x8xf32, #tpu.memory_space<smem>>
    %310 = arith.index_cast %308 : i32 to index
    %c0_216 = arith.constant 0 : index
    %311 = vector.load %arg2[%310, %c0_216] : memref<100x32xf32, #tpu.memory_space<vmem>>, vector<1x32xf32>
    %312 = vector.broadcast %309 : f32 to vector<1x32xf32>
    %313 = arith.mulf %312, %311 : vector<1x32xf32>
    %314 = arith.addf %307, %313 : vector<1x32xf32>
    %c5_217 = arith.constant 5 : index
    %c4_218 = arith.constant 4 : index
    %315 = memref.load %arg0[%c5_217, %c4_218] : memref<8x8xi32, #tpu.memory_space<smem>>
    %c5_219 = arith.constant 5 : index
    %c4_220 = arith.constant 4 : index
    %316 = memref.load %arg1[%c5_219, %c4_220] : memref<8x8xf32, #tpu.memory_space<smem>>
    %317 = arith.index_cast %315 : i32 to index
    %c0_221 = arith.constant 0 : index
    %318 = vector.load %arg2[%317, %c0_221] : memref<100x32xf32, #tpu.memory_space<vmem>>, vector<1x32xf32>
    %319 = vector.broadcast %316 : f32 to vector<1x32xf32>
    %320 = arith.mulf %319, %318 : vector<1x32xf32>
    %321 = arith.addf %314, %320 : vector<1x32xf32>
    %c5_222 = arith.constant 5 : index
    %c5_223 = arith.constant 5 : index
    %322 = memref.load %arg0[%c5_222, %c5_223] : memref<8x8xi32, #tpu.memory_space<smem>>
    %c5_224 = arith.constant 5 : index
    %c5_225 = arith.constant 5 : index
    %323 = memref.load %arg1[%c5_224, %c5_225] : memref<8x8xf32, #tpu.memory_space<smem>>
    %324 = arith.index_cast %322 : i32 to index
    %c0_226 = arith.constant 0 : index
    %325 = vector.load %arg2[%324, %c0_226] : memref<100x32xf32, #tpu.memory_space<vmem>>, vector<1x32xf32>
    %326 = vector.broadcast %323 : f32 to vector<1x32xf32>
    %327 = arith.mulf %326, %325 : vector<1x32xf32>
    %328 = arith.addf %321, %327 : vector<1x32xf32>
    %c5_227 = arith.constant 5 : index
    %c6_228 = arith.constant 6 : index
    %329 = memref.load %arg0[%c5_227, %c6_228] : memref<8x8xi32, #tpu.memory_space<smem>>
    %c5_229 = arith.constant 5 : index
    %c6_230 = arith.constant 6 : index
    %330 = memref.load %arg1[%c5_229, %c6_230] : memref<8x8xf32, #tpu.memory_space<smem>>
    %331 = arith.index_cast %329 : i32 to index
    %c0_231 = arith.constant 0 : index
    %332 = vector.load %arg2[%331, %c0_231] : memref<100x32xf32, #tpu.memory_space<vmem>>, vector<1x32xf32>
    %333 = vector.broadcast %330 : f32 to vector<1x32xf32>
    %334 = arith.mulf %333, %332 : vector<1x32xf32>
    %335 = arith.addf %328, %334 : vector<1x32xf32>
    %c5_232 = arith.constant 5 : index
    %c7_233 = arith.constant 7 : index
    %336 = memref.load %arg0[%c5_232, %c7_233] : memref<8x8xi32, #tpu.memory_space<smem>>
    %c5_234 = arith.constant 5 : index
    %c7_235 = arith.constant 7 : index
    %337 = memref.load %arg1[%c5_234, %c7_235] : memref<8x8xf32, #tpu.memory_space<smem>>
    %338 = arith.index_cast %336 : i32 to index
    %c0_236 = arith.constant 0 : index
    %339 = vector.load %arg2[%338, %c0_236] : memref<100x32xf32, #tpu.memory_space<vmem>>, vector<1x32xf32>
    %340 = vector.broadcast %337 : f32 to vector<1x32xf32>
    %341 = arith.mulf %340, %339 : vector<1x32xf32>
    %342 = arith.addf %335, %341 : vector<1x32xf32>
    %cst_237 = arith.constant 0.000000e+00 : f32
    %343 = vector.broadcast %cst_237 : f32 to vector<1x32xf32>
    %c6_238 = arith.constant 6 : index
    %c0_239 = arith.constant 0 : index
    %344 = memref.load %arg0[%c6_238, %c0_239] : memref<8x8xi32, #tpu.memory_space<smem>>
    %c6_240 = arith.constant 6 : index
    %c0_241 = arith.constant 0 : index
    %345 = memref.load %arg1[%c6_240, %c0_241] : memref<8x8xf32, #tpu.memory_space<smem>>
    %346 = arith.index_cast %344 : i32 to index
    %c0_242 = arith.constant 0 : index
    %347 = vector.load %arg2[%346, %c0_242] : memref<100x32xf32, #tpu.memory_space<vmem>>, vector<1x32xf32>
    %348 = vector.broadcast %345 : f32 to vector<1x32xf32>
    %349 = arith.mulf %348, %347 : vector<1x32xf32>
    %350 = arith.addf %343, %349 : vector<1x32xf32>
    %c6_243 = arith.constant 6 : index
    %c1_244 = arith.constant 1 : index
    %351 = memref.load %arg0[%c6_243, %c1_244] : memref<8x8xi32, #tpu.memory_space<smem>>
    %c6_245 = arith.constant 6 : index
    %c1_246 = arith.constant 1 : index
    %352 = memref.load %arg1[%c6_245, %c1_246] : memref<8x8xf32, #tpu.memory_space<smem>>
    %353 = arith.index_cast %351 : i32 to index
    %c0_247 = arith.constant 0 : index
    %354 = vector.load %arg2[%353, %c0_247] : memref<100x32xf32, #tpu.memory_space<vmem>>, vector<1x32xf32>
    %355 = vector.broadcast %352 : f32 to vector<1x32xf32>
    %356 = arith.mulf %355, %354 : vector<1x32xf32>
    %357 = arith.addf %350, %356 : vector<1x32xf32>
    %c6_248 = arith.constant 6 : index
    %c2_249 = arith.constant 2 : index
    %358 = memref.load %arg0[%c6_248, %c2_249] : memref<8x8xi32, #tpu.memory_space<smem>>
    %c6_250 = arith.constant 6 : index
    %c2_251 = arith.constant 2 : index
    %359 = memref.load %arg1[%c6_250, %c2_251] : memref<8x8xf32, #tpu.memory_space<smem>>
    %360 = arith.index_cast %358 : i32 to index
    %c0_252 = arith.constant 0 : index
    %361 = vector.load %arg2[%360, %c0_252] : memref<100x32xf32, #tpu.memory_space<vmem>>, vector<1x32xf32>
    %362 = vector.broadcast %359 : f32 to vector<1x32xf32>
    %363 = arith.mulf %362, %361 : vector<1x32xf32>
    %364 = arith.addf %357, %363 : vector<1x32xf32>
    %c6_253 = arith.constant 6 : index
    %c3_254 = arith.constant 3 : index
    %365 = memref.load %arg0[%c6_253, %c3_254] : memref<8x8xi32, #tpu.memory_space<smem>>
    %c6_255 = arith.constant 6 : index
    %c3_256 = arith.constant 3 : index
    %366 = memref.load %arg1[%c6_255, %c3_256] : memref<8x8xf32, #tpu.memory_space<smem>>
    %367 = arith.index_cast %365 : i32 to index
    %c0_257 = arith.constant 0 : index
    %368 = vector.load %arg2[%367, %c0_257] : memref<100x32xf32, #tpu.memory_space<vmem>>, vector<1x32xf32>
    %369 = vector.broadcast %366 : f32 to vector<1x32xf32>
    %370 = arith.mulf %369, %368 : vector<1x32xf32>
    %371 = arith.addf %364, %370 : vector<1x32xf32>
    %c6_258 = arith.constant 6 : index
    %c4_259 = arith.constant 4 : index
    %372 = memref.load %arg0[%c6_258, %c4_259] : memref<8x8xi32, #tpu.memory_space<smem>>
    %c6_260 = arith.constant 6 : index
    %c4_261 = arith.constant 4 : index
    %373 = memref.load %arg1[%c6_260, %c4_261] : memref<8x8xf32, #tpu.memory_space<smem>>
    %374 = arith.index_cast %372 : i32 to index
    %c0_262 = arith.constant 0 : index
    %375 = vector.load %arg2[%374, %c0_262] : memref<100x32xf32, #tpu.memory_space<vmem>>, vector<1x32xf32>
    %376 = vector.broadcast %373 : f32 to vector<1x32xf32>
    %377 = arith.mulf %376, %375 : vector<1x32xf32>
    %378 = arith.addf %371, %377 : vector<1x32xf32>
    %c6_263 = arith.constant 6 : index
    %c5_264 = arith.constant 5 : index
    %379 = memref.load %arg0[%c6_263, %c5_264] : memref<8x8xi32, #tpu.memory_space<smem>>
    %c6_265 = arith.constant 6 : index
    %c5_266 = arith.constant 5 : index
    %380 = memref.load %arg1[%c6_265, %c5_266] : memref<8x8xf32, #tpu.memory_space<smem>>
    %381 = arith.index_cast %379 : i32 to index
    %c0_267 = arith.constant 0 : index
    %382 = vector.load %arg2[%381, %c0_267] : memref<100x32xf32, #tpu.memory_space<vmem>>, vector<1x32xf32>
    %383 = vector.broadcast %380 : f32 to vector<1x32xf32>
    %384 = arith.mulf %383, %382 : vector<1x32xf32>
    %385 = arith.addf %378, %384 : vector<1x32xf32>
    %c6_268 = arith.constant 6 : index
    %c6_269 = arith.constant 6 : index
    %386 = memref.load %arg0[%c6_268, %c6_269] : memref<8x8xi32, #tpu.memory_space<smem>>
    %c6_270 = arith.constant 6 : index
    %c6_271 = arith.constant 6 : index
    %387 = memref.load %arg1[%c6_270, %c6_271] : memref<8x8xf32, #tpu.memory_space<smem>>
    %388 = arith.index_cast %386 : i32 to index
    %c0_272 = arith.constant 0 : index
    %389 = vector.load %arg2[%388, %c0_272] : memref<100x32xf32, #tpu.memory_space<vmem>>, vector<1x32xf32>
    %390 = vector.broadcast %387 : f32 to vector<1x32xf32>
    %391 = arith.mulf %390, %389 : vector<1x32xf32>
    %392 = arith.addf %385, %391 : vector<1x32xf32>
    %c6_273 = arith.constant 6 : index
    %c7_274 = arith.constant 7 : index
    %393 = memref.load %arg0[%c6_273, %c7_274] : memref<8x8xi32, #tpu.memory_space<smem>>
    %c6_275 = arith.constant 6 : index
    %c7_276 = arith.constant 7 : index
    %394 = memref.load %arg1[%c6_275, %c7_276] : memref<8x8xf32, #tpu.memory_space<smem>>
    %395 = arith.index_cast %393 : i32 to index
    %c0_277 = arith.constant 0 : index
    %396 = vector.load %arg2[%395, %c0_277] : memref<100x32xf32, #tpu.memory_space<vmem>>, vector<1x32xf32>
    %397 = vector.broadcast %394 : f32 to vector<1x32xf32>
    %398 = arith.mulf %397, %396 : vector<1x32xf32>
    %399 = arith.addf %392, %398 : vector<1x32xf32>
    %cst_278 = arith.constant 0.000000e+00 : f32
    %400 = vector.broadcast %cst_278 : f32 to vector<1x32xf32>
    %c7_279 = arith.constant 7 : index
    %c0_280 = arith.constant 0 : index
    %401 = memref.load %arg0[%c7_279, %c0_280] : memref<8x8xi32, #tpu.memory_space<smem>>
    %c7_281 = arith.constant 7 : index
    %c0_282 = arith.constant 0 : index
    %402 = memref.load %arg1[%c7_281, %c0_282] : memref<8x8xf32, #tpu.memory_space<smem>>
    %403 = arith.index_cast %401 : i32 to index
    %c0_283 = arith.constant 0 : index
    %404 = vector.load %arg2[%403, %c0_283] : memref<100x32xf32, #tpu.memory_space<vmem>>, vector<1x32xf32>
    %405 = vector.broadcast %402 : f32 to vector<1x32xf32>
    %406 = arith.mulf %405, %404 : vector<1x32xf32>
    %407 = arith.addf %400, %406 : vector<1x32xf32>
    %c7_284 = arith.constant 7 : index
    %c1_285 = arith.constant 1 : index
    %408 = memref.load %arg0[%c7_284, %c1_285] : memref<8x8xi32, #tpu.memory_space<smem>>
    %c7_286 = arith.constant 7 : index
    %c1_287 = arith.constant 1 : index
    %409 = memref.load %arg1[%c7_286, %c1_287] : memref<8x8xf32, #tpu.memory_space<smem>>
    %410 = arith.index_cast %408 : i32 to index
    %c0_288 = arith.constant 0 : index
    %411 = vector.load %arg2[%410, %c0_288] : memref<100x32xf32, #tpu.memory_space<vmem>>, vector<1x32xf32>
    %412 = vector.broadcast %409 : f32 to vector<1x32xf32>
    %413 = arith.mulf %412, %411 : vector<1x32xf32>
    %414 = arith.addf %407, %413 : vector<1x32xf32>
    %c7_289 = arith.constant 7 : index
    %c2_290 = arith.constant 2 : index
    %415 = memref.load %arg0[%c7_289, %c2_290] : memref<8x8xi32, #tpu.memory_space<smem>>
    %c7_291 = arith.constant 7 : index
    %c2_292 = arith.constant 2 : index
    %416 = memref.load %arg1[%c7_291, %c2_292] : memref<8x8xf32, #tpu.memory_space<smem>>
    %417 = arith.index_cast %415 : i32 to index
    %c0_293 = arith.constant 0 : index
    %418 = vector.load %arg2[%417, %c0_293] : memref<100x32xf32, #tpu.memory_space<vmem>>, vector<1x32xf32>
    %419 = vector.broadcast %416 : f32 to vector<1x32xf32>
    %420 = arith.mulf %419, %418 : vector<1x32xf32>
    %421 = arith.addf %414, %420 : vector<1x32xf32>
    %c7_294 = arith.constant 7 : index
    %c3_295 = arith.constant 3 : index
    %422 = memref.load %arg0[%c7_294, %c3_295] : memref<8x8xi32, #tpu.memory_space<smem>>
    %c7_296 = arith.constant 7 : index
    %c3_297 = arith.constant 3 : index
    %423 = memref.load %arg1[%c7_296, %c3_297] : memref<8x8xf32, #tpu.memory_space<smem>>
    %424 = arith.index_cast %422 : i32 to index
    %c0_298 = arith.constant 0 : index
    %425 = vector.load %arg2[%424, %c0_298] : memref<100x32xf32, #tpu.memory_space<vmem>>, vector<1x32xf32>
    %426 = vector.broadcast %423 : f32 to vector<1x32xf32>
    %427 = arith.mulf %426, %425 : vector<1x32xf32>
    %428 = arith.addf %421, %427 : vector<1x32xf32>
    %c7_299 = arith.constant 7 : index
    %c4_300 = arith.constant 4 : index
    %429 = memref.load %arg0[%c7_299, %c4_300] : memref<8x8xi32, #tpu.memory_space<smem>>
    %c7_301 = arith.constant 7 : index
    %c4_302 = arith.constant 4 : index
    %430 = memref.load %arg1[%c7_301, %c4_302] : memref<8x8xf32, #tpu.memory_space<smem>>
    %431 = arith.index_cast %429 : i32 to index
    %c0_303 = arith.constant 0 : index
    %432 = vector.load %arg2[%431, %c0_303] : memref<100x32xf32, #tpu.memory_space<vmem>>, vector<1x32xf32>
    %433 = vector.broadcast %430 : f32 to vector<1x32xf32>
    %434 = arith.mulf %433, %432 : vector<1x32xf32>
    %435 = arith.addf %428, %434 : vector<1x32xf32>
    %c7_304 = arith.constant 7 : index
    %c5_305 = arith.constant 5 : index
    %436 = memref.load %arg0[%c7_304, %c5_305] : memref<8x8xi32, #tpu.memory_space<smem>>
    %c7_306 = arith.constant 7 : index
    %c5_307 = arith.constant 5 : index
    %437 = memref.load %arg1[%c7_306, %c5_307] : memref<8x8xf32, #tpu.memory_space<smem>>
    %438 = arith.index_cast %436 : i32 to index
    %c0_308 = arith.constant 0 : index
    %439 = vector.load %arg2[%438, %c0_308] : memref<100x32xf32, #tpu.memory_space<vmem>>, vector<1x32xf32>
    %440 = vector.broadcast %437 : f32 to vector<1x32xf32>
    %441 = arith.mulf %440, %439 : vector<1x32xf32>
    %442 = arith.addf %435, %441 : vector<1x32xf32>
    %c7_309 = arith.constant 7 : index
    %c6_310 = arith.constant 6 : index
    %443 = memref.load %arg0[%c7_309, %c6_310] : memref<8x8xi32, #tpu.memory_space<smem>>
    %c7_311 = arith.constant 7 : index
    %c6_312 = arith.constant 6 : index
    %444 = memref.load %arg1[%c7_311, %c6_312] : memref<8x8xf32, #tpu.memory_space<smem>>
    %445 = arith.index_cast %443 : i32 to index
    %c0_313 = arith.constant 0 : index
    %446 = vector.load %arg2[%445, %c0_313] : memref<100x32xf32, #tpu.memory_space<vmem>>, vector<1x32xf32>
    %447 = vector.broadcast %444 : f32 to vector<1x32xf32>
    %448 = arith.mulf %447, %446 : vector<1x32xf32>
    %449 = arith.addf %442, %448 : vector<1x32xf32>
    %c7_314 = arith.constant 7 : index
    %c7_315 = arith.constant 7 : index
    %450 = memref.load %arg0[%c7_314, %c7_315] : memref<8x8xi32, #tpu.memory_space<smem>>
    %c7_316 = arith.constant 7 : index
    %c7_317 = arith.constant 7 : index
    %451 = memref.load %arg1[%c7_316, %c7_317] : memref<8x8xf32, #tpu.memory_space<smem>>
    %452 = arith.index_cast %450 : i32 to index
    %c0_318 = arith.constant 0 : index
    %453 = vector.load %arg2[%452, %c0_318] : memref<100x32xf32, #tpu.memory_space<vmem>>, vector<1x32xf32>
    %454 = vector.broadcast %451 : f32 to vector<1x32xf32>
    %455 = arith.mulf %454, %453 : vector<1x32xf32>
    %456 = arith.addf %449, %455 : vector<1x32xf32>
    %457 = tpu.concatenate %285, %342, %399, %456 in 0 : vector<1x32xf32>, vector<1x32xf32>, vector<1x32xf32>, vector<1x32xf32> -> vector<4x32xf32>
    %458 = vector.shape_cast %228 : vector<4x32xf32> to vector<1x4x32xf32>
    %459 = vector.shape_cast %457 : vector<4x32xf32> to vector<1x4x32xf32>
    %460 = tpu.concatenate %458, %459 in 0 : vector<1x4x32xf32>, vector<1x4x32xf32> -> vector<2x4x32xf32>
    %cst_319 = arith.constant dense<0.000000e+00> : vector<2x32xf32>
    %461 = vector.multi_reduction <add>, %460, %cst_319 [1] : vector<2x4x32xf32> to vector<2x32xf32>
    %462 = vector.shape_cast %461 : vector<2x32xf32> to vector<2x1x32xf32>
    %463 = arith.mulf %462, %462 : vector<2x1x32xf32>
    %cst_320 = arith.constant dense<0.000000e+00> : vector<2x1xf32>
    %464 = vector.multi_reduction <add>, %463, %cst_320 [2] : vector<2x1x32xf32> to vector<2x1xf32>
    %465 = vector.shape_cast %464 : vector<2x1xf32> to vector<2x1x1xf32>
    %cst_321 = arith.constant 9.99999996E-13 : f32
    %466 = vector.broadcast %cst_321 : f32 to vector<2x1x1xf32>
    %467 = arith.addf %465, %466 : vector<2x1x1xf32>
    %468 = math.rsqrt %467 : vector<2x1x1xf32>
    %469 = vector.broadcast %468 : vector<2x1x1xf32> to vector<2x1x32xf32>
    %470 = arith.mulf %462, %469 : vector<2x1x32xf32>
    %471 = vector.broadcast %470 : vector<2x1x32xf32> to vector<2x4x32xf32>
    %472 = arith.mulf %460, %471 : vector<2x4x32xf32>
    %cst_322 = arith.constant dense<0.000000e+00> : vector<2x4xf32>
    %473 = vector.multi_reduction <add>, %472, %cst_322 [2] : vector<2x4x32xf32> to vector<2x4xf32>
    %474 = vector.shape_cast %473 : vector<2x4xf32> to vector<2x4x1xf32>
    %475 = vector.broadcast %474 : vector<2x4x1xf32> to vector<2x4x32xf32>
    %476 = arith.mulf %460, %475 : vector<2x4x32xf32>
    %cst_323 = arith.constant dense<0.000000e+00> : vector<2x32xf32>
    %477 = vector.multi_reduction <add>, %476, %cst_323 [1] : vector<2x4x32xf32> to vector<2x32xf32>
    %478 = vector.shape_cast %477 : vector<2x32xf32> to vector<2x1x32xf32>
    %479 = arith.mulf %478, %478 : vector<2x1x32xf32>
    %cst_324 = arith.constant dense<0.000000e+00> : vector<2x1xf32>
    %480 = vector.multi_reduction <add>, %479, %cst_324 [2] : vector<2x1x32xf32> to vector<2x1xf32>
    %481 = vector.shape_cast %480 : vector<2x1xf32> to vector<2x1x1xf32>
    %cst_325 = arith.constant 9.99999996E-13 : f32
    %482 = vector.broadcast %cst_325 : f32 to vector<2x1x1xf32>
    %483 = arith.addf %481, %482 : vector<2x1x1xf32>
    %484 = math.rsqrt %483 : vector<2x1x1xf32>
    %485 = vector.broadcast %484 : vector<2x1x1xf32> to vector<2x1x32xf32>
    %486 = arith.mulf %478, %485 : vector<2x1x32xf32>
    %487 = vector.broadcast %486 : vector<2x1x32xf32> to vector<2x4x32xf32>
    %488 = arith.mulf %460, %487 : vector<2x4x32xf32>
    %cst_326 = arith.constant dense<0.000000e+00> : vector<2x4xf32>
    %489 = vector.multi_reduction <add>, %488, %cst_326 [2] : vector<2x4x32xf32> to vector<2x4xf32>
    %490 = vector.shape_cast %489 : vector<2x4xf32> to vector<2x4x1xf32>
    %491 = vector.broadcast %490 : vector<2x4x1xf32> to vector<2x4x32xf32>
    %492 = arith.mulf %460, %491 : vector<2x4x32xf32>
    %cst_327 = arith.constant dense<0.000000e+00> : vector<2x32xf32>
    %493 = vector.multi_reduction <add>, %492, %cst_327 [1] : vector<2x4x32xf32> to vector<2x32xf32>
    %494 = vector.shape_cast %493 : vector<2x32xf32> to vector<2x1x32xf32>
    %495 = arith.mulf %494, %494 : vector<2x1x32xf32>
    %cst_328 = arith.constant dense<0.000000e+00> : vector<2x1xf32>
    %496 = vector.multi_reduction <add>, %495, %cst_328 [2] : vector<2x1x32xf32> to vector<2x1xf32>
    %497 = vector.shape_cast %496 : vector<2x1xf32> to vector<2x1x1xf32>
    %cst_329 = arith.constant 9.99999996E-13 : f32
    %498 = vector.broadcast %cst_329 : f32 to vector<2x1x1xf32>
    %499 = arith.addf %497, %498 : vector<2x1x1xf32>
    %500 = math.rsqrt %499 : vector<2x1x1xf32>
    %501 = vector.broadcast %500 : vector<2x1x1xf32> to vector<2x1x32xf32>
    %502 = arith.mulf %494, %501 : vector<2x1x32xf32>
    %503 = vector.broadcast %502 : vector<2x1x32xf32> to vector<2x4x32xf32>
    %504 = arith.mulf %460, %503 : vector<2x4x32xf32>
    %cst_330 = arith.constant dense<0.000000e+00> : vector<2x4xf32>
    %505 = vector.multi_reduction <add>, %504, %cst_330 [2] : vector<2x4x32xf32> to vector<2x4xf32>
    %506 = vector.shape_cast %505 : vector<2x4xf32> to vector<2x4x1xf32>
    %507 = vector.broadcast %506 : vector<2x4x1xf32> to vector<2x4x32xf32>
    %508 = arith.mulf %460, %507 : vector<2x4x32xf32>
    %cst_331 = arith.constant dense<0.000000e+00> : vector<2x32xf32>
    %509 = vector.multi_reduction <add>, %508, %cst_331 [1] : vector<2x4x32xf32> to vector<2x32xf32>
    %510 = vector.shape_cast %509 : vector<2x32xf32> to vector<2x1x32xf32>
    %511 = arith.mulf %510, %510 : vector<2x1x32xf32>
    %cst_332 = arith.constant dense<0.000000e+00> : vector<2x1xf32>
    %512 = vector.multi_reduction <add>, %511, %cst_332 [2] : vector<2x1x32xf32> to vector<2x1xf32>
    %513 = vector.shape_cast %512 : vector<2x1xf32> to vector<2x1x1xf32>
    %cst_333 = arith.constant 9.99999996E-13 : f32
    %514 = vector.broadcast %cst_333 : f32 to vector<2x1x1xf32>
    %515 = arith.addf %513, %514 : vector<2x1x1xf32>
    %516 = math.rsqrt %515 : vector<2x1x1xf32>
    %517 = vector.broadcast %516 : vector<2x1x1xf32> to vector<2x1x32xf32>
    %518 = arith.mulf %510, %517 : vector<2x1x32xf32>
    %519 = vector.broadcast %518 : vector<2x1x32xf32> to vector<2x4x32xf32>
    %520 = arith.mulf %460, %519 : vector<2x4x32xf32>
    %cst_334 = arith.constant dense<0.000000e+00> : vector<2x4xf32>
    %521 = vector.multi_reduction <add>, %520, %cst_334 [2] : vector<2x4x32xf32> to vector<2x4xf32>
    %522 = vector.shape_cast %521 : vector<2x4xf32> to vector<2x4x1xf32>
    %523 = vector.broadcast %522 : vector<2x4x1xf32> to vector<2x4x32xf32>
    %524 = arith.mulf %460, %523 : vector<2x4x32xf32>
    %cst_335 = arith.constant dense<0.000000e+00> : vector<2x32xf32>
    %525 = vector.multi_reduction <add>, %524, %cst_335 [1] : vector<2x4x32xf32> to vector<2x32xf32>
    %526 = vector.shape_cast %525 : vector<2x32xf32> to vector<2x1x32xf32>
    %527 = arith.mulf %526, %526 : vector<2x1x32xf32>
    %cst_336 = arith.constant dense<0.000000e+00> : vector<2x1xf32>
    %528 = vector.multi_reduction <add>, %527, %cst_336 [2] : vector<2x1x32xf32> to vector<2x1xf32>
    %529 = vector.shape_cast %528 : vector<2x1xf32> to vector<2x1x1xf32>
    %cst_337 = arith.constant 9.99999996E-13 : f32
    %530 = vector.broadcast %cst_337 : f32 to vector<2x1x1xf32>
    %531 = arith.addf %529, %530 : vector<2x1x1xf32>
    %532 = math.rsqrt %531 : vector<2x1x1xf32>
    %533 = vector.broadcast %532 : vector<2x1x1xf32> to vector<2x1x32xf32>
    %534 = arith.mulf %526, %533 : vector<2x1x32xf32>
    %535 = vector.broadcast %534 : vector<2x1x32xf32> to vector<2x4x32xf32>
    %536 = arith.mulf %460, %535 : vector<2x4x32xf32>
    %cst_338 = arith.constant dense<0.000000e+00> : vector<2x4xf32>
    %537 = vector.multi_reduction <add>, %536, %cst_338 [2] : vector<2x4x32xf32> to vector<2x4xf32>
    %538 = vector.shape_cast %537 : vector<2x4xf32> to vector<2x4x1xf32>
    %539 = vector.broadcast %538 : vector<2x4x1xf32> to vector<2x4x32xf32>
    %540 = arith.mulf %460, %539 : vector<2x4x32xf32>
    %cst_339 = arith.constant dense<0.000000e+00> : vector<2x32xf32>
    %541 = vector.multi_reduction <add>, %540, %cst_339 [1] : vector<2x4x32xf32> to vector<2x32xf32>
    %542 = vector.shape_cast %541 : vector<2x32xf32> to vector<2x1x32xf32>
    %543 = arith.mulf %542, %542 : vector<2x1x32xf32>
    %cst_340 = arith.constant dense<0.000000e+00> : vector<2x1xf32>
    %544 = vector.multi_reduction <add>, %543, %cst_340 [2] : vector<2x1x32xf32> to vector<2x1xf32>
    %545 = vector.shape_cast %544 : vector<2x1xf32> to vector<2x1x1xf32>
    %cst_341 = arith.constant 9.99999996E-13 : f32
    %546 = vector.broadcast %cst_341 : f32 to vector<2x1x1xf32>
    %547 = arith.addf %545, %546 : vector<2x1x1xf32>
    %548 = math.rsqrt %547 : vector<2x1x1xf32>
    %549 = vector.broadcast %548 : vector<2x1x1xf32> to vector<2x1x32xf32>
    %550 = arith.mulf %542, %549 : vector<2x1x32xf32>
    %551 = vector.broadcast %550 : vector<2x1x32xf32> to vector<2x4x32xf32>
    %552 = arith.mulf %460, %551 : vector<2x4x32xf32>
    %cst_342 = arith.constant dense<0.000000e+00> : vector<2x4xf32>
    %553 = vector.multi_reduction <add>, %552, %cst_342 [2] : vector<2x4x32xf32> to vector<2x4xf32>
    %554 = vector.shape_cast %553 : vector<2x4xf32> to vector<2x4x1xf32>
    %555 = vector.broadcast %554 : vector<2x4x1xf32> to vector<2x4x32xf32>
    %556 = arith.mulf %460, %555 : vector<2x4x32xf32>
    %cst_343 = arith.constant dense<0.000000e+00> : vector<2x32xf32>
    %557 = vector.multi_reduction <add>, %556, %cst_343 [1] : vector<2x4x32xf32> to vector<2x32xf32>
    %558 = vector.shape_cast %557 : vector<2x32xf32> to vector<2x1x32xf32>
    %559 = arith.mulf %558, %558 : vector<2x1x32xf32>
    %cst_344 = arith.constant dense<0.000000e+00> : vector<2x1xf32>
    %560 = vector.multi_reduction <add>, %559, %cst_344 [2] : vector<2x1x32xf32> to vector<2x1xf32>
    %561 = vector.shape_cast %560 : vector<2x1xf32> to vector<2x1x1xf32>
    %cst_345 = arith.constant 9.99999996E-13 : f32
    %562 = vector.broadcast %cst_345 : f32 to vector<2x1x1xf32>
    %563 = arith.addf %561, %562 : vector<2x1x1xf32>
    %564 = math.rsqrt %563 : vector<2x1x1xf32>
    %565 = vector.broadcast %564 : vector<2x1x1xf32> to vector<2x1x32xf32>
    %566 = arith.mulf %558, %565 : vector<2x1x32xf32>
    %567 = vector.broadcast %566 : vector<2x1x32xf32> to vector<2x4x32xf32>
    %568 = arith.mulf %460, %567 : vector<2x4x32xf32>
    %cst_346 = arith.constant dense<0.000000e+00> : vector<2x4xf32>
    %569 = vector.multi_reduction <add>, %568, %cst_346 [2] : vector<2x4x32xf32> to vector<2x4xf32>
    %570 = vector.shape_cast %569 : vector<2x4xf32> to vector<2x4x1xf32>
    %571 = vector.broadcast %570 : vector<2x4x1xf32> to vector<2x4x32xf32>
    %572 = arith.mulf %460, %571 : vector<2x4x32xf32>
    %cst_347 = arith.constant dense<0.000000e+00> : vector<2x32xf32>
    %573 = vector.multi_reduction <add>, %572, %cst_347 [1] : vector<2x4x32xf32> to vector<2x32xf32>
    %574 = vector.shape_cast %573 : vector<2x32xf32> to vector<2x1x32xf32>
    %575 = arith.mulf %574, %574 : vector<2x1x32xf32>
    %cst_348 = arith.constant dense<0.000000e+00> : vector<2x1xf32>
    %576 = vector.multi_reduction <add>, %575, %cst_348 [2] : vector<2x1x32xf32> to vector<2x1xf32>
    %577 = vector.shape_cast %576 : vector<2x1xf32> to vector<2x1x1xf32>
    %cst_349 = arith.constant 9.99999996E-13 : f32
    %578 = vector.broadcast %cst_349 : f32 to vector<2x1x1xf32>
    %579 = arith.addf %577, %578 : vector<2x1x1xf32>
    %580 = math.rsqrt %579 : vector<2x1x1xf32>
    %581 = vector.broadcast %580 : vector<2x1x1xf32> to vector<2x1x32xf32>
    %582 = arith.mulf %574, %581 : vector<2x1x32xf32>
    %583 = vector.broadcast %582 : vector<2x1x32xf32> to vector<2x4x32xf32>
    %584 = arith.mulf %460, %583 : vector<2x4x32xf32>
    %cst_350 = arith.constant dense<0.000000e+00> : vector<2x4xf32>
    %585 = vector.multi_reduction <add>, %584, %cst_350 [2] : vector<2x4x32xf32> to vector<2x4xf32>
    %586 = vector.shape_cast %585 : vector<2x4xf32> to vector<2x4x1xf32>
    %587 = vector.broadcast %586 : vector<2x4x1xf32> to vector<2x4x32xf32>
    %588 = vector.broadcast %582 : vector<2x1x32xf32> to vector<2x4x32xf32>
    %589 = arith.mulf %587, %588 : vector<2x4x32xf32>
    %590 = arith.subf %460, %589 : vector<2x4x32xf32>
    %591 = vector.extract_strided_slice %590 {offsets = [0, 0, 0], sizes = [1, 4, 32], strides = [1, 1, 1]} : vector<2x4x32xf32> to vector<1x4x32xf32>
    %592 = vector.shape_cast %591 : vector<1x4x32xf32> to vector<4x32xf32>
    %593 = vector.extract_strided_slice %590 {offsets = [1, 0, 0], sizes = [1, 4, 32], strides = [1, 1, 1]} : vector<2x4x32xf32> to vector<1x4x32xf32>
    %594 = vector.shape_cast %593 : vector<1x4x32xf32> to vector<4x32xf32>
    %595 = arith.mulf %592, %594 : vector<4x32xf32>
    %596 = arith.truncf %595 : vector<4x32xf32> to vector<4x32xbf16>
    %597 = arith.subf %592, %594 : vector<4x32xf32>
    %598 = math.absf %597 : vector<4x32xf32>
    %599 = arith.truncf %598 : vector<4x32xf32> to vector<4x32xbf16>
    %c0_351 = arith.constant 0 : index
    %c0_352 = arith.constant 0 : index
    %600 = vector.load %arg3[%c0_351, %c0_352] : memref<32x2432xbf16, #tpu.memory_space<vmem>>, vector<32x2432xbf16>
    %cst_353 = arith.constant dense<0.000000e+00> : vector<4x2432xf32>
    %601 = tpu.matmul %596, %600, %cst_353 {dimension_numbers = #tpu.dot_dimension_numbers<[1], [0], [0], [1], [0, 0, 1, 1], [], []>} : vector<4x32xbf16>, vector<32x2432xbf16>, vector<4x2432xf32> -> vector<4x2432xf32>
    %c0_354 = arith.constant 0 : index
    %c0_355 = arith.constant 0 : index
    %602 = vector.load %arg4[%c0_354, %c0_355] : memref<32x2432xbf16, #tpu.memory_space<vmem>>, vector<32x2432xbf16>
    %cst_356 = arith.constant dense<0.000000e+00> : vector<4x2432xf32>
    %603 = tpu.matmul %599, %602, %cst_356 {dimension_numbers = #tpu.dot_dimension_numbers<[1], [0], [0], [1], [0, 0, 1, 1], [], []>} : vector<4x32xbf16>, vector<32x2432xbf16>, vector<4x2432xf32> -> vector<4x2432xf32>
    %604 = arith.addf %601, %603 : vector<4x2432xf32>
    %c0_357 = arith.constant 0 : index
    %c0_358 = arith.constant 0 : index
    %605 = vector.load %arg5[%c0_357, %c0_358] : memref<1x2432xf32, #tpu.memory_space<vmem>>, vector<1x2432xf32>
    %606 = vector.broadcast %605 : vector<1x2432xf32> to vector<4x2432xf32>
    %607 = arith.addf %604, %606 : vector<4x2432xf32>
    %608 = math.tanh %607 : vector<4x2432xf32>
    %609 = arith.truncf %608 : vector<4x2432xf32> to vector<4x2432xbf16>
    %c0_359 = arith.constant 0 : index
    %c0_360 = arith.constant 0 : index
    %610 = vector.load %arg6[%c0_359, %c0_360] : memref<2432x128xbf16, #tpu.memory_space<vmem>>, vector<2432x128xbf16>
    %cst_361 = arith.constant dense<0.000000e+00> : vector<4x128xf32>
    %611 = tpu.matmul %609, %610, %cst_361 {dimension_numbers = #tpu.dot_dimension_numbers<[1], [0], [0], [1], [0, 0, 1, 1], [], []>} : vector<4x2432xbf16>, vector<2432x128xbf16>, vector<4x128xf32> -> vector<4x128xf32>
    %c0_362 = arith.constant 0 : index
    %c0_363 = arith.constant 0 : index
    %612 = vector.load %arg7[%c0_362, %c0_363] : memref<1x128xf32, #tpu.memory_space<vmem>>, vector<1x128xf32>
    %613 = vector.broadcast %612 : vector<1x128xf32> to vector<4x128xf32>
    %614 = arith.addf %611, %613 : vector<4x128xf32>
    %cst_364 = arith.constant dense<0xFF800000> : vector<4xf32>
    %615 = vector.multi_reduction <maximumf>, %614, %cst_364 [1] : vector<4x128xf32> to vector<4xf32>
    %616 = vector.shape_cast %615 : vector<4xf32> to vector<4x1xf32>
    %617 = vector.broadcast %616 : vector<4x1xf32> to vector<4x128xf32>
    %618 = arith.subf %614, %617 : vector<4x128xf32>
    %619 = math.exp %618 : vector<4x128xf32>
    %cst_365 = arith.constant dense<0.000000e+00> : vector<4xf32>
    %620 = vector.multi_reduction <add>, %619, %cst_365 [1] : vector<4x128xf32> to vector<4xf32>
    %621 = vector.shape_cast %620 : vector<4xf32> to vector<4x1xf32>
    %622 = math.log %621 : vector<4x1xf32>
    %623 = vector.broadcast %622 : vector<4x1xf32> to vector<4x128xf32>
    %624 = arith.subf %618, %623 : vector<4x128xf32>
    %c0_366 = arith.constant 0 : index
    %c0_367 = arith.constant 0 : index
    %625 = vector.load %arg8[%c0_366, %c0_367] : memref<4x128xf32, #tpu.memory_space<vmem>>, vector<4x128xf32>
    tpu.vector_store %arg8[%c0_366, %c0_367], %624 {strides = array<i32>} : memref<4x128xf32, #tpu.memory_space<vmem>>, vector<4x128xf32>,
    return
  }
}

</mosaic_0001>

<bundles_post_ra>
// kernel: sif_forward.1
= control target key start
LH: loop header
LB: loop body
LE: loop exit
PB: predicated region body
PF: predicated region fallthrough
CT: control target
= control target key end

     0   :  { %s6748_s0 = inlined_call_operand.vmem [shape: s32[8,8], index: 0, kind: input, shape index: {}]   ;;  %s6749_s1 = inlined_call_operand.vmem [shape: f32[8,8], index: 1, kind: input, shape index: {}]   ;;  %s6750_s2 = inlined_call_operand.vmem [shape: f32[100,32], index: 2, kind: input, shape index: {}]   ;;  %s6751_s3 = inlined_call_operand.vmem [shape: bf16[32,2432], index: 3, kind: input, shape index: {}]   ;;  %s6752_s4 = inlined_call_operand.vmem [shape: bf16[32,2432], index: 4, kind: input, shape index: {}]   ;;  %s6753_s5 = inlined_call_operand.vmem [shape: f32[1,2432], index: 5, kind: input, shape index: {}]   ;;  %s6754_s6 = inlined_call_operand.vmem [shape: bf16[2432,128], index: 6, kind: input, shape index: {}]   ;;  %s6755_s7 = inlined_call_operand.vmem [shape: f32[1,128], index: 7, kind: input, shape index: {}]   ;;  %s6756_s8 = inlined_call_operand.hbm [shape: f32[4,128], index: 8, kind: output, shape index: {}]  }
   0x1   :  { %6765 = sst [smem:[#allocation16_spill]] %s6751_s3 }
   0x2   :  { %6766 = sst [smem:[#allocation17_spill]] %s6752_s4 }
   0x3   :  { %6767 = sst [smem:[#allocation18_spill]] %s6753_s5 }
   0x4   :  { %6768 = sst [smem:[#allocation19_spill]] %s6754_s6 }
   0x5   :  { %6769 = sst [smem:[#allocation20_spill]] %s6755_s7 }
   0x6   :  { %6770 = sst [smem:[#allocation21_spill]] %s6756_s8 }
   0x7   :  { %13 = vsyncpa [#allocation4], 0 }
   0x8   :  { %14 = vsyncpa [#allocation6], 0 }
   0x9   :  { %15 = vsyncpa [#allocation3], 0  ;;  %s22_s29 = sshll.u32 %s6748_s0, 4  ;;  %s32_s10 = sshll.u32 %s6749_s1, 4  ;;  %s23_s29 = int_to_ptr.vmem [resolvable:$true] %s22_s29  ;;  %s33_s10 = int_to_ptr.vmem [resolvable:$true] %s32_s10 }
   0xa   :  { %s4975_s11 = scalar_lea.vmem %s23_s29, 128  ;;  %p4980_p1 = scmp.lt.s32.totalorder %s23_s29, %s23_s29 }
   0xb   :  { %p4976_p0 = scmp.ne.s32.totalorder %s23_s29, %s4975_s11  ;;  %p4981_p2 = scmp.lt.s32.totalorder %s4975_s11, %s4975_s11 }
   0xd   :  { %p4982_p3 = por %p4981_p2, %p4980_p1 }
   0xf   :  { %p4983_p4 = pnand %p4982_p3, %p4976_p0 }
  0x11   :  { %4986 = shalt.err (!%p4983_p4)
}
  0x12   :  { %s5027_s12 = smov [#allocation2]   ;;  %s4987_s13 = scalar_lea.vmem %s33_s10, 128 }
  0x13   :  { %25 = dma.vmem_to_smem %s23_s29, 128, %s5027_s12, [#allocation4]  }
  0x14   :  { %p4988_p5 = scmp.ne.s32.totalorder %s33_s10, %s4987_s13  ;;  %p4992_p6 = scmp.lt.s32.totalorder %s33_s10, %s33_s10 }
  0x15   :  { %p4993_p7 = scmp.lt.s32.totalorder %s4987_s13, %s4987_s13 }
  0x17   :  { %p4994_p8 = por %p4993_p7, %p4992_p6 }
  0x19   :  { %p4995_p9 = pnand %p4994_p8, %p4988_p5 }
  0x1b   :  { %4998 = shalt.err (!%p4995_p9)
}
  0x1c   :  { %s5028_s0 = smov [#allocation5]  }
  0x1d   :  { %35 = dma.vmem_to_smem %s33_s10, 128, %s5028_s0, [#allocation6]  }
  0x1e   :  { %5021 = dma.done.wait [#allocation4], 128  }
  0x1f   :  { %5022 = vsyncadd [#allocation4], 4294967168 }
  0x20   :  { %5023 = dma.done.wait [#allocation6], 128  }
  0x21   :  { %5024 = vsyncadd [#allocation6], 4294967168 }
  0x22   :  { %54 = sfence }
  0x23   :  { %s5084_s1 = sld [smem:[#allocation2]]  ;;  %s5088_s15 = sld [smem:[#allocation2 + $0x1]]  ;;  %vm289_vm0 = vcmask 1040384   ;;  %vm291_vm1 = vcmask 1041408   ;;  %vm293_vm2 = vcmask 1042432   ;;  %vm531_vm3 = vcmask 257024  }
  0x24   :  { %s5086_s14 = sld [smem:[#allocation5]]  ;;  %s5090_s16 = sld [smem:[#allocation5 + $0x1]]  ;;  %vm548_vm4 = vcmask 261120   ;;  %vm5031_vm5 = vmmov 0   ;;  %vm3913_vm6 = vcmask 1043456  }
  0x25   :  { %s5092_s17 = sld [smem:[#allocation2 + $0x2]]  ;;  %s5096_s19 = sld [smem:[#allocation2 + $0x3]] }
  0x26   :  { %s5094_s18 = sld [smem:[#allocation5 + $0x2]]  ;;  %s5098_s20 = sld [smem:[#allocation5 + $0x3]] }
  0x27   :  { %s5100_s21 = sld [smem:[#allocation2 + $0x4]]  ;;  %s5104_s23 = sld [smem:[#allocation2 + $0x5]] }
  0x28   :  { %s5102_s22 = sld [smem:[#allocation5 + $0x4]]  ;;  %s5106_s24 = sld [smem:[#allocation5 + $0x5]] }
  0x29   :  { %s58_s27 = scalar_lea.vmem %s6750_s2, %s5084_s1  ;;  %s5112_s28 = sld [smem:[#allocation2 + $0x6]] }
  0x2a   :  { %s65_s9 = scalar_lea.vmem %s6750_s2, %s5088_s15  ;;  %s5118_s10 = sld [smem:[#allocation5 + $0x6]]  ;;  %v59_v3 = vld [vmem:[%s58_s27] sm:$0x1]  ;;  %v60_v7 = vstv %s5086_s14  ;;  %v67_v11 = vstv %s5090_s16 }
  0x2b   :  { %s5124_s0 = sld [smem:[#allocation2 + $0x7]]  ;;  %s4021_s15 = sld [smem:[#allocation2 + $0x80]]  ;;  %v66_v4 = vld [vmem:[%s65_s9] sm:$0x1]  ;;  %v61_v16 = vmul.f32 %v60_v7, %v59_v3 }
  0x2c   :  { %s5130_s25 = sld [smem:[#allocation5 + $0x7]]  ;;  %s4022_s11 = sld [smem:[#allocation5 + $0x80]]  ;;  %v68_v17 = vmul.f32 %v67_v11, %v66_v4  ;;  %v74_v19 = vstv %s5094_s18  ;;  %v81_v27 = vstv %s5098_s20 }
  0x2d   :  { %6771 = sst [smem:[#allocation11_spill]] %s5100_s21  ;;  %s93_s3 = scalar_lea.vmem %s6750_s2, %s5104_s23 }
  0x2e   :  { %6772 = sst [smem:[#allocation12_spill]] %s5102_s22  ;;  %s4025_s8 = sld [smem:[#allocation2 + $0x82]]  ;;  %v69_v25 = vadd.f32 %v68_v17, %v61_v16  ;;  %v94_v53 = vld [vmem:[%s93_s3] sm:$0x1] }
  0x2f   :  { %6773 = sst [smem:[#allocation13_spill]] %s5106_s24  ;;  %s4024_s7 = sld [smem:[#allocation5 + $0x81]] }
  0x30   :  { %6774 = sst [smem:[#allocation14_spill]] %s5118_s10  ;;  %s4023_s10 = sld [smem:[#allocation2 + $0x81]] }
  0x31   :  { %s4026_s22 = sld [smem:[#allocation5 + $0x82]]  ;;  %s4027_s5 = sld [smem:[#allocation2 + $0x83]] }
  0x32   :  { %6775 = sst [smem:[#allocation15_spill]] %s5130_s25  ;;  %s5148_s26 = sld [smem:[#allocation5 + $0x83]]  ;;  %v116_v1 = vstv %s4022_s11 }
  0x33   :  { %s114_s6 = scalar_lea.vmem %s6750_s2, %s4021_s15  ;;  %s5153_s30 = sld [smem:[#allocation2 + $0x84]] }
  0x34   :  { %v115_v0 = vld [vmem:[%s114_s6] sm:$0x1]  ;;  %s5155_s13 = sld [smem:[#allocation5 + $0x84]]  ;;  %s5157_s12 = sld [smem:[#allocation2 + $0x85]] }
  0x35   :  { %v117_v2 = vmul.f32 %v116_v1, %v115_v0  ;;  %s5162_s4 = sld [smem:[#allocation5 + $0x85]]  ;;  %v123_v6 = vstv %s4024_s7  ;;  %s128_s15 = scalar_lea.vmem %s6750_s2, %s4025_s8 }
  0x36   :  { %s121_s25 = scalar_lea.vmem %s6750_s2, %s4023_s10  ;;  %s5167_s11 = sld [smem:[#allocation2 + $0x86]]  ;;  %v129_v9 = vld [vmem:[%s128_s15] sm:$0x1] }
  0x37   :  { %v122_v5 = vld [vmem:[%s121_s25] sm:$0x1]  ;;  %v130_v10 = vstv %s4026_s22  ;;  %s5170_s10 = sld [smem:[#allocation5 + $0x86]]  ;;  %s5172_s27 = sld [smem:[#allocation2 + $0x87]] }
  0x38   :  { %v124_v8 = vmul.f32 %v123_v6, %v122_v5  ;;  %v131_v12 = vmul.f32 %v130_v10, %v129_v9  ;;  %s135_s7 = scalar_lea.vmem %s6750_s2, %s4027_s5  ;;  %s5178_s8 = sld [smem:[#allocation5 + $0x87]]  ;;  %v137_v15 = vstv %s5148_s26 }
  0x39   :  { %v136_v14 = vld [vmem:[%s135_s7] sm:$0x1]  ;;  %s142_s6 = scalar_lea.vmem %s6750_s2, %s5153_s30  ;;  %s5185_s24 = sld [smem:[#allocation2 + $0x100]] }
  0x3a   :  { %v125_v13 = vadd.f32 %v124_v8, %v117_v2  ;;  %s149_s21 = scalar_lea.vmem %s6750_s2, %s5157_s12  ;;  %s5191_s5 = sld [smem:[#allocation5 + $0x100]]  ;;  %v138_v21 = vmul.f32 %v137_v15, %v136_v14  ;;  %v143_v22 = vld [vmem:[%s142_s6] sm:$0x1]  ;;  %v144_v23 = vstv %s5155_s13 }
  0x3b   :  { %s6776_s26 = scalar_lea.vmem %s6750_s2, %s5092_s17  ;;  %s5198_s9 = sld [smem:[#allocation2 + $0x101]]  ;;  %v150_v28 = vld [vmem:[%s149_s21] sm:$0x1]  ;;  %v145_v30 = vmul.f32 %v144_v23, %v143_v22  ;;  %v151_v31 = vstv %s5162_s4 }
  0x3c   :  { %v73_v18 = vld [vmem:[%s6776_s26] sm:$0x1]  ;;  %s5200_s30 = sld [smem:[#allocation5 + $0x101]]  ;;  %v132_v20 = vadd.f32 %v131_v12, %v125_v13  ;;  %s156_s7 = scalar_lea.vmem %s6750_s2, %s5167_s11  ;;  %v152_v46 = vmul.f32 %v151_v31, %v150_v28 }
  0x3d   :  { %s5207_s14 = sld [smem:[#allocation2 + $0x102]]  ;;  %s6777_s15 = scalar_lea.vmem %s6750_s2, %s5096_s19  ;;  %v75_v26 = vmul.f32 %v74_v19, %v73_v18  ;;  %v157_v41 = vld [vmem:[%s156_s7] sm:$0x1]  ;;  %v158_v49 = vstv %s5170_s10 }
  0x3e   :  { %s5214_s1 = sld [smem:[#allocation5 + $0x102]]  ;;  %v80_v24 = vld [vmem:[%s6777_s15] sm:$0x1]  ;;  %s6778_s26 = sld [smem:[#allocation11_spill]]  ;;  %v139_v29 = vadd.f32 %v138_v21, %v132_v20  ;;  %v159_v0 = vmul.f32 %v158_v49, %v157_v41  ;;  %v165_v3 = vstv %s5178_s8 }
  0x3f   :  { %s5221_s12 = sld [smem:[#allocation2 + $0x103]]  ;;  %s6779_s13 = sld [smem:[#allocation12_spill]]  ;;  %v76_v39 = vadd.f32 %v75_v26, %v69_v25  ;;  %v82_v40 = vmul.f32 %v81_v27, %v80_v24 }
  0x40   :  { %s5223_s25 = sld [smem:[#allocation5 + $0x103]]  ;;  %s170_s22 = scalar_lea.vmem %s6750_s2, %s5185_s24  ;;  %v172_v33 = vstv %s5191_s5  ;;  %v146_v45 = vadd.f32 %v145_v30, %v139_v29 }
  0x41   :  { %s5230_s18 = sld [smem:[#allocation2 + $0x104]]  ;;  %v171_v32 = vld [vmem:[%s170_s22] sm:$0x1]  ;;  %s5236_s29 = sld [smem:[#allocation2 + $0x105]]  ;;  %v83_v57 = vadd.f32 %v82_v40, %v76_v39 }
  0x42   :  { %s5234_s19 = sld [smem:[#allocation5 + $0x104]]  ;;  %v173_v35 = vmul.f32 %v172_v33, %v171_v32  ;;  %s177_s17 = scalar_lea.vmem %s6750_s2, %s5198_s9  ;;  %v179_v36 = vstv %s5200_s30  ;;  %v153_v63 = vadd.f32 %v152_v46, %v146_v45 }
  0x43   :  { %s5248_s4 = sld [smem:[#allocation5 + $0x105]]  ;;  %v178_v38 = vld [vmem:[%s177_s17] sm:$0x1]  ;;  %s184_s16 = scalar_lea.vmem %s6750_s2, %s5207_s14 }
  0x44   :  { %s6780_s15 = scalar_lea.vmem %s6750_s2, %s6778_s26  ;;  %s5255_s20 = sld [smem:[#allocation2 + $0x106]]  ;;  %v180_v42 = vmul.f32 %v179_v36, %v178_v38  ;;  %v185_v43 = vld [vmem:[%s184_s16] sm:$0x1]  ;;  %v186_v44 = vstv %s5214_s1  ;;  %v160_v13 = vadd.f32 %v159_v0, %v153_v63 }
  0x45   :  { %v87_v34 = vld [vmem:[%s6780_s15] sm:$0x1]  ;;  %v88_v37 = vstv %s6779_s13  ;;  %s5263_s9 = sld [smem:[#allocation5 + $0x106]]  ;;  %s5265_s30 = sld [smem:[#allocation2 + $0x107]]  ;;  %v187_v47 = vmul.f32 %v186_v44, %v185_v43 }
  0x46   :  { %s191_s15 = scalar_lea.vmem %s6750_s2, %s5221_s12  ;;  %v193_v48 = vstv %s5223_s25  ;;  %s5272_s11 = sld [smem:[#allocation5 + $0x107]]  ;;  %v181_v50 = vadd.f32 %v180_v42, %v173_v35  ;;  %v89_v52 = vmul.f32 %v88_v37, %v87_v34 }
  0x47   :  { %v192_v51 = vld [vmem:[%s191_s15] sm:$0x1]  ;;  %s198_s1 = scalar_lea.vmem %s6750_s2, %s5230_s18  ;;  %s6781_s24 = sld [smem:[#allocation13_spill]] }
  0x48   :  { %s5279_s6 = sld [smem:[#allocation2 + $0x180]]  ;;  %v194_v54 = vmul.f32 %v193_v48, %v192_v51  ;;  %v199_v55 = vld [vmem:[%s198_s1] sm:$0x1]  ;;  %v200_v56 = vstv %s5234_s19  ;;  %s205_s25 = scalar_lea.vmem %s6750_s2, %s5236_s29  ;;  %v188_v58 = vadd.f32 %v187_v47, %v181_v50  ;;  %v90_v8 = vadd.f32 %v89_v52, %v83_v57 }
  0x49   :  { %s5291_s18 = sld [smem:[#allocation5 + $0x180]]  ;;  %v201_v59 = vmul.f32 %v200_v56, %v199_v55  ;;  %s6782_s22 = sld [smem:[#allocation14_spill]]  ;;  %v206_v60 = vld [vmem:[%s205_s25] sm:$0x1]  ;;  %v207_v61 = vstv %s5248_s4 }
  0x4a   :  { %s5294_s3 = sld [smem:[#allocation2 + $0x181]]  ;;  %s212_s29 = scalar_lea.vmem %s6750_s2, %s5255_s20  ;;  %v195_v4 = vadd.f32 %v194_v54, %v188_v58  ;;  %v208_v6 = vmul.f32 %v207_v61, %v206_v60 }
  0x4b   :  { %s5296_s23 = sld [smem:[#allocation5 + $0x181]]  ;;  %s5303_s21 = sld [smem:[#allocation2 + $0x182]]  ;;  %v213_v7 = vld [vmem:[%s212_s29] sm:$0x1]  ;;  %v214_v11 = vstv %s5263_s9 }
  0x4c   :  { %s6783_s15 = scalar_lea.vmem %s6750_s2, %s5112_s28  ;;  %s6784_s16 = scalar_lea.vmem %s6750_s2, %s5172_s27  ;;  %v202_v10 = vadd.f32 %v201_v59, %v195_v4  ;;  %v215_v23 = vmul.f32 %v214_v11, %v213_v7  ;;  %v221_v26 = vstv %s5272_s11 }
  0x4d   :  { %v95_v62 = vstv %s6781_s24  ;;  %v101_v1 = vld [vmem:[%s6783_s15] sm:$0x1]  ;;  %s219_s20 = scalar_lea.vmem %s6750_s2, %s5265_s30  ;;  %s5320_s17 = sld [smem:[#allocation5 + $0x182]] }
  0x4e   :  { %v164_v2 = vld [vmem:[%s6784_s16] sm:$0x1]  ;;  %s5323_s28 = sld [smem:[#allocation2 + $0x183]]  ;;  %v96_v9 = vmul.f32 %v95_v62, %v94_v53  ;;  %s6785_s30 = sld [smem:[#allocation15_spill]]  ;;  %v209_v22 = vadd.f32 %v208_v6, %v202_v10 }
  0x4f   :  { %v102_v5 = vstv %s6782_s22  ;;  %s5325_s5 = sld [smem:[#allocation5 + $0x183]]  ;;  %s226_s10 = scalar_lea.vmem %s6750_s2, %s5279_s6  ;;  %v166_v14 = vmul.f32 %v165_v3, %v164_v2  ;;  %v228_v16 = vstv %s5291_s18  ;;  %v220_v17 = vld [vmem:[%s219_s20] sm:$0x1] }
  0x50   :  { %s5332_s12 = sld [smem:[#allocation2 + $0x184]]  ;;  %s6786_s19 = scalar_lea.vmem %s6750_s2, %s5124_s0  ;;  %v227_v15 = vld [vmem:[%s226_s10] sm:$0x1]  ;;  %v103_v20 = vmul.f32 %v102_v5, %v101_v1  ;;  %v97_v25 = vadd.f32 %v96_v9, %v90_v8  ;;  %v216_v36 = vadd.f32 %v215_v23, %v209_v22  ;;  %v222_v37 = vmul.f32 %v221_v26, %v220_v17 }
  0x51   :  { %v108_v12 = vld [vmem:[%s6786_s19] sm:$0x1]  ;;  %s5340_s26 = sld [smem:[#allocation5 + $0x184]]  ;;  %s5342_s9 = sld [smem:[#allocation2 + $0x185]]  ;;  %v229_v18 = vmul.f32 %v228_v16, %v227_v15  ;;  %v235_v19 = vstv %s5296_s23  ;;  %v167_v30 = vadd.f32 %v166_v14, %v160_v13 }
  0x52   :  { %s233_s14 = scalar_lea.vmem %s6750_s2, %s5294_s3  ;;  %s5349_s0 = sld [smem:[#allocation5 + $0x185]]  ;;  %v104_v41 = vadd.f32 %v103_v20, %v97_v25  ;;  %v223_v51 = vadd.f32 %v222_v37, %v216_v36 }
  0x53   :  { %v234_v24 = vld [vmem:[%s233_s14] sm:$0x1]  ;;  %s240_s15 = scalar_lea.vmem %s6750_s2, %s5303_s21  ;;  %s5356_s4 = sld [smem:[#allocation2 + $0x186]]  ;;  %v242_v29 = vstv %s5320_s17  ;;  %v281_v46 = vrot.slane %v167_v30, 7 }
  0x54   :  { %v109_v21 = vstv %s6785_s30  ;;  %v236_v27 = vmul.f32 %v235_v19, %v234_v24  ;;  %v241_v28 = vld [vmem:[%s240_s15] sm:$0x1]  ;;  %s5360_s3 = sld [smem:[#allocation5 + $0x186]]  ;;  %s5362_s23 = sld [smem:[#allocation2 + $0x187]]  ;;  %v284_v59 = vrot.slane %v223_v51, 6 }
  0x55   :  { %v243_v31 = vmul.f32 %v242_v29, %v241_v28  ;;  %s247_s21 = scalar_lea.vmem %s6750_s2, %s5323_s28  ;;  %v249_v32 = vstv %s5325_s5  ;;  %s5369_s1 = sld [smem:[#allocation5 + $0x187]]  ;;  %v110_v33 = vmul.f32 %v109_v21, %v108_v12 }
  0x56   :  { %v237_v34 = vadd.f32 %v236_v27, %v229_v18  ;;  %v248_v35 = vld [vmem:[%s247_s21] sm:$0x1]  ;;  %s254_s20 = scalar_lea.vmem %s6750_s2, %s5332_s12  ;;  %s5375_s17 = sld [smem:[#allocation2 + $0x200]] }
  0x57   :  { %v250_v38 = vmul.f32 %v249_v32, %v248_v35  ;;  %v255_v39 = vld [vmem:[%s254_s20] sm:$0x1]  ;;  %v256_v40 = vstv %s5340_s26  ;;  %s261_s27 = scalar_lea.vmem %s6750_s2, %s5342_s9  ;;  %s5382_s8 = sld [smem:[#allocation5 + $0x200]]  ;;  %v111_v54 = vadd.f32 %v110_v33, %v104_v41 }
  0x58   :  { %v244_v42 = vadd.f32 %v243_v31, %v237_v34  ;;  %v257_v43 = vmul.f32 %v256_v40, %v255_v39  ;;  %v262_v44 = vld [vmem:[%s261_s27] sm:$0x1]  ;;  %v263_v45 = vstv %s5349_s0  ;;  %s5385_s30 = sld [smem:[#allocation2 + $0x201]]  ;;  %s5398_s6 = sld [smem:[#allocation2 + $0x202]] }
  0x59   :  { %s268_s25 = scalar_lea.vmem %s6750_s2, %s5356_s4  ;;  %s5391_s22 = sld [smem:[#allocation5 + $0x201]]  ;;  %v264_v48 = vmul.f32 %v263_v45, %v262_v44  ;;  %v290_v61 = vsel %vm289_vm0, %v111_v54, %v281_v46 }
  0x5a   :  { %v251_v47 = vadd.f32 %v250_v38, %v244_v42  ;;  %v269_v49 = vld [vmem:[%s268_s25] sm:$0x1]  ;;  %v270_v50 = vstv %s5360_s3  ;;  %s275_s9 = scalar_lea.vmem %s6750_s2, %s5362_s23  ;;  %s5401_s29 = sld [smem:[#allocation5 + $0x202]]  ;;  %v292_v63 = vsel %vm291_vm1, %v290_v61, %v284_v59 }
  0x5b   :  { %v276_v52 = vld [vmem:[%s275_s9] sm:$0x1]  ;;  %v277_v53 = vstv %s5369_s1  ;;  %s5403_s14 = sld [smem:[#allocation2 + $0x203]]  ;;  %v271_v56 = vmul.f32 %v270_v50, %v269_v49  ;;  %s5411_s4 = sld [smem:[#allocation2 + $0x204]] }
  0x5c   :  { %v258_v55 = vadd.f32 %v257_v43, %v251_v47  ;;  %s5409_s15 = sld [smem:[#allocation5 + $0x203]]  ;;  %s5413_s3 = sld [smem:[#allocation5 + $0x204]]  ;;  %v278_v58 = vmul.f32 %v277_v53, %v276_v52 }
  0x5d   :  { %s5419_s21 = sld [smem:[#allocation2 + $0x205]]  ;;  %s5423_s11 = sld [smem:[#allocation2 + $0x206]]  ;;  %v299_v10 = vstv %s5382_s8 }
  0x5e   :  { %v265_v57 = vadd.f32 %v264_v48, %v258_v55  ;;  %s5421_s1 = sld [smem:[#allocation5 + $0x205]]  ;;  %s5430_s5 = sld [smem:[#allocation5 + $0x206]] }
  0x5f   :  { %s5436_s25 = sld [smem:[#allocation2 + $0x207]]  ;;  %s4085_s26 = sld [smem:[#allocation2 + $0x280]]  ;;  %v306_v14 = vstv %s5391_s22 }
  0x60   :  { %v272_v60 = vadd.f32 %v271_v56, %v265_v57  ;;  %s5438_s19 = sld [smem:[#allocation5 + $0x207]]  ;;  %s4086_s23 = sld [smem:[#allocation5 + $0x280]]  ;;  %v313_v27 = vstv %s5401_s29 }
  0x61   :  { %s4087_s27 = sld [smem:[#allocation2 + $0x281]]  ;;  %s5456_s9 = sld [smem:[#allocation2 + $0x282]] }
  0x62   :  { %v279_v62 = vadd.f32 %v278_v58, %v272_v60  ;;  %s4088_s16 = sld [smem:[#allocation5 + $0x281]]  ;;  %s5458_s0 = sld [smem:[#allocation5 + $0x282]]  ;;  %v320_v37 = vstv %s5409_s15  ;;  %v327_v49 = vstv %s5413_s3 }
  0x63   :  { %6787 = sst [smem:[#allocation11_spill]] %s5423_s11  ;;  %s5466_s12 = sld [smem:[#allocation2 + $0x283]] }
  0x64   :  { %6788 = sst [smem:[#allocation12_spill]] %s5430_s5  ;;  %v287_v0 = vrot.slane %v279_v62, 5  ;;  %s5471_s13 = sld [smem:[#allocation5 + $0x283]] }
  0x65   :  { %6789 = sst [smem:[#allocation13_spill]] %s5436_s25  ;;  %s353_s18 = scalar_lea.vmem %s6750_s2, %s4085_s26 }
  0x66   :  { %6790 = sst [smem:[#allocation14_spill]] %s5438_s19  ;;  %v5454_v1 = vsel %vm293_vm2, %v292_v63, %v287_v0  ;;  %v354_v4 = vld [vmem:[%s353_s18] sm:$0x1]  ;;  %v355_v5 = vstv %s4086_s23  ;;  %s5473_s19 = sld [smem:[#allocation2 + $0x284]] }
  0x67   :  { %v532_v2 = vsel %vm531_vm3, %v5454_v1, 0.0  ;;  %s5475_s5 = sld [smem:[#allocation5 + $0x284]]  ;;  %s6791_s20 = scalar_lea.vmem %s6750_s2, %s5375_s17  ;;  %v356_v9 = vmul.f32 %v355_v5, %v354_v4 }
  0x68   :  { %v533_v3 = vrot.slane %v532_v2, 4  ;;  %v298_v7 = vld [vmem:[%s6791_s20] sm:$0x1]  ;;  %s6792_s26 = scalar_lea.vmem %s6750_s2, %s5385_s30  ;;  %s360_s10 = scalar_lea.vmem %s6750_s2, %s4087_s27  ;;  %v362_v12 = vstv %s4088_s16  ;;  %v369_v16 = vstv %s5458_s0 }
  0x69   :  { %v305_v8 = vld [vmem:[%s6792_s26] sm:$0x1]  ;;  %s5490_s11 = sld [smem:[#allocation2 + $0x285]]  ;;  %s5495_s20 = sld [smem:[#allocation2 + $0x286]]  ;;  %v300_v22 = vmul.f32 %v299_v10, %v298_v7 }
  0x6a   :  { %v534_v6 = vadd.f32 %v533_v3, %v532_v2  ;;  %v361_v11 = vld [vmem:[%s360_s10] sm:$0x1]  ;;  %s5493_s17 = sld [smem:[#allocation5 + $0x285]]  ;;  %s367_s7 = scalar_lea.vmem %s6750_s2, %s5456_s9  ;;  %v307_v23 = vmul.f32 %v306_v14, %v305_v8  ;;  %v376_v24 = vstv %s5471_s13  ;;  %v334_v3 = vstv %s5421_s1 }
  0x6b   :  { %v363_v15 = vmul.f32 %v362_v12, %v361_v11  ;;  %s5503_s27 = sld [smem:[#allocation5 + $0x286]]  ;;  %v368_v17 = vld [vmem:[%s367_s7] sm:$0x1]  ;;  %s374_s24 = scalar_lea.vmem %s6750_s2, %s5466_s12 }
  0x6c   :  { %v535_v13 = vrot.slane %v534_v6, 2  ;;  %s5509_s28 = sld [smem:[#allocation2 + $0x287]]  ;;  %v370_v20 = vmul.f32 %v369_v16, %v368_v17  ;;  %v375_v21 = vld [vmem:[%s374_s24] sm:$0x1]  ;;  %s5513_s9 = sld [smem:[#allocation2 + $0x300]]  ;;  %v308_v34 = vadd.f32 %v307_v23, %v300_v22 }
  0x6d   :  { %v364_v19 = vadd.f32 %v363_v15, %v356_v9  ;;  %s5511_s22 = sld [smem:[#allocation5 + $0x287]]  ;;  %s381_s12 = scalar_lea.vmem %s6750_s2, %s5473_s19  ;;  %v377_v29 = vmul.f32 %v376_v24, %v375_v21  ;;  %v383_v31 = vstv %s5475_s5 }
  0x6e   :  { %v536_v18 = vadd.f32 %v535_v13, %v534_v6  ;;  %s5520_s18 = sld [smem:[#allocation5 + $0x300]]  ;;  %s6793_s30 = scalar_lea.vmem %s6750_s2, %s5398_s6  ;;  %v382_v30 = vld [vmem:[%s381_s12] sm:$0x1] }
  0x6f   :  { %v312_v26 = vld [vmem:[%s6793_s30] sm:$0x1]  ;;  %v371_v28 = vadd.f32 %v370_v20, %v364_v19  ;;  %s388_s13 = scalar_lea.vmem %s6750_s2, %s5490_s11  ;;  %s5532_s8 = sld [smem:[#allocation2 + $0x301]]  ;;  %v384_v39 = vmul.f32 %v383_v31, %v382_v30 }
  0x70   :  { %v537_v25 = vrot.slane %v536_v18, 1  ;;  %s395_s24 = scalar_lea.vmem %s6750_s2, %s5495_s20  ;;  %s5539_s6 = sld [smem:[#allocation5 + $0x301]]  ;;  %v314_v35 = vmul.f32 %v313_v27, %v312_v26  ;;  %v389_v40 = vld [vmem:[%s388_s13] sm:$0x1]  ;;  %v390_v42 = vstv %s5493_s17 }
  0x71   :  { %s6794_s26 = scalar_lea.vmem %s6750_s2, %s5403_s14  ;;  %s5548_s11 = sld [smem:[#allocation2 + $0x302]]  ;;  %v378_v38 = vadd.f32 %v377_v29, %v371_v28  ;;  %v396_v50 = vld [vmem:[%s395_s24] sm:$0x1]  ;;  %v391_v54 = vmul.f32 %v390_v42, %v389_v40  ;;  %v397_v57 = vstv %s5503_s27 }
  0x72   :  { %v5541_v32 = vadd.f32 %v537_v25, %v536_v18  ;;  %v319_v33 = vld [vmem:[%s6794_s26] sm:$0x1]  ;;  %s5550_s5 = sld [smem:[#allocation5 + $0x302]]  ;;  %s402_s10 = scalar_lea.vmem %s6750_s2, %s5509_s28  ;;  %v315_v47 = vadd.f32 %v314_v35, %v308_v34  ;;  %v398_v7 = vmul.f32 %v397_v57, %v396_v50 }
  0x73   :  { %s5556_s30 = sld [smem:[#allocation2 + $0x303]]  ;;  %s409_s7 = scalar_lea.vmem %s6750_s2, %s5513_s9  ;;  %v321_v48 = vmul.f32 %v320_v37, %v319_v33  ;;  %v385_v53 = vadd.f32 %v384_v39, %v378_v38  ;;  %v403_v8 = vld [vmem:[%s402_s10] sm:$0x1]  ;;  %v404_v9 = vstv %s5511_s22 }
  0x74   :  { %v546_v36 = vmul.f32 %v5541_v32, %v5541_v32  ;;  %s5565_s19 = sld [smem:[#allocation5 + $0x303]]  ;;  %s6795_s0 = scalar_lea.vmem %s6750_s2, %s5411_s4  ;;  %v410_v43 = vld [vmem:[%s409_s7] sm:$0x1]  ;;  %v411_v44 = vstv %s5520_s18  ;;  %v405_v23 = vmul.f32 %v404_v9, %v403_v8 }
  0x75   :  { %v326_v41 = vld [vmem:[%s6795_s0] sm:$0x1]  ;;  %s5574_s15 = sld [smem:[#allocation2 + $0x304]]  ;;  %v412_v46 = vmul.f32 %v411_v44, %v410_v43  ;;  %s416_s12 = scalar_lea.vmem %s6750_s2, %s5532_s8  ;;  %v322_v2 = vadd.f32 %v321_v48, %v315_v47  ;;  %v392_v6 = vadd.f32 %v391_v54, %v385_v53 }
  0x76   :  { %s5576_s13 = sld [smem:[#allocation5 + $0x304]]  ;;  %v549_v45 = vsel %vm548_vm4, %v546_v36, 0.0  ;;  %s5583_s23 = sld [smem:[#allocation2 + $0x305]]  ;;  %v417_v51 = vld [vmem:[%s416_s12] sm:$0x1]  ;;  %v418_v52 = vstv %s5539_s6  ;;  %v328_v59 = vmul.f32 %v327_v49, %v326_v41 }
  0x77   :  { %550 = vadd.xlane.f32.xlu0 %v549_v45  ;;  %s5592_s18 = sld [smem:[#allocation5 + $0x305]]  ;;  %s5594_s14 = sld [smem:[#allocation2 + $0x306]]  ;;  %v419_v55 = vmul.f32 %v418_v52, %v417_v51  ;;  %v399_v24 = vadd.f32 %v398_v7, %v392_v6 }
  0x78   :  { %s423_s3 = scalar_lea.vmem %s6750_s2, %s5548_s11  ;;  %v425_v56 = vstv %s5550_s5  ;;  %s5601_s7 = sld [smem:[#allocation5 + $0x306]]  ;;  %v329_v20 = vadd.f32 %v328_v59, %v322_v2 }
  0x79   :  { %v424_v58 = vld [vmem:[%s423_s3] sm:$0x1]  ;;  %s430_s6 = scalar_lea.vmem %s6750_s2, %s5556_s30  ;;  %s5608_s16 = sld [smem:[#allocation2 + $0x307]]  ;;  %v420_v61 = vadd.f32 %v419_v55, %v412_v46  ;;  %v406_v41 = vadd.f32 %v405_v23, %v399_v24 }
  0x7a   :  { %s6796_s9 = scalar_lea.vmem %s6750_s2, %s5419_s21  ;;  %v426_v62 = vmul.f32 %v425_v56, %v424_v58  ;;  %v431_v63 = vld [vmem:[%s430_s6] sm:$0x1]  ;;  %v432_v0 = vstv %s5565_s19  ;;  %s5616_s27 = sld [smem:[#allocation5 + $0x307]] }
  0x7b   :  { %v333_v60 = vld [vmem:[%s6796_s9] sm:$0x1]  ;;  %s5618_s11 = sld [smem:[#allocation2 + $0x380]]  ;;  %v433_v4 = vmul.f32 %v432_v0, %v431_v63  ;;  %s437_s21 = scalar_lea.vmem %s6750_s2, %s5574_s15  ;;  %v520_v57 = vrot.slane %v406_v41, 7 }
  0x7c   :  { %s6797_s26 = sld [smem:[#allocation11_spill]]  ;;  %v439_v5 = vstv %s5576_s13  ;;  %v427_v10 = vadd.f32 %v426_v62, %v420_v61  ;;  %v438_v11 = vld [vmem:[%s437_s21] sm:$0x1]  ;;  %s444_s8 = scalar_lea.vmem %s6750_s2, %s5583_s23  ;;  %v335_v21 = vmul.f32 %v334_v3, %v333_v60 }
  0x7d   :  { %s5626_s12 = sld [smem:[#allocation5 + $0x380]]  ;;  %s6798_s15 = sld [smem:[#allocation12_spill]]  ;;  %v440_v12 = vmul.f32 %v439_v5, %v438_v11  ;;  %v445_v13 = vld [vmem:[%s444_s8] sm:$0x1]  ;;  %v446_v14 = vstv %s5592_s18 }
  0x7e   :  { %s5638_s25 = sld [smem:[#allocation2 + $0x381]]  ;;  %s451_s28 = scalar_lea.vmem %s6750_s2, %s5594_s14  ;;  %v434_v16 = vadd.f32 %v433_v4, %v427_v10  ;;  %v447_v17 = vmul.f32 %v446_v14, %v445_v13  ;;  %v453_v19 = vstv %s5601_s7  ;;  %v336_v36 = vadd.f32 %v335_v21, %v329_v20 }
  0x7f   :  { %s5645_s20 = sld [smem:[#allocation5 + $0x381]]  ;;  %v452_v18 = vld [vmem:[%s451_s28] sm:$0x1]  ;;  %s5653_s23 = sld [smem:[#allocation2 + $0x382]] }
  0x80   :  { %s5655_s18 = sld [smem:[#allocation5 + $0x382]]  ;;  %s458_s0 = scalar_lea.vmem %s6750_s2, %s5608_s16  ;;  %v441_v25 = vadd.f32 %v440_v12, %v434_v16  ;;  %v454_v26 = vmul.f32 %v453_v19, %v452_v18  ;;  %v460_v28 = vstv %s5616_s27 }
  0x81   :  { %s6800_s14 = sld [smem:[#allocation13_spill]]  ;;  %s5662_s9 = sld [smem:[#allocation2 + $0x383]]  ;;  %v459_v27 = vld [vmem:[%s458_s0] sm:$0x1] }
  0x82   :  { %s6799_s24 = scalar_lea.vmem %s6750_s2, %s6797_s26  ;;  %s6801_s7 = sld [smem:[#allocation14_spill]]  ;;  %v448_v33 = vadd.f32 %v447_v17, %v441_v25  ;;  %v461_v34 = vmul.f32 %v460_v28, %v459_v27 }
  0x83   :  { %v340_v15 = vld [vmem:[%s6799_s24] sm:$0x1]  ;;  %v341_v22 = vstv %s6798_s15  ;;  %s465_s21 = scalar_lea.vmem %s6750_s2, %s5618_s11  ;;  %s5669_s26 = sld [smem:[#allocation5 + $0x383]]  ;;  %v467_v30 = vstv %s5626_s12 }
  0x84   :  { %v466_v29 = vld [vmem:[%s465_s21] sm:$0x1]  ;;  %s5672_s19 = sld [smem:[#allocation2 + $0x384]]  ;;  %s472_s8 = scalar_lea.vmem %s6750_s2, %s5638_s25  ;;  %v342_v37 = vmul.f32 %v341_v22, %v340_v15  ;;  %v455_v42 = vadd.f32 %v454_v26, %v448_v33 }
  0x85   :  { %s5674_s16 = sld [smem:[#allocation5 + $0x384]]  ;;  %v468_v35 = vmul.f32 %v467_v30, %v466_v29  ;;  %s5685_s12 = sld [smem:[#allocation2 + $0x385]]  ;;  %v473_v39 = vld [vmem:[%s472_s8] sm:$0x1]  ;;  %v474_v40 = vstv %s5645_s20 }
  0x86   :  { %s5689_s15 = sld [smem:[#allocation5 + $0x385]]  ;;  %s5691_s13 = sld [smem:[#allocation2 + $0x386]]  ;;  %v475_v43 = vmul.f32 %v474_v40, %v473_v39  ;;  %v481_v44 = vstv %s5655_s18  ;;  %v462_v46 = vadd.f32 %v461_v34, %v455_v42  ;;  %v343_v54 = vadd.f32 %v342_v37, %v336_v36 }
  0x87   :  { %s6802_s17 = scalar_lea.vmem %s6750_s2, %s6800_s14  ;;  %s479_s25 = scalar_lea.vmem %s6750_s2, %s5653_s23 }
  0x88   :  { %v347_v31 = vld [vmem:[%s6802_s17] sm:$0x1]  ;;  %v348_v38 = vstv %s6801_s7  ;;  %s5698_s22 = sld [smem:[#allocation5 + $0x386]]  ;;  %s486_s24 = scalar_lea.vmem %s6750_s2, %s5662_s9  ;;  %v476_v47 = vadd.f32 %v475_v43, %v468_v35  ;;  %v523_v58 = vrot.slane %v462_v46, 6 }
  0x89   :  { %v480_v45 = vld [vmem:[%s479_s25] sm:$0x1]  ;;  %s5704_s14 = sld [smem:[#allocation2 + $0x387]]  ;;  %v488_v50 = vstv %s5669_s26  ;;  %v349_v51 = vmul.f32 %v348_v38, %v347_v31  ;;  %s6803_s1 = sld [smem:[#allocation17_spill]] }
  0x8a   :  { %v482_v48 = vmul.f32 %v481_v44, %v480_v45  ;;  %v487_v49 = vld [vmem:[%s486_s24] sm:$0x1]  ;;  %s4132_s6 = sld [smem:[#allocation5 + $0x387]]  ;;  %s493_s29 = scalar_lea.vmem %s6750_s2, %s5672_s19 }
  0x8b   :  { %v489_v52 = vmul.f32 %v488_v50, %v487_v49  ;;  %v495_v53 = vstv %s5674_s16  ;;  %v494_v56 = vld [vmem:[%s493_s29] sm:$0x1]  ;;  %s500_s7 = scalar_lea.vmem %s6750_s2, %s5685_s12  ;;  %v350_v3 = vadd.f32 %v349_v51, %v343_v54  ;;  %s6804_s23 = sld [smem:[#allocation16_spill]] }
  0x8c   :  { %v483_v55 = vadd.f32 %v482_v48, %v476_v47  ;;  %v496_v59 = vmul.f32 %v495_v53, %v494_v56  ;;  %v501_v60 = vld [vmem:[%s500_s7] sm:$0x1]  ;;  %v502_v61 = vstv %s5689_s15  ;;  %s507_s21 = scalar_lea.vmem %s6750_s2, %s5691_s13  ;;  %s6805_s11 = sld [smem:[#allocation19_spill]] }
  0x8d   :  { %v503_v63 = vmul.f32 %v502_v61, %v501_v60  ;;  %v508_v0 = vld [vmem:[%s507_s21] sm:$0x1]  ;;  %v528_v11 = vsel %vm289_vm0, %v350_v3, %v520_v57 }
  0x8e   :  { %v490_v62 = vadd.f32 %v489_v52, %v483_v55  ;;  %v509_v2 = vstv %s5698_s22  ;;  %v529_v13 = vsel %vm291_vm1, %v528_v11, %v523_v58  ;;  %s6806_s22 = sld [smem:[#allocation18_spill]] }
  0x8f   :  { %s514_s16 = scalar_lea.vmem %s6750_s2, %s5704_s14  ;;  %v510_v5 = vmul.f32 %v509_v2, %v508_v0 }
  0x90   :  { %v497_v4 = vadd.f32 %v496_v59, %v490_v62  ;;  %v515_v6 = vld [vmem:[%s514_s16] sm:$0x1]  ;;  %v516_v7 = vstv %s4132_s6 }
  0x91   :  { %v517_v9 = vmul.f32 %v516_v7, %v515_v6 }
  0x92   :  { %v504_v8 = vadd.f32 %v503_v63, %v497_v4 }
  0x94   :  { %v511_v10 = vadd.f32 %v510_v5, %v504_v8 }
  0x96   :  { %v518_v12 = vadd.f32 %v517_v9, %v511_v10 }
  0x98   :  { %v526_v14 = vrot.slane %v518_v12, 5 }
  0x9a   :  { %v5729_v15 = vsel %vm293_vm2, %v529_v13, %v526_v14 }
  0x9b   :  { %v539_v16 = vsel %vm531_vm3, %v5729_v15, 0.0 }
  0x9c   :  { %v540_v17 = vrot.slane %v539_v16, 4 }
  0x9e   :  { %v541_v18 = vadd.f32 %v540_v17, %v539_v16 }
  0xa0   :  { %v542_v19 = vrot.slane %v541_v18, 2 }
  0xa2   :  { %v543_v20 = vadd.f32 %v542_v19, %v541_v18 }
  0xa4   :  { %v544_v21 = vrot.slane %v543_v20, 1 }
  0xa6   :  { %v545_v22 = vadd.f32 %v544_v21, %v543_v20 }
  0xa8   :  { %v547_v23 = vmul.f32 %v545_v22, %v545_v22 }
  0xaa   :  { %v552_v24 = vsel %vm548_vm4, %v547_v23, 0.0 }
  0xab   :  { %553 = vadd.xlane.f32.xlu0 %v552_v24 }
 0x104   :  { %v551_v25 = vpop.xlane.xlu0 %550 }
 0x105   :  { %v555_v26 = vadd.f32 1e-12, %v551_v25 }
 0x107   :  { %4901 = vrsqrt.f32 %v555_v26 }
 0x111   :  { %v4902_v27 = vpop.eup %4901 }
 0x112   :  { %v559_v28 = vmul.f32 %v4902_v27, %v5541_v32 }
 0x114   :  { %v561_v29 = vmul.f32 %v559_v28, %v5454_v1 }
 0x116   :  { %v563_v30 = vsel %vm531_vm3, %v561_v29, 0.0 }
 0x117   :  { %564 = vadd.xlane.f32.xlu1 %v563_v30 }
 0x138   :  { %v554_v31 = vpop.xlane.xlu0 %553 }
 0x139   :  { %v556_v33 = vadd.f32 1e-12, %v554_v31 }
 0x13b   :  { %4903 = vrsqrt.f32 %v556_v33 }
 0x145   :  { %v4904_v34 = vpop.eup %4903 }
 0x146   :  { %v560_v35 = vmul.f32 %v4904_v34, %v545_v22 }
 0x148   :  { %v562_v36 = vmul.f32 %v560_v35, %v5729_v15 }
 0x14a   :  { %v566_v37 = vsel %vm531_vm3, %v562_v36, 0.0 }
 0x14b   :  { %567 = vadd.xlane.f32.xlu1 %v566_v37 }
 0x1a4   :  { %v565_v38 = vpop.xlane.xlu1 %564 }
 0x1a5   :  { %v569_v39 = vmul.f32 %v565_v38, %v5454_v1 }
 0x1a7   :  { %v571_v32 = vsel %vm531_vm3, %v569_v39, 0.0 }
 0x1a8   :  { %v572_v40 = vrot.slane %v571_v32, 4 }
 0x1aa   :  { %v573_v41 = vadd.f32 %v572_v40, %v571_v32 }
 0x1ac   :  { %v574_v42 = vrot.slane %v573_v41, 2 }
 0x1ae   :  { %v575_v43 = vadd.f32 %v574_v42, %v573_v41 }
 0x1b0   :  { %v576_v44 = vrot.slane %v575_v43, 1 }
 0x1b2   :  { %v577_v45 = vadd.f32 %v576_v44, %v575_v43 }
 0x1b4   :  { %v585_v46 = vmul.f32 %v577_v45, %v577_v45 }
 0x1b6   :  { %v587_v47 = vsel %vm548_vm4, %v585_v46, 0.0 }
 0x1b7   :  { %588 = vadd.xlane.f32.xlu0 %v587_v47 }
 0x1d8   :  { %v568_v48 = vpop.xlane.xlu1 %567 }
 0x1d9   :  { %v570_v49 = vmul.f32 %v568_v48, %v5729_v15 }
 0x1db   :  { %v578_v50 = vsel %vm531_vm3, %v570_v49, 0.0 }
 0x1dc   :  { %v579_v51 = vrot.slane %v578_v50, 4 }
 0x1de   :  { %v580_v52 = vadd.f32 %v579_v51, %v578_v50 }
 0x1e0   :  { %v581_v53 = vrot.slane %v580_v52, 2 }
 0x1e2   :  { %v582_v54 = vadd.f32 %v581_v53, %v580_v52 }
 0x1e4   :  { %v583_v55 = vrot.slane %v582_v54, 1 }
 0x1e6   :  { %v584_v56 = vadd.f32 %v583_v55, %v582_v54 }
 0x1e8   :  { %v586_v57 = vmul.f32 %v584_v56, %v584_v56 }
 0x1ea   :  { %v590_v58 = vsel %vm548_vm4, %v586_v57, 0.0 }
 0x1eb   :  { %591 = vadd.xlane.f32.xlu1 %v590_v58 }
 0x244   :  { %v589_v59 = vpop.xlane.xlu0 %588 }
 0x245   :  { %v593_v60 = vadd.f32 1e-12, %v589_v59 }
 0x247   :  { %4905 = vrsqrt.f32 %v593_v60 }
 0x251   :  { %v4906_v61 = vpop.eup %4905 }
 0x252   :  { %v597_v62 = vmul.f32 %v4906_v61, %v577_v45 }
 0x254   :  { %v599_v63 = vmul.f32 %v597_v62, %v5454_v1 }
 0x256   :  { %v601_v0 = vsel %vm531_vm3, %v599_v63, 0.0 }
 0x257   :  { %602 = vadd.xlane.f32.xlu0 %v601_v0 }
 0x278   :  { %v592_v2 = vpop.xlane.xlu1 %591 }
 0x279   :  { %v594_v3 = vadd.f32 1e-12, %v592_v2 }
 0x27b   :  { %4907 = vrsqrt.f32 %v594_v3 }
 0x285   :  { %v4908_v4 = vpop.eup %4907 }
 0x286   :  { %v598_v5 = vmul.f32 %v4908_v4, %v584_v56 }
 0x288   :  { %v600_v6 = vmul.f32 %v598_v5, %v5729_v15 }
 0x28a   :  { %v604_v7 = vsel %vm531_vm3, %v600_v6, 0.0 }
 0x28b   :  { %605 = vadd.xlane.f32.xlu1 %v604_v7 }
 0x2e4   :  { %v603_v8 = vpop.xlane.xlu0 %602 }
 0x2e5   :  { %v607_v9 = vmul.f32 %v603_v8, %v5454_v1 }
 0x2e7   :  { %v609_v10 = vsel %vm531_vm3, %v607_v9, 0.0 }
 0x2e8   :  { %v610_v11 = vrot.slane %v609_v10, 4 }
 0x2ea   :  { %v611_v12 = vadd.f32 %v610_v11, %v609_v10 }
 0x2ec   :  { %v612_v13 = vrot.slane %v611_v12, 2 }
 0x2ee   :  { %v613_v14 = vadd.f32 %v612_v13, %v611_v12 }
 0x2f0   :  { %v614_v16 = vrot.slane %v613_v14, 1 }
 0x2f2   :  { %v615_v17 = vadd.f32 %v614_v16, %v613_v14 }
 0x2f4   :  { %v623_v18 = vmul.f32 %v615_v17, %v615_v17 }
 0x2f6   :  { %v625_v19 = vsel %vm548_vm4, %v623_v18, 0.0 }
 0x2f7   :  { %626 = vadd.xlane.f32.xlu0 %v625_v19 }
 0x318   :  { %v606_v20 = vpop.xlane.xlu1 %605 }
 0x319   :  { %v608_v21 = vmul.f32 %v606_v20, %v5729_v15 }
 0x31b   :  { %v616_v22 = vsel %vm531_vm3, %v608_v21, 0.0 }
 0x31c   :  { %v617_v23 = vrot.slane %v616_v22, 4 }
 0x31e   :  { %v618_v24 = vadd.f32 %v617_v23, %v616_v22 }
 0x320   :  { %v619_v25 = vrot.slane %v618_v24, 2 }
 0x322   :  { %v620_v26 = vadd.f32 %v619_v25, %v618_v24 }
 0x324   :  { %v621_v27 = vrot.slane %v620_v26, 1 }
 0x326   :  { %v622_v28 = vadd.f32 %v621_v27, %v620_v26 }
 0x328   :  { %v624_v29 = vmul.f32 %v622_v28, %v622_v28 }
 0x32a   :  { %v628_v30 = vsel %vm548_vm4, %v624_v29, 0.0 }
 0x32b   :  { %629 = vadd.xlane.f32.xlu1 %v628_v30 }
 0x384   :  { %v627_v31 = vpop.xlane.xlu0 %626 }
 0x385   :  { %v631_v33 = vadd.f32 1e-12, %v627_v31 }
 0x387   :  { %4909 = vrsqrt.f32 %v631_v33 }
 0x391   :  { %v4910_v34 = vpop.eup %4909 }
 0x392   :  { %v635_v35 = vmul.f32 %v4910_v34, %v615_v17 }
 0x394   :  { %v637_v36 = vmul.f32 %v635_v35, %v5454_v1 }
 0x396   :  { %v639_v37 = vsel %vm531_vm3, %v637_v36, 0.0 }
 0x397   :  { %640 = vadd.xlane.f32.xlu0 %v639_v37 }
 0x3b8   :  { %v630_v38 = vpop.xlane.xlu1 %629 }
 0x3b9   :  { %v632_v39 = vadd.f32 1e-12, %v630_v38 }
 0x3bb   :  { %4911 = vrsqrt.f32 %v632_v39 }
 0x3c5   :  { %v4912_v32 = vpop.eup %4911 }
 0x3c6   :  { %v636_v40 = vmul.f32 %v4912_v32, %v622_v28 }
 0x3c8   :  { %v638_v41 = vmul.f32 %v636_v40, %v5729_v15 }
 0x3ca   :  { %v642_v42 = vsel %vm531_vm3, %v638_v41, 0.0 }
 0x3cb   :  { %643 = vadd.xlane.f32.xlu1 %v642_v42 }
 0x424   :  { %v641_v43 = vpop.xlane.xlu0 %640 }
 0x425   :  { %v645_v44 = vmul.f32 %v641_v43, %v5454_v1 }
 0x427   :  { %v647_v45 = vsel %vm531_vm3, %v645_v44, 0.0 }
 0x428   :  { %v648_v46 = vrot.slane %v647_v45, 4 }
 0x42a   :  { %v649_v47 = vadd.f32 %v648_v46, %v647_v45 }
 0x42c   :  { %v650_v48 = vrot.slane %v649_v47, 2 }
 0x42e   :  { %v651_v49 = vadd.f32 %v650_v48, %v649_v47 }
 0x430   :  { %v652_v50 = vrot.slane %v651_v49, 1 }
 0x432   :  { %v653_v51 = vadd.f32 %v652_v50, %v651_v49 }
 0x434   :  { %v661_v52 = vmul.f32 %v653_v51, %v653_v51 }
 0x436   :  { %v663_v53 = vsel %vm548_vm4, %v661_v52, 0.0 }
 0x437   :  { %664 = vadd.xlane.f32.xlu0 %v663_v53 }
 0x458   :  { %v644_v54 = vpop.xlane.xlu1 %643 }
 0x459   :  { %v646_v55 = vmul.f32 %v644_v54, %v5729_v15 }
 0x45b   :  { %v654_v56 = vsel %vm531_vm3, %v646_v55, 0.0 }
 0x45c   :  { %v655_v57 = vrot.slane %v654_v56, 4 }
 0x45e   :  { %v656_v58 = vadd.f32 %v655_v57, %v654_v56 }
 0x460   :  { %v657_v59 = vrot.slane %v656_v58, 2 }
 0x462   :  { %v658_v60 = vadd.f32 %v657_v59, %v656_v58 }
 0x464   :  { %v659_v61 = vrot.slane %v658_v60, 1 }
 0x466   :  { %v660_v62 = vadd.f32 %v659_v61, %v658_v60 }
 0x468   :  { %v662_v63 = vmul.f32 %v660_v62, %v660_v62 }
 0x46a   :  { %v666_v0 = vsel %vm548_vm4, %v662_v63, 0.0 }
 0x46b   :  { %667 = vadd.xlane.f32.xlu1 %v666_v0 }
 0x4c4   :  { %v665_v2 = vpop.xlane.xlu0 %664 }
 0x4c5   :  { %v669_v3 = vadd.f32 1e-12, %v665_v2 }
 0x4c7   :  { %4913 = vrsqrt.f32 %v669_v3 }
 0x4d1   :  { %v4914_v4 = vpop.eup %4913 }
 0x4d2   :  { %v673_v5 = vmul.f32 %v4914_v4, %v653_v51 }
 0x4d4   :  { %v675_v6 = vmul.f32 %v673_v5, %v5454_v1 }
 0x4d6   :  { %v677_v7 = vsel %vm531_vm3, %v675_v6, 0.0 }
 0x4d7   :  { %678 = vadd.xlane.f32.xlu0 %v677_v7 }
 0x4f8   :  { %v668_v8 = vpop.xlane.xlu1 %667 }
 0x4f9   :  { %v670_v9 = vadd.f32 1e-12, %v668_v8 }
 0x4fb   :  { %4915 = vrsqrt.f32 %v670_v9 }
 0x505   :  { %v4916_v10 = vpop.eup %4915 }
 0x506   :  { %v674_v11 = vmul.f32 %v4916_v10, %v660_v62 }
 0x508   :  { %v676_v12 = vmul.f32 %v674_v11, %v5729_v15 }
 0x50a   :  { %v680_v13 = vsel %vm531_vm3, %v676_v12, 0.0 }
 0x50b   :  { %681 = vadd.xlane.f32.xlu1 %v680_v13 }
 0x564   :  { %v679_v14 = vpop.xlane.xlu0 %678 }
 0x565   :  { %v683_v16 = vmul.f32 %v679_v14, %v5454_v1 }
 0x567   :  { %v685_v17 = vsel %vm531_vm3, %v683_v16, 0.0 }
 0x568   :  { %v686_v18 = vrot.slane %v685_v17, 4 }
 0x56a   :  { %v687_v19 = vadd.f32 %v686_v18, %v685_v17 }
 0x56c   :  { %v688_v20 = vrot.slane %v687_v19, 2 }
 0x56e   :  { %v689_v21 = vadd.f32 %v688_v20, %v687_v19 }
 0x570   :  { %v690_v22 = vrot.slane %v689_v21, 1 }
 0x572   :  { %v691_v23 = vadd.f32 %v690_v22, %v689_v21 }
 0x574   :  { %v699_v24 = vmul.f32 %v691_v23, %v691_v23 }
 0x576   :  { %v701_v25 = vsel %vm548_vm4, %v699_v24, 0.0 }
 0x577   :  { %702 = vadd.xlane.f32.xlu0 %v701_v25 }
 0x598   :  { %v682_v26 = vpop.xlane.xlu1 %681 }
 0x599   :  { %v684_v27 = vmul.f32 %v682_v26, %v5729_v15 }
 0x59b   :  { %v692_v28 = vsel %vm531_vm3, %v684_v27, 0.0 }
 0x59c   :  { %v693_v29 = vrot.slane %v692_v28, 4 }
 0x59e   :  { %v694_v30 = vadd.f32 %v693_v29, %v692_v28 }
 0x5a0   :  { %v695_v31 = vrot.slane %v694_v30, 2 }
 0x5a2   :  { %v696_v33 = vadd.f32 %v695_v31, %v694_v30 }
 0x5a4   :  { %v697_v34 = vrot.slane %v696_v33, 1 }
 0x5a6   :  { %v698_v35 = vadd.f32 %v697_v34, %v696_v33 }
 0x5a8   :  { %v700_v36 = vmul.f32 %v698_v35, %v698_v35 }
 0x5aa   :  { %v704_v37 = vsel %vm548_vm4, %v700_v36, 0.0 }
 0x5ab   :  { %705 = vadd.xlane.f32.xlu1 %v704_v37 }
 0x604   :  { %v703_v38 = vpop.xlane.xlu0 %702 }
 0x605   :  { %v707_v39 = vadd.f32 1e-12, %v703_v38 }
 0x607   :  { %4917 = vrsqrt.f32 %v707_v39 }
 0x611   :  { %v4918_v32 = vpop.eup %4917 }
 0x612   :  { %v711_v40 = vmul.f32 %v4918_v32, %v691_v23 }
 0x614   :  { %v713_v41 = vmul.f32 %v711_v40, %v5454_v1 }
 0x616   :  { %v715_v42 = vsel %vm531_vm3, %v713_v41, 0.0 }
 0x617   :  { %716 = vadd.xlane.f32.xlu0 %v715_v42 }
 0x638   :  { %v706_v43 = vpop.xlane.xlu1 %705 }
 0x639   :  { %v708_v44 = vadd.f32 1e-12, %v706_v43 }
 0x63b   :  { %4919 = vrsqrt.f32 %v708_v44 }
 0x645   :  { %v4920_v45 = vpop.eup %4919 }
 0x646   :  { %v712_v46 = vmul.f32 %v4920_v45, %v698_v35 }
 0x648   :  { %v714_v47 = vmul.f32 %v712_v46, %v5729_v15 }
 0x64a   :  { %v718_v48 = vsel %vm531_vm3, %v714_v47, 0.0 }
 0x64b   :  { %719 = vadd.xlane.f32.xlu1 %v718_v48 }
 0x6a4   :  { %v717_v49 = vpop.xlane.xlu0 %716 }
 0x6a5   :  { %v721_v50 = vmul.f32 %v717_v49, %v5454_v1 }
 0x6a7   :  { %v723_v51 = vsel %vm531_vm3, %v721_v50, 0.0 }
 0x6a8   :  { %v724_v52 = vrot.slane %v723_v51, 4 }
 0x6aa   :  { %v725_v53 = vadd.f32 %v724_v52, %v723_v51 }
 0x6ac   :  { %v726_v54 = vrot.slane %v725_v53, 2 }
 0x6ae   :  { %v727_v55 = vadd.f32 %v726_v54, %v725_v53 }
 0x6b0   :  { %v728_v56 = vrot.slane %v727_v55, 1 }
 0x6b2   :  { %v729_v57 = vadd.f32 %v728_v56, %v727_v55 }
 0x6b4   :  { %v737_v58 = vmul.f32 %v729_v57, %v729_v57 }
 0x6b6   :  { %v739_v59 = vsel %vm548_vm4, %v737_v58, 0.0 }
 0x6b7   :  { %740 = vadd.xlane.f32.xlu0 %v739_v59 }
 0x6d8   :  { %v720_v60 = vpop.xlane.xlu1 %719 }
 0x6d9   :  { %v722_v61 = vmul.f32 %v720_v60, %v5729_v15 }
 0x6db   :  { %v730_v62 = vsel %vm531_vm3, %v722_v61, 0.0 }
 0x6dc   :  { %v731_v63 = vrot.slane %v730_v62, 4 }
 0x6de   :  { %v732_v0 = vadd.f32 %v731_v63, %v730_v62 }
 0x6e0   :  { %v733_v2 = vrot.slane %v732_v0, 2 }
 0x6e2   :  { %v734_v3 = vadd.f32 %v733_v2, %v732_v0 }
 0x6e4   :  { %v735_v4 = vrot.slane %v734_v3, 1 }
 0x6e6   :  { %v736_v5 = vadd.f32 %v735_v4, %v734_v3 }
 0x6e8   :  { %v738_v6 = vmul.f32 %v736_v5, %v736_v5 }
 0x6ea   :  { %v742_v7 = vsel %vm548_vm4, %v738_v6, 0.0 }
 0x6eb   :  { %743 = vadd.xlane.f32.xlu1 %v742_v7 }
 0x744   :  { %v741_v8 = vpop.xlane.xlu0 %740 }
 0x745   :  { %v745_v9 = vadd.f32 1e-12, %v741_v8 }
 0x747   :  { %4921 = vrsqrt.f32 %v745_v9 }
 0x751   :  { %v4922_v10 = vpop.eup %4921 }
 0x752   :  { %v749_v11 = vmul.f32 %v4922_v10, %v729_v57 }
 0x754   :  { %v751_v12 = vmul.f32 %v749_v11, %v5454_v1 }
 0x756   :  { %v753_v13 = vsel %vm531_vm3, %v751_v12, 0.0 }
 0x757   :  { %754 = vadd.xlane.f32.xlu0 %v753_v13 }
 0x778   :  { %v744_v14 = vpop.xlane.xlu1 %743 }
 0x779   :  { %v746_v16 = vadd.f32 1e-12, %v744_v14 }
 0x77b   :  { %4923 = vrsqrt.f32 %v746_v16 }
 0x785   :  { %v4924_v17 = vpop.eup %4923 }
 0x786   :  { %v750_v18 = vmul.f32 %v4924_v17, %v736_v5 }
 0x788   :  { %v752_v19 = vmul.f32 %v750_v18, %v5729_v15 }
 0x78a   :  { %v756_v20 = vsel %vm531_vm3, %v752_v19, 0.0 }
 0x78b   :  { %757 = vadd.xlane.f32.xlu1 %v756_v20 }
 0x7e4   :  { %v755_v21 = vpop.xlane.xlu0 %754 }
 0x7e5   :  { %v759_v22 = vmul.f32 %v755_v21, %v5454_v1 }
 0x7e7   :  { %v761_v23 = vsel %vm531_vm3, %v759_v22, 0.0 }
 0x7e8   :  { %v762_v24 = vrot.slane %v761_v23, 4 }
 0x7ea   :  { %v763_v25 = vadd.f32 %v762_v24, %v761_v23 }
 0x7ec   :  { %v764_v26 = vrot.slane %v763_v25, 2 }
 0x7ee   :  { %v765_v27 = vadd.f32 %v764_v26, %v763_v25 }
 0x7f0   :  { %v766_v28 = vrot.slane %v765_v27, 1 }
 0x7f2   :  { %v767_v29 = vadd.f32 %v766_v28, %v765_v27  ;;  %v4637_v27 = vld [vmem:[%s6803_s1 + $0x4] ss:$76 sps:$4 sm:$0xff]   ;;  %v4640_v28 = vld [vmem:[%s6803_s1 + $0xc] ss:$76 sps:$4 sm:$0xff]  }
 0x7f3   :  { %1119 = vmatprep.subr.bf16.mxu0 %v4637_v27  ;;  %1160 = vmatprep.subr.bf16.mxu1 %v4640_v28  ;;  %v4716_v27 = vld [vmem:[%s6804_s23 + $0xb4] ss:$76 sps:$4 sm:$0xff]  }
 0x7f4   :  { %v775_v30 = vmul.f32 %v767_v29, %v767_v29  ;;  %v4711_v28 = vld [vmem:[%s6804_s23 + $0xa8] ss:$76 sps:$4 sm:$0xff]  }
 0x7f6   :  { %v777_v31 = vsel %vm548_vm4, %v775_v30, 0.0  ;;  %v4642_v30 = vld [vmem:[%s6803_s1 + $0x8] ss:$76 sps:$4 sm:$0xff]  }
 0x7f7   :  { %778 = vadd.xlane.f32.xlu0 %v777_v31  ;;  %1161 = vmatpush1.bf16.msra.mxu1 %v4642_v30  ;;  %v4643_v31 = vld [vmem:[%s6803_s1 + $0x9c] ss:$76 sps:$4 sm:$0xff]   ;;  %v4719_v30 = vld [vmem:[%s6804_s23 + $0x24] ss:$76 sps:$4 sm:$0xff]  }
 0x818   :  { %v758_v33 = vpop.xlane.xlu1 %757 }
 0x819   :  { %v760_v34 = vmul.f32 %v758_v33, %v5729_v15  ;;  %v4646_v33 = vld [vmem:[%s6803_s1 + $0xa4] ss:$76 sps:$4 sm:$0xff]  }
 0x81a   :  { %1162 = vmatprep.subr.bf16.mxu1 %v4646_v33  ;;  %v4717_v33 = vld [vmem:[%s6804_s23 + $0x20] ss:$76 sps:$4 sm:$0xff]  }
 0x81b   :  { %v768_v35 = vsel %vm531_vm3, %v760_v34, 0.0  ;;  %v4645_v34 = vld [vmem:[%s6803_s1 + $0x98] ss:$76 sps:$4 sm:$0xff]  }
 0x81c   :  { %v769_v36 = vrot.slane %v768_v35, 4 }
 0x81e   :  { %v770_v37 = vadd.f32 %v769_v36, %v768_v35  ;;  %v4648_v35 = vld [vmem:[%s6803_s1 + $0xa0] ss:$76 sps:$4 sm:$0xff]  }
 0x81f   :  { %1163 = vmatpush1.bf16.msra.mxu1 %v4648_v35  ;;  %v4651_v36 = vld [vmem:[%s6803_s1 + $0x14] ss:$76 sps:$4 sm:$0xff]   ;;  %v4725_v35 = vld [vmem:[%s6804_s23 + $0xbc] ss:$76 sps:$4 sm:$0xff]  }
 0x820   :  { %v771_v38 = vrot.slane %v770_v37, 2 }
 0x822   :  { %v772_v39 = vadd.f32 %v771_v38, %v770_v37  ;;  %v5029_v37 = vmov 0   ;;  %v4654_v38 = vld [vmem:[%s6803_s1 + $0x1c] ss:$76 sps:$4 sm:$0xff]  }
 0x823   :  { %1151 = vmatprep.mubr.bf16.mxu0 %v5029_v37  ;;  %1192 = vmatprep.mubr.bf16.mxu1 %v5029_v37 }
 0x824   :  { %v773_v32 = vrot.slane %v772_v39, 1  ;;  %1242 = vmatprep.subr.bf16.mxu1 %v4654_v38  ;;  %v4723_v38 = vld [vmem:[%s6804_s23 + $0xb8] ss:$76 sps:$4 sm:$0xff]  }
 0x826   :  { %v774_v40 = vadd.f32 %v773_v32, %v772_v39 }
 0x828   :  { %v776_v41 = vmul.f32 %v774_v40, %v774_v40 }
 0x82a   :  { %v780_v42 = vsel %vm548_vm4, %v776_v41, 0.0 }
 0x82b   :  { %781 = vadd.xlane.f32.xlu1 %v780_v42 }
 0x884   :  { %v779_v43 = vpop.xlane.xlu0 %778 }
 0x885   :  { %v783_v44 = vadd.f32 1e-12, %v779_v43 }
 0x887   :  { %4925 = vrsqrt.f32 %v783_v44 }
 0x891   :  { %v4926_v45 = vpop.eup %4925 }
 0x892   :  { %v787_v46 = vmul.f32 %v4926_v45, %v767_v29  ;;  %v4639_v29 = vld [vmem:[%s6803_s1] ss:$76 sps:$4 sm:$0xff]  }
 0x893   :  { %1120 = vmatpush1.bf16.msra.mxu0 %v4639_v29  ;;  %v4714_v29 = vld [vmem:[%s6804_s23 + $0xb0] ss:$76 sps:$4 sm:$0xff]  }
 0x894   :  { %v789_v47 = vmul.f32 %v787_v46, %v5454_v1  ;;  %1121 = vmatprep.subr.bf16.mxu0 %v4643_v31  ;;  %v4649_v46 = vld [vmem:[%s6803_s1 + $0x10] ss:$76 sps:$4 sm:$0xff]   ;;  %v4722_v31 = vld [vmem:[%s6804_s23 + $0x2c] ss:$76 sps:$4 sm:$0xff]  }
 0x896   :  { %v791_v48 = vsel %vm531_vm3, %v789_v47, 0.0  ;;  %v4652_v47 = vld [vmem:[%s6803_s1 + $0x18] ss:$76 sps:$4 sm:$0xff]  }
 0x897   :  { %792 = vadd.xlane.f32.xlu0 %v791_v48  ;;  %1122 = vmatpush1.bf16.msra.mxu0 %v4645_v34  ;;  %v4720_v34 = vld [vmem:[%s6804_s23 + $0x28] ss:$76 sps:$4 sm:$0xff]  }
 0x898   :  { %1201 = vmatprep.subr.bf16.mxu0 %v4651_v36  ;;  %v4728_v36 = vld [vmem:[%s6804_s23 + $0xc4] ss:$76 sps:$4 sm:$0xff]  }
 0x8b8   :  { %v782_v49 = vpop.xlane.xlu1 %781 }
 0x8b9   :  { %v784_v50 = vadd.f32 1e-12, %v782_v49  ;;  %v4655_v49 = vld [vmem:[%s6803_s1 + $0xa8] ss:$76 sps:$4 sm:$0xff]  }
 0x8bb   :  { %4927 = vrsqrt.f32 %v784_v50  ;;  %v4658_v50 = vld [vmem:[%s6803_s1 + $0xb0] ss:$76 sps:$4 sm:$0xff]  }
 0x8c5   :  { %v4928_v51 = vpop.eup %4927 }
 0x8c6   :  { %v788_v52 = vmul.f32 %v4928_v51, %v774_v40  ;;  %v4663_v51 = vld [vmem:[%s6803_s1 + $0x24] ss:$76 sps:$4 sm:$0xff]  }
 0x8c8   :  { %v790_v53 = vmul.f32 %v788_v52, %v5729_v15  ;;  %v4666_v52 = vld [vmem:[%s6803_s1 + $0x2c] ss:$76 sps:$4 sm:$0xff]  }
 0x8ca   :  { %v794_v54 = vsel %vm531_vm3, %v790_v53, 0.0  ;;  %v4661_v53 = vld [vmem:[%s6803_s1 + $0x20] ss:$76 sps:$4 sm:$0xff]  }
 0x8cb   :  { %795 = vadd.xlane.f32.xlu1 %v794_v54  ;;  %v4664_v54 = vld [vmem:[%s6803_s1 + $0x28] ss:$76 sps:$4 sm:$0xff]  }
 0x924   :  { %v793_v55 = vpop.xlane.xlu0 %792 }
 0x925   :  { %v797_v56 = vmul.f32 %v793_v55, %v5454_v1  ;;  %v4669_v55 = vld [vmem:[%s6803_s1 + $0xbc] ss:$76 sps:$4 sm:$0xff]  }
 0x927   :  { %v799_v57 = vsel %vm531_vm3, %v797_v56, 0.0  ;;  %v4672_v56 = vld [vmem:[%s6803_s1 + $0xc4] ss:$76 sps:$4 sm:$0xff]  }
 0x928   :  { %v800_v58 = vrot.slane %v799_v57, 4 }
 0x92a   :  { %v801_v59 = vadd.f32 %v800_v58, %v799_v57  ;;  %v4667_v57 = vld [vmem:[%s6803_s1 + $0xb8] ss:$76 sps:$4 sm:$0xff]   ;;  %v4670_v58 = vld [vmem:[%s6803_s1 + $0xc0] ss:$76 sps:$4 sm:$0xff]  }
 0x92c   :  { %v802_v60 = vrot.slane %v801_v59, 2 }
 0x92e   :  { %v803_v61 = vadd.f32 %v802_v60, %v801_v59  ;;  %v4675_v59 = vld [vmem:[%s6803_s1 + $0x34] ss:$76 sps:$4 sm:$0xff]   ;;  %v4678_v60 = vld [vmem:[%s6803_s1 + $0x3c] ss:$76 sps:$4 sm:$0xff]  }
 0x930   :  { %v804_v62 = vrot.slane %v803_v61, 1 }
 0x932   :  { %v805_v63 = vadd.f32 %v804_v62, %v803_v61  ;;  %v4673_v61 = vld [vmem:[%s6803_s1 + $0x30] ss:$76 sps:$4 sm:$0xff]   ;;  %v4676_v62 = vld [vmem:[%s6803_s1 + $0x38] ss:$76 sps:$4 sm:$0xff]  }
 0x934   :  { %v813_v0 = vmul.f32 %v805_v63, %v805_v63 }
 0x936   :  { %v815_v2 = vsel %vm548_vm4, %v813_v0, 0.0  ;;  %v4684_v0 = vld [vmem:[%s6803_s1 + $0xd4] ss:$76 sps:$4 sm:$0xff]  }
 0x937   :  { %816 = vadd.xlane.f32.xlu0 %v815_v2  ;;  %v4679_v2 = vld [vmem:[%s6803_s1 + $0xc8] ss:$76 sps:$4 sm:$0xff]  }
 0x958   :  { %v796_v3 = vpop.xlane.xlu1 %795 }
 0x959   :  { %v798_v4 = vmul.f32 %v796_v3, %v5729_v15  ;;  %v4682_v3 = vld [vmem:[%s6803_s1 + $0xd0] ss:$76 sps:$4 sm:$0xff]  }
 0x95b   :  { %v806_v5 = vsel %vm531_vm3, %v798_v4, 0.0  ;;  %v4687_v4 = vld [vmem:[%s6803_s1 + $0x44] ss:$76 sps:$4 sm:$0xff]  }
 0x95c   :  { %v807_v6 = vrot.slane %v806_v5, 4 }
 0x95e   :  { %v808_v7 = vadd.f32 %v807_v6, %v806_v5  ;;  %v4685_v5 = vld [vmem:[%s6803_s1 + $0x40] ss:$76 sps:$4 sm:$0xff]   ;;  %v4688_v6 = vld [vmem:[%s6803_s1 + $0x48] ss:$76 sps:$4 sm:$0xff]  }
 0x960   :  { %v809_v8 = vrot.slane %v808_v7, 2 }
 0x962   :  { %v810_v9 = vadd.f32 %v809_v8, %v808_v7  ;;  %v5030_v7 = vmov 0.0   ;;  %v4691_v8 = vld [vmem:[%s6803_s1 + $0xdc] ss:$76 sps:$4 sm:$0xff]  }
 0x964   :  { %v811_v10 = vrot.slane %v810_v9, 1 }
 0x966   :  { %v812_v11 = vadd.f32 %v811_v10, %v810_v9  ;;  %v4689_v9 = vld [vmem:[%s6803_s1 + $0xd8] ss:$76 sps:$4 sm:$0xff]   ;;  %v4692_v10 = vld [vmem:[%s6803_s1 + $0xe0] ss:$76 sps:$4 sm:$0xff]  }
 0x968   :  { %v814_v12 = vmul.f32 %v812_v11, %v812_v11 }
 0x96a   :  { %v818_v13 = vsel %vm548_vm4, %v814_v12, 0.0  ;;  %v4698_v12 = vld [vmem:[%s6804_s23 + $0xc] ss:$76 sps:$4 sm:$0xff]  }
 0x96b   :  { %819 = vadd.xlane.f32.xlu1 %v818_v13  ;;  %v4693_v13 = vld [vmem:[%s6804_s23] ss:$76 sps:$4 sm:$0xff]  }
 0x9c4   :  { %v817_v14 = vpop.xlane.xlu0 %816 }
 0x9c5   :  { %v821_v16 = vadd.f32 1e-12, %v817_v14  ;;  %v4696_v14 = vld [vmem:[%s6804_s23 + $0x8] ss:$76 sps:$4 sm:$0xff]  }
 0x9c7   :  { %4929 = vrsqrt.f32 %v821_v16  ;;  %v4701_v16 = vld [vmem:[%s6804_s23 + $0x9c] ss:$76 sps:$4 sm:$0xff]  }
 0x9d1   :  { %v4930_v17 = vpop.eup %4929 }
 0x9d2   :  { %v825_v18 = vmul.f32 %v4930_v17, %v805_v63  ;;  %v4681_v63 = vld [vmem:[%s6803_s1 + $0xcc] ss:$76 sps:$4 sm:$0xff]   ;;  %v4704_v17 = vld [vmem:[%s6804_s23 + $0xa4] ss:$76 sps:$4 sm:$0xff]  }
 0x9d4   :  { %v827_v19 = vmul.f32 %v825_v18, %v5454_v1 }
 0x9d6   :  { %v829_v20 = vsel %vm531_vm3, %v827_v19, 0.0  ;;  %v4702_v19 = vld [vmem:[%s6804_s23 + $0xa0] ss:$76 sps:$4 sm:$0xff]  }
 0x9d7   :  { %830 = vadd.xlane.f32.xlu0 %v829_v20 }
 0x9f8   :  { %v820_v21 = vpop.xlane.xlu1 %819 }
 0x9f9   :  { %v822_v22 = vadd.f32 1e-12, %v820_v21  ;;  %v4707_v21 = vld [vmem:[%s6804_s23 + $0x14] ss:$76 sps:$4 sm:$0xff]  }
 0x9fb   :  { %4931 = vrsqrt.f32 %v822_v22  ;;  %v4710_v22 = vld [vmem:[%s6804_s23 + $0x1c] ss:$76 sps:$4 sm:$0xff]  }
 0xa05   :  { %v4932_v23 = vpop.eup %4931 }
 0xa06   :  { %v826_v24 = vmul.f32 %v4932_v23, %v812_v11  ;;  %v4695_v11 = vld [vmem:[%s6804_s23 + $0x4] ss:$76 sps:$4 sm:$0xff]  }
 0xa07   :  { %v4705_v23 = vld [vmem:[%s6804_s23 + $0x10] ss:$76 sps:$4 sm:$0xff]  }
 0xa08   :  { %v828_v25 = vmul.f32 %v826_v24, %v5729_v15 }
 0xa0a   :  { %v832_v26 = vsel %vm531_vm3, %v828_v25, 0.0 }
 0xa0b   :  { %833 = vadd.xlane.f32.xlu1 %v832_v26  ;;  %v4713_v26 = vld [vmem:[%s6804_s23 + $0xac] ss:$76 sps:$4 sm:$0xff]  }
 0xa64   :  { %v831_v39 = vpop.xlane.xlu0 %830 }
 0xa65   :  { %v835_v32 = vmul.f32 %v831_v39, %v825_v18  ;;  %v4699_v18 = vld [vmem:[%s6804_s23 + $0x98] ss:$76 sps:$4 sm:$0xff]   ;;  %v4726_v39 = vld [vmem:[%s6804_s23 + $0xc0] ss:$76 sps:$4 sm:$0xff]  }
 0xa67   :  { %v5842_v42 = vsub.f32 %v5454_v1, %v835_v32  ;;  %v4657_v1 = vld [vmem:[%s6803_s1 + $0xac] ss:$76 sps:$4 sm:$0xff]   ;;  %v4731_v32 = vld [vmem:[%s6804_s23 + $0x34] ss:$76 sps:$4 sm:$0xff]  }
 0xa98   :  { %v834_v40 = vpop.xlane.xlu1 %833 }
 0xa99   :  { %v836_v41 = vmul.f32 %v834_v40, %v826_v24  ;;  %v4708_v24 = vld [vmem:[%s6804_s23 + $0x18] ss:$76 sps:$4 sm:$0xff]   ;;  %v4734_v40 = vld [vmem:[%s6804_s23 + $0x3c] ss:$76 sps:$4 sm:$0xff]  }
 0xa9b   :  { %v5845_v43 = vsub.f32 %v5729_v15, %v836_v41  ;;  %v4660_v15 = vld [vmem:[%s6803_s1 + $0xb4] ss:$76 sps:$4 sm:$0xff]   ;;  %v4729_v41 = vld [vmem:[%s6804_s23 + $0x30] ss:$76 sps:$4 sm:$0xff]  }
 0xa9d   :  { %v841_v44 = vsub.f32 %v5842_v42, %v5845_v43  ;;  %v839_v20 = vmul.f32 %v5845_v43, %v5842_v42  ;;  %v4732_v42 = vld [vmem:[%s6804_s23 + $0x38] ss:$76 sps:$4 sm:$0xff]  }
 0xa9e   :  { %v4737_v43 = vld [vmem:[%s6804_s23 + $0xcc] ss:$76 sps:$4 sm:$0xff]  }
 0xa9f   :  { %v842_v45 = vand.u32 2147483647, %v841_v44  ;;  %v6006_v25 = vpack.c.bf16 %v839_v20, %v839_v20  ;;  %v4740_v44 = vld [vmem:[%s6804_s23 + $0xd4] ss:$76 sps:$4 sm:$0xff]   ;;  %v4780_v20 = vld [vmem:[%s6805_s11 + $0xb8] sm:$0xff]  }
 0xaa1   :  { %v5855_v48 = vpack.c.bf16 %v842_v45, %v842_v45  ;;  %v4735_v45 = vld [vmem:[%s6804_s23 + $0xc8] ss:$76 sps:$4 sm:$0xff]  }
 0xaa3   :  { %4171 = vmatmul.mubr.msk.bf16.vlgmr.msra.gmra.mrb[0].mxu0 %vm548_vm4, %v5855_v48  ;;  %4172 = vmatmul.mubr.msk.bf16.vlgmr.msra.gmra.mrb[0].mxu1 %vm548_vm4, %v5855_v48 }
 0xaa4   :  { %1202 = vmatpush1.bf16.msra.mxu0 %v4649_v46  ;;  %1243 = vmatpush1.bf16.msra.mxu1 %v4652_v47  ;;  %v4738_v46 = vld [vmem:[%s6804_s23 + $0xd0] ss:$76 sps:$4 sm:$0xff]  }
 0xaa5   :  { %1203 = vmatprep.subr.bf16.mxu0 %v4657_v1  ;;  %1244 = vmatprep.subr.bf16.mxu1 %v4660_v15  ;;  %v4743_v47 = vld [vmem:[%s6804_s23 + $0x44] ss:$76 sps:$4 sm:$0xff]   ;;  %v4744_v1 = vld [vmem:[%s6804_s23 + $0x48] ss:$76 sps:$4 sm:$0xff]  }
 0xaa6   :  { %1233 = vmatprep.mubr.bf16.mxu0 %v5029_v37  ;;  %1274 = vmatprep.mubr.bf16.mxu1 %v5029_v37  ;;  %v4747_v15 = vld [vmem:[%s6804_s23 + $0xdc] ss:$76 sps:$4 sm:$0xff]  }
 0xaa8   :  { %1204 = vmatpush1.bf16.msra.mxu0 %v4655_v49  ;;  %1245 = vmatpush1.bf16.msra.mxu1 %v4658_v50  ;;  %v4745_v49 = vld [vmem:[%s6804_s23 + $0xd8] ss:$76 sps:$4 sm:$0xff]   ;;  %v4748_v50 = vld [vmem:[%s6804_s23 + $0xe0] ss:$76 sps:$4 sm:$0xff]  }
 0xaa9   :  { %1283 = vmatprep.subr.bf16.mxu0 %v4663_v51  ;;  %1324 = vmatprep.subr.bf16.mxu1 %v4666_v52  ;;  %v4749_v51 = vld [vmem:[%s6805_s11 + $0x40] sm:$0xff]  }
 0xaaa   :  { %v4750_v52 = vld [vmem:[%s6805_s11 + $0xc0] sm:$0xff]  }
 0xaab   :  { %4173 = vmatmul.mubr.msk.bf16.vlgmr.msra.gmra.mrb[4].mxu0 %vm548_vm4, %v5855_v48  ;;  %4174 = vmatmul.mubr.msk.bf16.vlgmr.msra.gmra.mrb[4].mxu1 %vm548_vm4, %v5855_v48 }
 0xaac   :  { %1284 = vmatpush1.bf16.msra.mxu0 %v4661_v53  ;;  %1325 = vmatpush1.bf16.msra.mxu1 %v4664_v54  ;;  %v4752_v53 = vld [vmem:[%s6805_s11 + $0x80] sm:$0xff]   ;;  %v4753_v54 = vld [vmem:[%s6805_s11 + $0x48] sm:$0xff]  }
 0xaad   :  { %1285 = vmatprep.subr.bf16.mxu0 %v4669_v55  ;;  %1326 = vmatprep.subr.bf16.mxu1 %v4672_v56  ;;  %v4754_v55 = vld [vmem:[%s6805_s11 + $0xc8] sm:$0xff]  }
 0xaae   :  { %1315 = vmatprep.mubr.bf16.mxu0 %v5029_v37  ;;  %1356 = vmatprep.mubr.bf16.mxu1 %v5029_v37  ;;  %v4755_v56 = vld [vmem:[%s6805_s11 + $0x8] sm:$0xff]  }
 0xab0   :  { %1286 = vmatpush1.bf16.msra.mxu0 %v4667_v57  ;;  %1327 = vmatpush1.bf16.msra.mxu1 %v4670_v58  ;;  %v4756_v57 = vld [vmem:[%s6805_s11 + $0x88] sm:$0xff]   ;;  %v4757_v58 = vld [vmem:[%s6805_s11 + $0x50] sm:$0xff]  }
 0xab1   :  { %1365 = vmatprep.subr.bf16.mxu0 %v4675_v59  ;;  %1406 = vmatprep.subr.bf16.mxu1 %v4678_v60  ;;  %v4758_v59 = vld [vmem:[%s6805_s11 + $0xd0] sm:$0xff]  }
 0xab2   :  { %v4759_v60 = vld [vmem:[%s6805_s11 + $0x10] sm:$0xff]  }
 0xab3   :  { %4175 = vmatmul.mubr.msk.bf16.vlgmr.msra.gmra.mrb[8].mxu0 %vm548_vm4, %v5855_v48  ;;  %4176 = vmatmul.mubr.msk.bf16.vlgmr.msra.gmra.mrb[8].mxu1 %vm548_vm4, %v5855_v48 }
 0xab4   :  { %1366 = vmatpush1.bf16.msra.mxu0 %v4673_v61  ;;  %1407 = vmatpush1.bf16.msra.mxu1 %v4676_v62  ;;  %v4760_v61 = vld [vmem:[%s6805_s11 + $0x90] sm:$0xff]   ;;  %v4761_v62 = vld [vmem:[%s6805_s11 + $0x58] sm:$0xff]  }
 0xab5   :  { %1367 = vmatprep.subr.bf16.mxu0 %v4681_v63  ;;  %1408 = vmatprep.subr.bf16.mxu1 %v4684_v0  ;;  %v4762_v63 = vld [vmem:[%s6805_s11 + $0xd8] sm:$0xff]  }
 0xab6   :  { %1397 = vmatprep.mubr.bf16.mxu0 %v5029_v37  ;;  %1438 = vmatprep.mubr.bf16.mxu1 %v5029_v37  ;;  %v4763_v0 = vld [vmem:[%s6805_s11 + $0x18] sm:$0xff]  }
 0xab8   :  { %1368 = vmatpush1.bf16.msra.mxu0 %v4679_v2  ;;  %1409 = vmatpush1.bf16.msra.mxu1 %v4682_v3  ;;  %v4764_v2 = vld [vmem:[%s6805_s11 + $0x98] sm:$0xff]   ;;  %v4765_v3 = vld [vmem:[%s6805_s11 + $0x60] sm:$0xff]  }
 0xab9   :  { %1447 = vmatprep.subr.bf16.mxu0 %v4687_v4  ;;  %4595 = vmatprep.subr.bf16.mxu1 %v5030_v7  ;;  %v4766_v4 = vld [vmem:[%s6805_s11 + $0xe0] sm:$0xff]  }
 0xabb   :  { %4177 = vmatmul.mubr.msk.bf16.vlgmr.msra.gmra.mrb[12].mxu0 %vm548_vm4, %v5855_v48  ;;  %4178 = vmatmul.mubr.msk.bf16.vlgmr.msra.gmra.mrb[12].mxu1 %vm548_vm4, %v5855_v48 }
 0xabc   :  { %1448 = vmatpush1.bf16.msra.mxu0 %v4685_v5  ;;  %4596 = vmatpush3.bf16.msra.mxu1 %v4688_v6  ;;  %v4767_v5 = vld [vmem:[%s6805_s11 + $0x20] sm:$0xff]  }
 0xabd   :  { %1449 = vmatprep.subr.bf16.mxu0 %v4691_v8  ;;  %4597 = vmatprep.subr.bf16.mxu1 %v5030_v7  ;;  %v4768_v6 = vld [vmem:[%s6805_s11 + $0xa0] sm:$0xff]   ;;  %v4769_v8 = vld [vmem:[%s6805_s11 + $0x68] sm:$0xff]  }
 0xabe   :  { %1479 = vmatprep.mubr.bf16.mxu0 %v5029_v37  ;;  %4599 = vmatprep.mubr.msk.bf16.mxu1 %vm5031_vm5, %v5030_v7 }
 0xac0   :  { %1450 = vmatpush1.bf16.msra.mxu0 %v4689_v9  ;;  %4598 = vmatpush3.bf16.msra.mxu1 %v4692_v10  ;;  %v4770_v9 = vld [vmem:[%s6805_s11 + $0xe8] sm:$0xff]  }
 0xac1   :  { %1723 = vmatprep.subr.bf16.mxu0 %v4695_v11  ;;  %1764 = vmatprep.subr.bf16.mxu1 %v4698_v12  ;;  %v4771_v10 = vld [vmem:[%s6805_s11 + $0x28] sm:$0xff]   ;;  %v4773_v12 = vld [vmem:[%s6805_s11 + $0x70] sm:$0xff]  }
 0xac2   :  { %v4772_v11 = vld [vmem:[%s6805_s11 + $0xa8] sm:$0xff]  }
 0xac3   :  { %4179 = vmatmul.mubr.msk.bf16.vlgmr.msra.gmra.mrb[16].mxu0 %vm548_vm4, %v5855_v48  ;;  %4600 = vmatmul.mubr.msk.bf16.vlgmr.msra.gmra.mrb[16].mxu1 %vm548_vm4, %v5855_v48  ;;  %v4741_v48 = vld [vmem:[%s6804_s23 + $0x40] ss:$76 sps:$4 sm:$0xff]  }
 0xac4   :  { %1724 = vmatpush1.bf16.msra.mxu0 %v4693_v13  ;;  %1765 = vmatpush1.bf16.msra.mxu1 %v4696_v14  ;;  %v4774_v13 = vld [vmem:[%s6805_s11 + $0xf0] sm:$0xff]  }
 0xac5   :  { %1725 = vmatprep.subr.bf16.mxu0 %v4701_v16  ;;  %1766 = vmatprep.subr.bf16.mxu1 %v4704_v17  ;;  %v4775_v14 = vld [vmem:[%s6805_s11 + $0x30] sm:$0xff]   ;;  %v4777_v17 = vld [vmem:[%s6805_s11 + $0x78] sm:$0xff]  }
 0xac6   :  { %1755 = vmatprep.mubr.bf16.mxu0 %v5029_v37  ;;  %1796 = vmatprep.mubr.bf16.mxu1 %v5029_v37  ;;  %v4776_v16 = vld [vmem:[%s6805_s11 + $0xb0] sm:$0xff]  }
 0xac8   :  { %1726 = vmatpush1.bf16.msra.mxu0 %v4699_v18  ;;  %1767 = vmatpush1.bf16.msra.mxu1 %v4702_v19  ;;  %v4778_v18 = vld [vmem:[%s6805_s11 + $0xf8] sm:$0xff]  }
 0xac9   :  { %1805 = vmatprep.subr.bf16.mxu0 %v4707_v21  ;;  %1846 = vmatprep.subr.bf16.mxu1 %v4710_v22  ;;  %v4779_v19 = vld [vmem:[%s6805_s11 + $0x38] sm:$0xff]   ;;  %v4781_v21 = vld [vmem:[%s6805_s11 + $0x140] sm:$0xff]  }
 0xaca   :  { %v4782_v22 = vld [vmem:[%s6805_s11 + $0x1c0] sm:$0xff]  }
 0xacb   :  { %4219 = vmatmul.mubr.msk.bf16.vlgmr.msra.gmra.mrb[20].mxu0 %vm548_vm4, %v6006_v25  ;;  %4220 = vmatmul.mubr.msk.bf16.vlgmr.msra.gmra.mrb[20].mxu1 %vm548_vm4, %v6006_v25 }
 0xacc   :  { %1806 = vmatpush1.bf16.msra.mxu0 %v4705_v23  ;;  %1847 = vmatpush1.bf16.msra.mxu1 %v4708_v24 }
 0xacd   :  { %1807 = vmatprep.subr.bf16.mxu0 %v4713_v26  ;;  %1848 = vmatprep.subr.bf16.mxu1 %v4716_v27 }
 0xace   :  { %1837 = vmatprep.mubr.bf16.mxu0 %v5029_v37  ;;  %1878 = vmatprep.mubr.bf16.mxu1 %v5029_v37 }
 0xad0   :  { %1808 = vmatpush1.bf16.msra.mxu0 %v4711_v28  ;;  %1849 = vmatpush1.bf16.msra.mxu1 %v4714_v29 }
 0xad1   :  { %1887 = vmatprep.subr.bf16.mxu0 %v4719_v30  ;;  %1928 = vmatprep.subr.bf16.mxu1 %v4722_v31 }
 0xad3   :  { %4221 = vmatmul.mubr.msk.bf16.vlgmr.msra.gmra.mrb[24].mxu0 %vm548_vm4, %v6006_v25  ;;  %4222 = vmatmul.mubr.msk.bf16.vlgmr.msra.gmra.mrb[24].mxu1 %vm548_vm4, %v6006_v25 }
 0xad4   :  { %1888 = vmatpush1.bf16.msra.mxu0 %v4717_v33  ;;  %1929 = vmatpush1.bf16.msra.mxu1 %v4720_v34 }
 0xad5   :  { %1889 = vmatprep.subr.bf16.mxu0 %v4725_v35  ;;  %1930 = vmatprep.subr.bf16.mxu1 %v4728_v36 }
 0xad6   :  { %1919 = vmatprep.mubr.bf16.mxu0 %v5029_v37  ;;  %1960 = vmatprep.mubr.bf16.mxu1 %v5029_v37 }
 0xad8   :  { %1890 = vmatpush1.bf16.msra.mxu0 %v4723_v38  ;;  %1931 = vmatpush1.bf16.msra.mxu1 %v4726_v39 }
 0xad9   :  { %1969 = vmatprep.subr.bf16.mxu0 %v4731_v32  ;;  %2010 = vmatprep.subr.bf16.mxu1 %v4734_v40 }
 0xadb   :  { %4223 = vmatmul.mubr.msk.bf16.vlgmr.msra.gmra.mrb[28].mxu0 %vm548_vm4, %v6006_v25  ;;  %4224 = vmatmul.mubr.msk.bf16.vlgmr.msra.gmra.mrb[28].mxu1 %vm548_vm4, %v6006_v25 }
 0xadc   :  { %1970 = vmatpush1.bf16.msra.mxu0 %v4729_v41  ;;  %2011 = vmatpush1.bf16.msra.mxu1 %v4732_v42 }
 0xadd   :  { %1971 = vmatprep.subr.bf16.mxu0 %v4737_v43  ;;  %2012 = vmatprep.subr.bf16.mxu1 %v4740_v44 }
 0xade   :  { %2001 = vmatprep.mubr.bf16.mxu0 %v5029_v37  ;;  %2042 = vmatprep.mubr.bf16.mxu1 %v5029_v37 }
 0xae0   :  { %1972 = vmatpush1.bf16.msra.mxu0 %v4735_v45  ;;  %2013 = vmatpush1.bf16.msra.mxu1 %v4738_v46 }
 0xae1   :  { %2051 = vmatprep.subr.bf16.mxu0 %v4743_v47  ;;  %4603 = vmatprep.subr.bf16.mxu1 %v5030_v7 }
 0xae3   :  { %4225 = vmatmul.mubr.msk.bf16.vlgmr.msra.gmra.mrb[32].mxu0 %vm548_vm4, %v6006_v25  ;;  %4226 = vmatmul.mubr.msk.bf16.vlgmr.msra.gmra.mrb[32].mxu1 %vm548_vm4, %v6006_v25 }
 0xae4   :  { %2052 = vmatpush1.bf16.msra.mxu0 %v4741_v48  ;;  %4604 = vmatpush3.bf16.msra.mxu1 %v4744_v1 }
 0xae5   :  { %2053 = vmatprep.subr.bf16.mxu0 %v4747_v15  ;;  %4605 = vmatprep.subr.bf16.mxu1 %v5030_v7 }
 0xae6   :  { %2083 = vmatprep.mubr.bf16.mxu0 %v5029_v37  ;;  %4607 = vmatprep.mubr.msk.bf16.mxu1 %vm5031_vm5, %v5030_v7  ;;  %v4751_v37 = vld [vmem:[%s6805_s11] sm:$0xff]  }
 0xae8   :  { %2054 = vmatpush1.bf16.msra.mxu0 %v4745_v49  ;;  %4606 = vmatpush3.bf16.msra.mxu1 %v4748_v50 }
 0xae9   :  { %4388 = vmatprep.subr.bf16.mxu0 %v4749_v51  ;;  %4410 = vmatprep.subr.bf16.mxu1 %v4750_v52 }
 0xaeb   :  { %4227 = vmatmul.mubr.msk.bf16.vlgmr.msra.gmra.mrb[36].mxu0 %vm548_vm4, %v6006_v25  ;;  %4608 = vmatmul.mubr.msk.bf16.vlgmr.msra.gmra.mrb[36].mxu1 %vm548_vm4, %v6006_v25 }
 0xaec   :  { %4389 = vmatpush3.bf16.msra.mxu0 %v4751_v37  ;;  %4411 = vmatpush3.bf16.msra.mxu1 %v4752_v53  ;;  %v2138_v53 = vlaneseq }
 0xaed   :  { %4390 = vmatprep.subr.bf16.mxu0 %v4753_v54  ;;  %4412 = vmatprep.subr.bf16.mxu1 %v4754_v55 }
 0xaee   :  { %v6243_v54 = vshrl.u32 %v2138_v53, 7 }
 0xaf0   :  { %4391 = vmatpush3.bf16.msra.mxu0 %v4755_v56  ;;  %4413 = vmatpush3.bf16.msra.mxu1 %v4756_v57 }
 0xaf1   :  { %4392 = vmatprep.subr.bf16.mxu0 %v4757_v58  ;;  %4414 = vmatprep.subr.bf16.mxu1 %v4758_v59 }
 0xaf4   :  { %4393 = vmatpush3.bf16.msra.mxu0 %v4759_v60  ;;  %4415 = vmatpush3.bf16.msra.mxu1 %v4760_v61 }
 0xaf5   :  { %4394 = vmatprep.subr.bf16.mxu0 %v4761_v62  ;;  %4416 = vmatprep.subr.bf16.mxu1 %v4762_v63  ;;  %v6252_v63 = vsub.s32 0, %v6243_v54 }
 0xaf8   :  { %4395 = vmatpush3.bf16.msra.mxu0 %v4763_v0  ;;  %4417 = vmatpush3.bf16.msra.mxu1 %v4764_v2  ;;  %v6255_v0 = vsub.s32 2, %v6243_v54  ;;  %v6260_v2 = vld [vmem:[%s6806_s22] sm:$0xff] }
 0xaf9   :  { %4396 = vmatprep.subr.bf16.mxu0 %v4765_v3  ;;  %4418 = vmatprep.subr.bf16.mxu1 %v4766_v4  ;;  %v6263_v3 = vsub.s32 1, %v6243_v54  ;;  %v2152_v4 = vsub.s32 3, %v6243_v54 }
 0xafc   :  { %4397 = vmatpush3.bf16.msra.mxu0 %v4767_v5  ;;  %4419 = vmatpush3.bf16.msra.mxu1 %v4768_v6  ;;  %v2141_v5 = vrot.slane %v6260_v2, %v6252_v63  ;;  %v2149_v6 = vrot.slane %v6260_v2, %v6255_v0 }
 0xafd   :  { %4398 = vmatprep.subr.bf16.mxu0 %v4769_v8  ;;  %4420 = vmatprep.subr.bf16.mxu1 %v4770_v9 }
 0xb00   :  { %4399 = vmatpush3.bf16.msra.mxu0 %v4771_v10  ;;  %4421 = vmatpush3.bf16.msra.mxu1 %v4772_v11  ;;  %v2145_v10 = vrot.slane %v6260_v2, %v6263_v3  ;;  %v2153_v11 = vrot.slane %v6260_v2, %v2152_v4 }
 0xb01   :  { %4400 = vmatprep.subr.bf16.mxu0 %v4773_v12  ;;  %4422 = vmatprep.subr.bf16.mxu1 %v4774_v13 }
 0xb04   :  { %4401 = vmatpush3.bf16.msra.mxu0 %v4775_v14  ;;  %4423 = vmatpush3.bf16.msra.mxu1 %v4776_v16 }
 0xb05   :  { %4402 = vmatprep.subr.bf16.mxu0 %v4777_v17  ;;  %4424 = vmatprep.subr.bf16.mxu1 %v4778_v18 }
 0xb08   :  { %4403 = vmatpush3.bf16.msra.mxu0 %v4779_v19  ;;  %4425 = vmatpush3.bf16.msra.mxu1 %v4780_v20 }
 0xb09   :  { %4432 = vmatprep.subr.bf16.mxu0 %v4781_v21  ;;  %4454 = vmatprep.subr.bf16.mxu1 %v4782_v22 }
 0xb76   :  { %v1153_v23 = vpop.f32.mrb[0].mxu0  ;;  %v1194_v24 = vpop.f32.mrb[0].mxu1 }
 0xb77   :  { %v1155_v25 = vpop.f32.mrb[1].mxu0  ;;  %v1196_v26 = vpop.f32.mrb[1].mxu1 }
 0xb78   :  { %v1157_v27 = vpop.f32.mrb[2].mxu0  ;;  %v1198_v28 = vpop.f32.mrb[2].mxu1 }
 0xb79   :  { %v1158_v29 = vpop.f32.mrb[3].mxu0  ;;  %v1199_v30 = vpop.f32.mrb[3].mxu1 }
 0xb7e   :  { %v6219_v31 = vpop.f32.mrb[4].mxu0  ;;  %v6221_v33 = vpop.f32.mrb[4].mxu1 }
 0xb7f   :  { %v6223_v34 = vpop.f32.mrb[5].mxu0  ;;  %v6225_v35 = vpop.f32.mrb[5].mxu1 }
 0xb80   :  { %v1239_v36 = vpop.f32.mrb[6].mxu0  ;;  %v1280_v38 = vpop.f32.mrb[6].mxu1 }
 0xb81   :  { %v1240_v39 = vpop.f32.mrb[7].mxu0  ;;  %v1281_v32 = vpop.f32.mrb[7].mxu1  ;;  %v2160_v36 = vsub.s32 5, %v6243_v54  ;;  %v2168_v38 = vsub.s32 7, %v6243_v54 }
 0xb86   :  { %v6227_v40 = vpop.f32.mrb[8].mxu0  ;;  %v6229_v41 = vpop.f32.mrb[8].mxu1 }
 0xb87   :  { %v6231_v42 = vpop.f32.mrb[9].mxu0  ;;  %v6233_v43 = vpop.f32.mrb[9].mxu1 }
 0xb88   :  { %v1321_v44 = vpop.f32.mrb[10].mxu0  ;;  %v1362_v45 = vpop.f32.mrb[10].mxu1 }
 0xb89   :  { %v1322_v46 = vpop.f32.mrb[11].mxu0  ;;  %v1363_v47 = vpop.f32.mrb[11].mxu1 }
 0xb8e   :  { %v6235_v48 = vpop.f32.mrb[12].mxu0  ;;  %v6237_v1 = vpop.f32.mrb[12].mxu1 }
 0xb8f   :  { %v6239_v15 = vpop.f32.mrb[13].mxu0  ;;  %v6241_v49 = vpop.f32.mrb[13].mxu1 }
 0xb90   :  { %v1403_v50 = vpop.f32.mrb[14].mxu0  ;;  %v1444_v51 = vpop.f32.mrb[14].mxu1 }
 0xb91   :  { %v1404_v52 = vpop.f32.mrb[15].mxu0  ;;  %v1445_v37 = vpop.f32.mrb[15].mxu1 }
 0xb96   :  { %v6245_v55 = vpop.f32.mrb[16].mxu0  ;;  %v6247_v56 = vpop.f32.mrb[16].mxu1 }
 0xb97   :  { %v6249_v57 = vpop.f32.mrb[17].mxu0  ;;  %v4601_v58 = vpop.f32.mrb[17].mxu1 }
 0xb98   :  { %v1485_v59 = vpop.f32.mrb[18].mxu0  ;;  %v1525_v60 = vpop.f32.mrb[18].mxu1 }
 0xb99   :  { %v1486_v61 = vpop.f32.mrb[19].mxu0  ;;  %v4602_v62 = vpop.f32.mrb[19].mxu1 }
 0xb9e   :  { %v1757_v8 = vpop.f32.mrb[20].mxu0  ;;  %v1798_v9 = vpop.f32.mrb[20].mxu1 }
 0xb9f   :  { %v1758_v12 = vadd.f32 %v1757_v8, %v1153_v23  ;;  %v1799_v13 = vadd.f32 %v1798_v9, %v1194_v24  ;;  %v1759_v14 = vpop.f32.mrb[21].mxu0  ;;  %v1800_v16 = vpop.f32.mrb[21].mxu1 }
 0xba0   :  { %v1760_v17 = vadd.f32 %v1759_v14, %v1155_v25  ;;  %v1801_v18 = vadd.f32 %v1800_v16, %v1196_v26  ;;  %v1761_v19 = vpop.f32.mrb[22].mxu0  ;;  %v1802_v20 = vpop.f32.mrb[22].mxu1  ;;  %v2161_v25 = vrot.slane %v6260_v2, %v2160_v36  ;;  %v2169_v26 = vrot.slane %v6260_v2, %v2168_v38 }
 0xba1   :  { %v2233_v21 = vadd.f32 %v2141_v5, %v1758_v12  ;;  %v2235_v22 = vadd.f32 %v2149_v6, %v1799_v13  ;;  %v1762_v27 = vpop.f32.mrb[23].mxu0  ;;  %v1803_v28 = vpop.f32.mrb[23].mxu1 }
 0xba2   :  { %v2234_v29 = vadd.f32 %v2145_v10, %v1760_v17  ;;  %v2236_v30 = vadd.f32 %v2153_v11, %v1801_v18  ;;  %v4783_v17 = vld [vmem:[%s6805_s11 + $0x100] sm:$0xff]   ;;  %v4786_v27 = vld [vmem:[%s6805_s11 + $0x1c8] sm:$0xff]   ;;  %v2156_v28 = vsub.s32 4, %v6243_v54 }
 0xba3   :  { %4933 = vtanh.f32 %v2233_v21 }
 0xba4   :  { %4935 = vtanh.f32 %v2235_v22 }
 0xba5   :  { %4937 = vtanh.f32 %v2234_v29  ;;  %v2164_v29 = vsub.s32 6, %v6243_v54  ;;  %v4834_v54 = vld [vmem:[%s6805_s11 + $0x2e8] sm:$0xff]  }
 0xba6   :  { %4939 = vtanh.f32 %v2236_v30  ;;  %v1839_v23 = vpop.f32.mrb[24].mxu0  ;;  %v1880_v24 = vpop.f32.mrb[24].mxu1  ;;  %v4787_v30 = vld [vmem:[%s6805_s11 + $0x108] sm:$0xff]  }
 0xba7   :  { %v6284_v39 = vadd.f32 %v1839_v23, %v6219_v31  ;;  %v6287_v32 = vadd.f32 %v1880_v24, %v6221_v33  ;;  %v1841_v44 = vpop.f32.mrb[25].mxu0  ;;  %v1882_v45 = vpop.f32.mrb[25].mxu1  ;;  %v6294_v31 = vld [vmem:[%s6806_s22 + $0x8] sm:$0xff] }
 0xba8   :  { %v1842_v46 = vadd.f32 %v1841_v44, %v6223_v34  ;;  %v1883_v47 = vadd.f32 %v1882_v45, %v6225_v35  ;;  %v1843_v50 = vpop.f32.mrb[26].mxu0  ;;  %v1884_v51 = vpop.f32.mrb[26].mxu1  ;;  %v2173_v33 = vrot.slane %v6294_v31, %v6252_v63  ;;  %v2181_v34 = vrot.slane %v6294_v31, %v6255_v0 }
 0xba9   :  { %v1844_v52 = vpop.f32.mrb[27].mxu0  ;;  %v1885_v37 = vpop.f32.mrb[27].mxu1  ;;  %v2189_v23 = vrot.slane %v6294_v31, %v2156_v28  ;;  %v2197_v24 = vrot.slane %v6294_v31, %v2164_v29 }
 0xbaa   :  { %v2238_v53 = vadd.f32 %v2161_v25, %v1842_v46  ;;  %v2240_v58 = vadd.f32 %v2169_v26, %v1883_v47  ;;  %v4788_v25 = vld [vmem:[%s6805_s11 + $0x188] sm:$0xff]   ;;  %v4789_v26 = vld [vmem:[%s6805_s11 + $0x150] sm:$0xff]  }
 0xbab   :  { %v4790_v46 = vld [vmem:[%s6805_s11 + $0x1d0] sm:$0xff]  }
 0xbac   :  { %4941 = vtanh.f32 %v2238_v53 }
 0xbad   :  { %v4934_v59 = vpop.eup %4933  ;;  %4943 = vtanh.f32 %v2240_v58 }
 0xbae   :  { %v4936_v35 = vpop.eup %4935  ;;  %v1921_v60 = vpop.f32.mrb[28].mxu0  ;;  %v2271_v18 = vpack.c.bf16 %v4934_v59, %v4934_v59 }
 0xbaf   :  { %v1962_v61 = vpop.f32.mrb[28].mxu1  ;;  %v4938_v62 = vpop.eup %4937  ;;  %v1922_v5 = vadd.f32 %v1921_v60, %v6227_v40  ;;  %v2273_v22 = vpack.c.bf16 %v4936_v35, %v4936_v35  ;;  %v4791_v60 = vld [vmem:[%s6805_s11 + $0x110] sm:$0xff]  }
 0xbb0   :  { %v1963_v6 = vadd.f32 %v1962_v61, %v6229_v41  ;;  %v1923_v8 = vpop.f32.mrb[29].mxu0  ;;  %v1964_v9 = vpop.f32.mrb[29].mxu1  ;;  %v2272_v16 = vpack.c.bf16 %v4938_v62, %v4938_v62 }
 0xbb1   :  { %v4940_v10 = vpop.eup %4939  ;;  %v6303_v11 = vadd.f32 %v1923_v8, %v6231_v42  ;;  %v6306_v12 = vadd.f32 %v1964_v9, %v6233_v43  ;;  %v1925_v13 = vpop.f32.mrb[30].mxu0  ;;  %v6311_v40 = vadd.f32 %v2173_v33, %v1922_v5  ;;  %v4784_v42 = vld [vmem:[%s6805_s11 + $0x180] sm:$0xff]   ;;  %v4785_v43 = vld [vmem:[%s6805_s11 + $0x148] sm:$0xff]   ;;  %v4793_v5 = vld [vmem:[%s6805_s11 + $0x158] sm:$0xff]   ;;  %v2157_v9 = vrot.slane %v6260_v2, %v2156_v28 }
 0xbb2   :  { %v1966_v14 = vpop.f32.mrb[30].mxu1  ;;  %v6313_v41 = vadd.f32 %v2181_v34, %v1963_v6  ;;  %v1926_v19 = vpop.f32.mrb[31].mxu0  ;;  %v2274_v21 = vpack.c.bf16 %v4940_v10, %v4940_v10  ;;  %3545 = vmatprep.mubr.bf16.mxu0 %v2272_v16  ;;  %v4794_v6 = vld [vmem:[%s6805_s11 + $0x1d8] sm:$0xff]   ;;  %v2134_v8 = vld [vmem:[%s6806_s22 + $0x10] sm:$0x7]  ;;  %v2165_v13 = vrot.slane %v6260_v2, %v2164_v29  ;;  %s6807_s22 = sld [smem:[#allocation20_spill]] }
 0xbb3   :  { %v1967_v20 = vpop.f32.mrb[31].mxu1  ;;  %3546 = vmatmul.mubr.bf16.vlgmr.msra.gmra.mrb[40].mxu0 %v2271_v18  ;;  %v4795_v10 = vld [vmem:[%s6805_s11 + $0x118] sm:$0xff]   ;;  %v2205_v14 = vrot.slane %v2134_v8, %v6252_v63  ;;  %v2213_v16 = vrot.slane %v2134_v8, %v6255_v0  ;;  %v4797_v18 = vld [vmem:[%s6805_s11 + $0x160] sm:$0xff]   ;;  %v2177_v19 = vrot.slane %v6294_v31, %v6263_v3  ;;  %v2185_v0 = vrot.slane %v6294_v31, %v2152_v4 }
 0xbb4   :  { %3585 = vmatprep.mubr.bf16.mxu1 %v2274_v21  ;;  %4433 = vmatpush3.bf16.msra.mxu0 %v4783_v17  ;;  %v4796_v17 = vld [vmem:[%s6805_s11 + $0x198] sm:$0xff]   ;;  %v2209_v21 = vrot.slane %v2134_v8, %v6263_v3  ;;  %v4798_v63 = vld [vmem:[%s6805_s11 + $0x1e0] sm:$0xff]   ;;  %v2237_v28 = vadd.f32 %v2157_v9, %v6284_v39  ;;  %v4801_v39 = vld [vmem:[%s6805_s11 + $0x168] sm:$0xff]  }
 0xbb5   :  { %3586 = vmatmul.mubr.bf16.vlgmr.msra.gmra.mrb[40].mxu1 %v2273_v22  ;;  %4434 = vmatprep.subr.bf16.mxu0 %v4785_v43  ;;  %v4817_v9 = vld [vmem:[%s6805_s11 + $0x248] sm:$0xff]  }
 0xbb6   :  { %4455 = vmatpush3.bf16.msra.mxu1 %v4784_v42  ;;  %v2003_v44 = vpop.f32.mrb[32].mxu0  ;;  %v2044_v45 = vpop.f32.mrb[32].mxu1  ;;  %4945 = vtanh.f32 %v2237_v28  ;;  %v2201_v28 = vrot.slane %v6294_v31, %v2168_v38 }
 0xbb7   :  { %4456 = vmatprep.subr.bf16.mxu1 %v4786_v27  ;;  %v4942_v47 = vpop.eup %4941  ;;  %v2004_v50 = vadd.f32 %v2003_v44, %v6235_v48  ;;  %v2045_v51 = vadd.f32 %v2044_v45, %v6237_v1  ;;  %v2005_v52 = vpop.f32.mrb[33].mxu0  ;;  %v2244_v45 = vadd.f32 %v2185_v0, %v6306_v12  ;;  %v4806_v12 = vld [vmem:[%s6805_s11 + $0x1f0] sm:$0xff]   ;;  %v4827_v0 = vld [vmem:[%s6805_s11 + $0x218] sm:$0xff]  }
 0xbb8   :  { %v2046_v37 = vpop.f32.mrb[33].mxu1  ;;  %v4944_v53 = vpop.eup %4943  ;;  %4435 = vmatpush3.bf16.msra.mxu0 %v4787_v30  ;;  %v6343_v58 = vadd.f32 %v2005_v52, %v6239_v15  ;;  %v2276_v35 = vpack.c.bf16 %v4942_v47, %v4942_v47  ;;  %v4805_v47 = vld [vmem:[%s6805_s11 + $0x170] sm:$0xff]   ;;  %v4809_v52 = vld [vmem:[%s6805_s11 + $0x178] sm:$0xff]  }
 0xbb9   :  { %v6346_v59 = vadd.f32 %v2046_v37, %v6241_v49  ;;  %v2007_v33 = vpop.f32.mrb[34].mxu0  ;;  %v2048_v34 = vpop.f32.mrb[34].mxu1  ;;  %v6351_v48 = vadd.f32 %v2189_v23, %v2004_v50  ;;  %v6353_v1 = vadd.f32 %v2197_v24, %v2045_v51  ;;  %4436 = vmatprep.subr.bf16.mxu0 %v4789_v26  ;;  %v2278_v15 = vpack.c.bf16 %v4944_v53, %v4944_v53  ;;  %v4792_v49 = vld [vmem:[%s6805_s11 + $0x190] sm:$0xff]   ;;  %v4799_v23 = vld [vmem:[%s6805_s11 + $0x120] sm:$0xff]   ;;  %v4810_v37 = vld [vmem:[%s6805_s11 + $0x1f8] sm:$0xff]  }
 0xbba   :  { %4457 = vmatpush3.bf16.msra.mxu1 %v4788_v25  ;;  %v2008_v61 = vpop.f32.mrb[35].mxu0  ;;  %v2049_v62 = vpop.f32.mrb[35].mxu1  ;;  %3625 = vmatprep.mubr.bf16.mxu0 %v2276_v35  ;;  %v2239_v24 = vadd.f32 %v2165_v13, %v6287_v32  ;;  %v2242_v26 = vadd.f32 %v2177_v19, %v6303_v11  ;;  %v4802_v32 = vld [vmem:[%s6805_s11 + $0x1e8] sm:$0xff]   ;;  %v4807_v50 = vld [vmem:[%s6805_s11 + $0x130] sm:$0xff]   ;;  %v4811_v53 = vld [vmem:[%s6805_s11 + $0x138] sm:$0xff]  }
 0xbbb   :  { %4458 = vmatprep.subr.bf16.mxu1 %v4790_v46  ;;  %3665 = vmatprep.mubr.bf16.mxu1 %v2278_v15  ;;  %v4803_v46 = vld [vmem:[%s6805_s11 + $0x128] sm:$0xff]   ;;  %v4808_v51 = vld [vmem:[%s6805_s11 + $0x1b0] sm:$0xff]   ;;  %v4812_v33 = vld [vmem:[%s6805_s11 + $0x1b8] sm:$0xff]   ;;  %v2248_v38 = vadd.f32 %v2201_v28, %v6346_v59 }
 0xbbc   :  { %4437 = vmatpush3.bf16.msra.mxu0 %v4791_v60  ;;  %4947 = vtanh.f32 %v2239_v24  ;;  %v4804_v11 = vld [vmem:[%s6805_s11 + $0x1a8] sm:$0xff]   ;;  %v4813_v34 = vld [vmem:[%s6805_s11 + $0x240] sm:$0xff]   ;;  %v4822_v19 = vld [vmem:[%s6805_s11 + $0x2d0] sm:$0xff]  }
 0xbbd   :  { %4438 = vmatprep.subr.bf16.mxu0 %v4793_v5  ;;  %4949 = vtanh.f32 %v2242_v26  ;;  %v4814_v60 = vld [vmem:[%s6805_s11 + $0x2c0] sm:$0xff]   ;;  %v4818_v13 = vld [vmem:[%s6805_s11 + $0x2c8] sm:$0xff]   ;;  %v4840_v59 = vld [vmem:[%s6805_s11 + $0x2b0] sm:$0xff]  }
 0xbbe   :  { %4459 = vmatpush3.bf16.msra.mxu1 %v4792_v49  ;;  %v2085_v20 = vpop.f32.mrb[36].mxu0  ;;  %v2126_v2 = vpop.f32.mrb[36].mxu1  ;;  %4951 = vtanh.f32 %v2244_v45  ;;  %v4815_v15 = vld [vmem:[%s6805_s11 + $0x200] sm:$0xff]   ;;  %v4841_v24 = vld [vmem:[%s6805_s11 + $0x278] sm:$0xff]  }
 0xbbf   :  { %4460 = vmatprep.subr.bf16.mxu1 %v4794_v6  ;;  %v2086_v42 = vadd.f32 %v2085_v20, %v6245_v55  ;;  %v2127_v43 = vadd.f32 %v2126_v2, %v6247_v56  ;;  %v2087_v22 = vpop.f32.mrb[37].mxu0  ;;  %v4609_v27 = vpop.f32.mrb[37].mxu1  ;;  %v4816_v6 = vld [vmem:[%s6805_s11 + $0x280] sm:$0xff]   ;;  %v4823_v20 = vld [vmem:[%s6805_s11 + $0x210] sm:$0xff]   ;;  %4953 = vtanh.f32 %v6311_v40 }
 0xbc0   :  { %4439 = vmatpush3.bf16.msra.mxu0 %v4795_v10  ;;  %v2088_v29 = vadd.f32 %v2087_v22, %v6249_v57  ;;  %v2089_v3 = vpop.f32.mrb[38].mxu0  ;;  %v2129_v30 = vpop.f32.mrb[38].mxu1  ;;  %v4800_v57 = vld [vmem:[%s6805_s11 + $0x1a0] sm:$0xff]   ;;  %v4824_v2 = vld [vmem:[%s6805_s11 + $0x290] sm:$0xff]   ;;  %v2193_v22 = vrot.slane %v6294_v31, %v2160_v36  ;;  %v4835_v31 = vld [vmem:[%s6805_s11 + $0x228] sm:$0xff]   ;;  %4955 = vtanh.f32 %v6313_v41 }
 0xbc1   :  { %v6397_v4 = vadd.f32 %v2205_v14, %v2086_v42  ;;  %v6399_v55 = vadd.f32 %v2213_v16, %v2127_v43  ;;  %v2090_v56 = vpop.f32.mrb[39].mxu0  ;;  %v4610_v25 = vpop.f32.mrb[39].mxu1  ;;  %4440 = vmatprep.subr.bf16.mxu0 %v4797_v18  ;;  %v4819_v16 = vld [vmem:[%s6805_s11 + $0x208] sm:$0xff]   ;;  %v4821_v18 = vld [vmem:[%s6805_s11 + $0x250] sm:$0xff]   ;;  %v4828_v42 = vld [vmem:[%s6805_s11 + $0x298] sm:$0xff]  }
 0xbc2   :  { %4461 = vmatpush3.bf16.msra.mxu1 %v4796_v17  ;;  %v6408_v44 = vadd.f32 %v2209_v21, %v2088_v29  ;;  %v4946_v35 = vpop.eup %4945  ;;  %v4820_v17 = vld [vmem:[%s6805_s11 + $0x288] sm:$0xff]   ;;  %v4825_v21 = vld [vmem:[%s6805_s11 + $0x258] sm:$0xff]   ;;  %v4829_v43 = vld [vmem:[%s6805_s11 + $0x260] sm:$0xff]   ;;  %v2246_v30 = vadd.f32 %v2193_v22, %v6343_v58 }
 0xbc3   :  { %4462 = vmatprep.subr.bf16.mxu1 %v4798_v63  ;;  %v2275_v5 = vpack.c.bf16 %v4946_v35, %v4946_v35  ;;  %v4826_v63 = vld [vmem:[%s6805_s11 + $0x2d8] sm:$0xff]   ;;  %v4830_v27 = vld [vmem:[%s6805_s11 + $0x2e0] sm:$0xff]   ;;  %v4833_v3 = vld [vmem:[%s6805_s11 + $0x268] sm:$0xff]  }
 0xbc4   :  { %4441 = vmatpush3.bf16.msra.mxu0 %v4799_v23  ;;  %v4831_v29 = vld [vmem:[%s6805_s11 + $0x220] sm:$0xff]   ;;  %v4836_v58 = vld [vmem:[%s6805_s11 + $0x2a8] sm:$0xff]   ;;  %v4837_v23 = vld [vmem:[%s6805_s11 + $0x270] sm:$0xff]   ;;  %4957 = vtanh.f32 %v2246_v30 }
 0xbc5   :  { %4442 = vmatprep.subr.bf16.mxu0 %v4801_v39  ;;  %v4832_v36 = vld [vmem:[%s6805_s11 + $0x2a0] sm:$0xff]   ;;  %v4838_v40 = vld [vmem:[%s6805_s11 + $0x2f0] sm:$0xff]   ;;  %4959 = vtanh.f32 %v2248_v38  ;;  %v4842_v56 = vld [vmem:[%s6805_s11 + $0x2f8] sm:$0xff]  }
 0xbc6   :  { %4463 = vmatpush3.bf16.msra.mxu1 %v4800_v57  ;;  %v4948_v61 = vpop.eup %4947  ;;  %v4839_v41 = vld [vmem:[%s6805_s11 + $0x230] sm:$0xff]   ;;  %v4843_v25 = vld [vmem:[%s6805_s11 + $0x238] sm:$0xff]   ;;  %v4845_v39 = vld [vmem:[%s6805_s11 + $0x340] sm:$0xff]   ;;  %4961 = vtanh.f32 %v6351_v48 }
 0xbc7   :  { %4464 = vmatprep.subr.bf16.mxu1 %v4802_v32  ;;  %v4950_v62 = vpop.eup %4949  ;;  %v2277_v8 = vpack.c.bf16 %v4948_v61, %v4948_v61  ;;  %v4844_v57 = vld [vmem:[%s6805_s11 + $0x2b8] sm:$0xff]   ;;  %v4846_v32 = vld [vmem:[%s6805_s11 + $0x3c0] sm:$0xff]   ;;  %v4852_v35 = vld [vmem:[%s6805_s11 + $0x388] sm:$0xff]   ;;  %4963 = vtanh.f32 %v6353_v1 }
 0xbc8   :  { %4443 = vmatpush3.bf16.msra.mxu0 %v4803_v46  ;;  %v4952_v49 = vpop.eup %4951  ;;  %v2280_v10 = vpack.c.bf16 %v4950_v62, %v4950_v62  ;;  %v4854_v61 = vld [vmem:[%s6805_s11 + $0x3d0] sm:$0xff]   ;;  %4965 = vtanh.f32 %v6408_v44  ;;  %v4873_v44 = vld [vmem:[%s6805_s11 + $0x378] sm:$0xff]   ;;  %v4878_v28 = vld [vmem:[%s6805_s11 + $0x400] sm:$0xff]  }
 0xbc9   :  { %4444 = vmatprep.subr.bf16.mxu0 %v4805_v47  ;;  %v2282_v14 = vpack.c.bf16 %v4952_v49, %v4952_v49  ;;  %v4954_v26 = vpop.eup %4953  ;;  %v4855_v62 = vld [vmem:[%s6805_s11 + $0x310] sm:$0xff]   ;;  %v4857_v49 = vld [vmem:[%s6805_s11 + $0x358] sm:$0xff]   ;;  %v4880_v30 = vld [vmem:[%s6805_s11 + $0x448] sm:$0xff]   ;;  %4967 = vtanh.f32 %v6397_v4 }
 0xbca   :  { %4465 = vmatpush3.bf16.msra.mxu1 %v4804_v11  ;;  %v4956_v45 = vpop.eup %4955  ;;  %v4847_v11 = vld [vmem:[%s6805_s11 + $0x300] sm:$0xff]   ;;  %v4870_v48 = vld [vmem:[%s6805_s11 + $0x3f0] sm:$0xff]   ;;  %v4881_v38 = vld [vmem:[%s6805_s11 + $0x408] sm:$0xff]   ;;  %4969 = vtanh.f32 %v6399_v55 }
 0xbcb   :  { %4466 = vmatprep.subr.bf16.mxu1 %v4806_v12  ;;  %v2279_v12 = vpack.c.bf16 %v4954_v26, %v4954_v26  ;;  %v4871_v1 = vld [vmem:[%s6805_s11 + $0x330] sm:$0xff]   ;;  %v4893_v26 = vld [vmem:[%s6805_s11 + $0x428] sm:$0xff]  }
 0xbcc   :  { %4445 = vmatpush3.bf16.msra.mxu0 %v4807_v50  ;;  %v4848_v50 = vld [vmem:[%s6805_s11 + $0x380] sm:$0xff]   ;;  %v4896_v4 = vld [vmem:[%s6805_s11 + $0x430] sm:$0xff]  }
 0xbcd   :  { %4446 = vmatprep.subr.bf16.mxu0 %v4809_v52  ;;  %v4849_v52 = vld [vmem:[%s6805_s11 + $0x348] sm:$0xff]   ;;  %v4897_v55 = vld [vmem:[%s6805_s11 + $0x4b0] sm:$0xff]  }
 0xbce   :  { %4467 = vmatpush3.bf16.msra.mxu1 %v4808_v51  ;;  %v4958_v46 = vpop.eup %4957  ;;  %v2281_v51 = vpack.c.bf16 %v4956_v45, %v4956_v45  ;;  %v4895_v45 = vld [vmem:[%s6805_s11 + $0x470] sm:$0xff]  }
 0xbcf   :  { %4468 = vmatprep.subr.bf16.mxu1 %v4810_v37  ;;  %v4960_v47 = vpop.eup %4959  ;;  %v2284_v37 = vpack.c.bf16 %v4958_v46, %v4958_v46  ;;  %v4898_v46 = vld [vmem:[%s6805_s11 + $0x478] sm:$0xff]  }
 0xbd0   :  { %4447 = vmatpush3.bf16.msra.mxu0 %v4811_v53  ;;  %v4850_v53 = vld [vmem:[%s6805_s11 + $0x3c8] sm:$0xff]  }
 0xbd1   :  { %4476 = vmatprep.subr.bf16.mxu0 %v4813_v34  ;;  %v4851_v34 = vld [vmem:[%s6805_s11 + $0x308] sm:$0xff]  }
 0xbd2   :  { %4469 = vmatpush3.bf16.msra.mxu1 %v4812_v33  ;;  %v2286_v33 = vpack.c.bf16 %v4960_v47, %v4960_v47  ;;  %v4900_v47 = vld [vmem:[%s6805_s11 + $0x4b8] sm:$0xff]  }
 0xbd3   :  { %4498 = vmatprep.subr.bf16.mxu1 %v4814_v60  ;;  %3626 = vmatmul.mubr.bf16.vlgmr.msra.gmra.mrb[44].mxu0 %v2275_v5  ;;  %v4853_v60 = vld [vmem:[%s6805_s11 + $0x350] sm:$0xff]   ;;  %v4858_v5 = vld [vmem:[%s6805_s11 + $0x3d8] sm:$0xff]  }
 0xbd4   :  { %4477 = vmatpush3.bf16.msra.mxu0 %v4815_v15  ;;  %3705 = vmatprep.mubr.bf16.mxu0 %v2280_v10  ;;  %v4856_v15 = vld [vmem:[%s6805_s11 + $0x390] sm:$0xff]   ;;  %v4862_v10 = vld [vmem:[%s6805_s11 + $0x3e0] sm:$0xff]  }
 0xbd5   :  { %3666 = vmatmul.mubr.bf16.vlgmr.msra.gmra.mrb[44].mxu1 %v2277_v8  ;;  %4478 = vmatprep.subr.bf16.mxu0 %v4817_v9  ;;  %v4860_v8 = vld [vmem:[%s6805_s11 + $0x398] sm:$0xff]   ;;  %v4861_v9 = vld [vmem:[%s6805_s11 + $0x360] sm:$0xff]  }
 0xbd6   :  { %4499 = vmatpush3.bf16.msra.mxu1 %v4816_v6  ;;  %3745 = vmatprep.mubr.bf16.mxu1 %v2282_v14  ;;  %v4859_v6 = vld [vmem:[%s6805_s11 + $0x318] sm:$0xff]   ;;  %v4864_v14 = vld [vmem:[%s6805_s11 + $0x3a0] sm:$0xff]  }
 0xbd7   :  { %4500 = vmatprep.subr.bf16.mxu1 %v4818_v13  ;;  %v4863_v13 = vld [vmem:[%s6805_s11 + $0x320] sm:$0xff]  }
 0xbd8   :  { %4479 = vmatpush3.bf16.msra.mxu0 %v4819_v16  ;;  %v4865_v16 = vld [vmem:[%s6805_s11 + $0x368] sm:$0xff]  }
 0xbd9   :  { %4480 = vmatprep.subr.bf16.mxu0 %v4821_v18  ;;  %v4867_v18 = vld [vmem:[%s6805_s11 + $0x328] sm:$0xff]  }
 0xbda   :  { %4501 = vmatpush3.bf16.msra.mxu1 %v4820_v17  ;;  %v4866_v17 = vld [vmem:[%s6805_s11 + $0x3e8] sm:$0xff]  }
 0xbdb   :  { %4502 = vmatprep.subr.bf16.mxu1 %v4822_v19  ;;  %v4868_v19 = vld [vmem:[%s6805_s11 + $0x3a8] sm:$0xff]  }
 0xbdc   :  { %4481 = vmatpush3.bf16.msra.mxu0 %v4823_v20  ;;  %v4869_v20 = vld [vmem:[%s6805_s11 + $0x370] sm:$0xff]  }
 0xbdd   :  { %4482 = vmatprep.subr.bf16.mxu0 %v4825_v21  ;;  %v4874_v21 = vld [vmem:[%s6805_s11 + $0x3f8] sm:$0xff]  }
 0xbde   :  { %4503 = vmatpush3.bf16.msra.mxu1 %v4824_v2  ;;  %v4872_v2 = vld [vmem:[%s6805_s11 + $0x3b0] sm:$0xff]  }
 0xbdf   :  { %4504 = vmatprep.subr.bf16.mxu1 %v4826_v63  ;;  %v4875_v63 = vld [vmem:[%s6805_s11 + $0x338] sm:$0xff]  }
 0xbe0   :  { %4483 = vmatpush3.bf16.msra.mxu0 %v4827_v0  ;;  %v4876_v0 = vld [vmem:[%s6805_s11 + $0x3b8] sm:$0xff]  }
 0xbe1   :  { %4484 = vmatprep.subr.bf16.mxu0 %v4829_v43  ;;  %v4962_v43 = vpop.eup %4961 }
 0xbe2   :  { %4505 = vmatpush3.bf16.msra.mxu1 %v4828_v42  ;;  %v4877_v42 = vld [vmem:[%s6805_s11 + $0x440] sm:$0xff]   ;;  %v4964_v22 = vpop.eup %4963 }
 0xbe3   :  { %4506 = vmatprep.subr.bf16.mxu1 %v4830_v27  ;;  %v4966_v27 = vpop.eup %4965 }
 0xbe4   :  { %4485 = vmatpush3.bf16.msra.mxu0 %v4831_v29  ;;  %v2283_v29 = vpack.c.bf16 %v4962_v43, %v4962_v43 }
 0xbe5   :  { %4486 = vmatprep.subr.bf16.mxu0 %v4833_v3  ;;  %v2285_v3 = vpack.c.bf16 %v4964_v22, %v4964_v22 }
 0xbe6   :  { %4507 = vmatpush3.bf16.msra.mxu1 %v4832_v36  ;;  %v4879_v36 = vld [vmem:[%s6805_s11 + $0x480] sm:$0xff]  }
 0xbe7   :  { %4508 = vmatprep.subr.bf16.mxu1 %v4834_v54  ;;  %v2288_v54 = vpack.c.bf16 %v4966_v27, %v4966_v27 }
 0xbe8   :  { %4487 = vmatpush3.bf16.msra.mxu0 %v4835_v31  ;;  %v4882_v31 = vld [vmem:[%s6805_s11 + $0x488] sm:$0xff]  }
 0xbe9   :  { %4488 = vmatprep.subr.bf16.mxu0 %v4837_v23  ;;  %v4884_v23 = vld [vmem:[%s6805_s11 + $0x410] sm:$0xff]  }
 0xbea   :  { %4509 = vmatpush3.bf16.msra.mxu1 %v4836_v58  ;;  %v4883_v58 = vld [vmem:[%s6805_s11 + $0x450] sm:$0xff]  }
 0xbeb   :  { %4510 = vmatprep.subr.bf16.mxu1 %v4838_v40  ;;  %v4885_v40 = vld [vmem:[%s6805_s11 + $0x490] sm:$0xff]  }
 0xbec   :  { %4489 = vmatpush3.bf16.msra.mxu0 %v4839_v41  ;;  %v4886_v41 = vld [vmem:[%s6805_s11 + $0x458] sm:$0xff]  }
 0xbed   :  { %4490 = vmatprep.subr.bf16.mxu0 %v4841_v24  ;;  %v4888_v24 = vld [vmem:[%s6805_s11 + $0x498] sm:$0xff]  }
 0xbee   :  { %4511 = vmatpush3.bf16.msra.mxu1 %v4840_v59  ;;  %v4887_v59 = vld [vmem:[%s6805_s11 + $0x418] sm:$0xff]  }
 0xbef   :  { %4512 = vmatprep.subr.bf16.mxu1 %v4842_v56  ;;  %v4889_v56 = vld [vmem:[%s6805_s11 + $0x460] sm:$0xff]  }
 0xbf0   :  { %4491 = vmatpush3.bf16.msra.mxu0 %v4843_v25  ;;  %v4890_v25 = vld [vmem:[%s6805_s11 + $0x420] sm:$0xff]  }
 0xbf1   :  { %4520 = vmatprep.subr.bf16.mxu0 %v4845_v39  ;;  %v4892_v39 = vld [vmem:[%s6805_s11 + $0x468] sm:$0xff]  }
 0xbf2   :  { %4513 = vmatpush3.bf16.msra.mxu1 %v4844_v57  ;;  %v4891_v57 = vld [vmem:[%s6805_s11 + $0x4a0] sm:$0xff]  }
 0xbf3   :  { %4542 = vmatprep.subr.bf16.mxu1 %v4846_v32  ;;  %3706 = vmatmul.mubr.bf16.vlgmr.msra.gmra.mrb[48].mxu0 %v2279_v12  ;;  %v4894_v32 = vld [vmem:[%s6805_s11 + $0x4a8] sm:$0xff]   ;;  %v4968_v12 = vpop.eup %4967 }
 0xbf4   :  { %4521 = vmatpush3.bf16.msra.mxu0 %v4847_v11  ;;  %3785 = vmatprep.mubr.bf16.mxu0 %v2284_v37  ;;  %v4899_v11 = vld [vmem:[%s6805_s11 + $0x438] sm:$0xff]   ;;  %s5032_s11 = smov [#allocation7]  }
 0xbf5   :  { %3746 = vmatmul.mubr.bf16.vlgmr.msra.gmra.mrb[48].mxu1 %v2281_v51  ;;  %4522 = vmatprep.subr.bf16.mxu0 %v4849_v52  ;;  %v2287_v51 = vpack.c.bf16 %v4968_v12, %v4968_v12  ;;  %s3933_s14 = sshll.u32 %s5032_s11, 4  ;;  %s3934_s14 = int_to_ptr.vmem [resolvable:$true] %s3933_s14 }
 0xbf6   :  { %4543 = vmatpush3.bf16.msra.mxu1 %v4848_v50  ;;  %3825 = vmatprep.mubr.bf16.mxu1 %v2286_v33  ;;  %v4970_v50 = vpop.eup %4969  ;;  %v4229_v33 = vld [vmem:[%s6807_s22] ss:$0 sm:$0xff]  ;;  %s4999_s6 = scalar_lea.vmem %s3934_s14, 64  ;;  %p5004_p11 = scmp.lt.s32.totalorder %s3934_s14, %s3934_s14 }
 0xbf7   :  { %4544 = vmatprep.subr.bf16.mxu1 %v4850_v53  ;;  %v2289_v52 = vpack.c.bf16 %v4970_v50, %v4970_v50  ;;  %p5000_p10 = scmp.ne.s32.totalorder %s3934_s14, %s4999_s6  ;;  %p5005_p12 = scmp.lt.s32.totalorder %s4999_s6, %s4999_s6 }
 0xbf8   :  { %4523 = vmatpush3.bf16.msra.mxu0 %v4851_v34 }
 0xbf9   :  { %4524 = vmatprep.subr.bf16.mxu0 %v4853_v60  ;;  %p5006_p13 = por %p5005_p12, %p5004_p11 }
 0xbfa   :  { %4545 = vmatpush3.bf16.msra.mxu1 %v4852_v35 }
 0xbfb   :  { %4546 = vmatprep.subr.bf16.mxu1 %v4854_v61  ;;  %p5007_p0 = pnand %p5006_p13, %p5000_p10 }
 0xbfc   :  { %4525 = vmatpush3.bf16.msra.mxu0 %v4855_v62 }
 0xbfd   :  { %4526 = vmatprep.subr.bf16.mxu0 %v4857_v49 }
 0xbfe   :  { %4547 = vmatpush3.bf16.msra.mxu1 %v4856_v15 }
 0xbff   :  { %4548 = vmatprep.subr.bf16.mxu1 %v4858_v5 }
 0xc00   :  { %4527 = vmatpush3.bf16.msra.mxu0 %v4859_v6 }
 0xc01   :  { %4528 = vmatprep.subr.bf16.mxu0 %v4861_v9 }
 0xc02   :  { %4549 = vmatpush3.bf16.msra.mxu1 %v4860_v8 }
 0xc03   :  { %4550 = vmatprep.subr.bf16.mxu1 %v4862_v10 }
 0xc04   :  { %4529 = vmatpush3.bf16.msra.mxu0 %v4863_v13 }
 0xc05   :  { %4530 = vmatprep.subr.bf16.mxu0 %v4865_v16 }
 0xc06   :  { %4551 = vmatpush3.bf16.msra.mxu1 %v4864_v14 }
 0xc07   :  { %4552 = vmatprep.subr.bf16.mxu1 %v4866_v17 }
 0xc08   :  { %4531 = vmatpush3.bf16.msra.mxu0 %v4867_v18 }
 0xc09   :  { %4532 = vmatprep.subr.bf16.mxu0 %v4869_v20 }
 0xc0a   :  { %4553 = vmatpush3.bf16.msra.mxu1 %v4868_v19 }
 0xc0b   :  { %4554 = vmatprep.subr.bf16.mxu1 %v4870_v48 }
 0xc0c   :  { %4533 = vmatpush3.bf16.msra.mxu0 %v4871_v1 }
 0xc0d   :  { %4534 = vmatprep.subr.bf16.mxu0 %v4873_v44 }
 0xc0e   :  { %4555 = vmatpush3.bf16.msra.mxu1 %v4872_v2 }
 0xc0f   :  { %4556 = vmatprep.subr.bf16.mxu1 %v4874_v21 }
 0xc10   :  { %4535 = vmatpush3.bf16.msra.mxu0 %v4875_v63 }
 0xc11   :  { %4564 = vmatprep.subr.bf16.mxu0 %v4877_v42 }
 0xc12   :  { %4557 = vmatpush3.bf16.msra.mxu1 %v4876_v0 }
 0xc13   :  { %4611 = vmatprep.subr.bf16.mxu1 %v5030_v7  ;;  %3786 = vmatmul.mubr.bf16.vlgmr.msra.gmra.mrb[52].mxu0 %v2283_v29 }
 0xc14   :  { %4565 = vmatpush3.bf16.msra.mxu0 %v4878_v28  ;;  %3865 = vmatprep.mubr.bf16.mxu0 %v2288_v54 }
 0xc15   :  { %3826 = vmatmul.mubr.bf16.vlgmr.msra.gmra.mrb[52].mxu1 %v2285_v3  ;;  %4566 = vmatprep.subr.bf16.mxu0 %v4880_v30 }
 0xc16   :  { %4612 = vmatpush3.bf16.msra.mxu1 %v4879_v36  ;;  %4627 = vmatprep.mubr.msk.bf16.mxu1 %vm5031_vm5, %v5030_v7 }
 0xc17   :  { %4613 = vmatprep.subr.bf16.mxu1 %v5030_v7 }
 0xc18   :  { %4567 = vmatpush3.bf16.msra.mxu0 %v4881_v38 }
 0xc19   :  { %4568 = vmatprep.subr.bf16.mxu0 %v4883_v58 }
 0xc1a   :  { %4614 = vmatpush3.bf16.msra.mxu1 %v4882_v31 }
 0xc1b   :  { %4615 = vmatprep.subr.bf16.mxu1 %v5030_v7 }
 0xc1c   :  { %4569 = vmatpush3.bf16.msra.mxu0 %v4884_v23 }
 0xc1d   :  { %4570 = vmatprep.subr.bf16.mxu0 %v4886_v41 }
 0xc1e   :  { %4616 = vmatpush3.bf16.msra.mxu1 %v4885_v40 }
 0xc1f   :  { %4617 = vmatprep.subr.bf16.mxu1 %v5030_v7 }
 0xc20   :  { %4571 = vmatpush3.bf16.msra.mxu0 %v4887_v59 }
 0xc21   :  { %4572 = vmatprep.subr.bf16.mxu0 %v4889_v56 }
 0xc22   :  { %4618 = vmatpush3.bf16.msra.mxu1 %v4888_v24 }
 0xc23   :  { %4619 = vmatprep.subr.bf16.mxu1 %v5030_v7 }
 0xc24   :  { %4573 = vmatpush3.bf16.msra.mxu0 %v4890_v25 }
 0xc25   :  { %4574 = vmatprep.subr.bf16.mxu0 %v4892_v39 }
 0xc26   :  { %4620 = vmatpush3.bf16.msra.mxu1 %v4891_v57 }
 0xc27   :  { %4621 = vmatprep.subr.bf16.mxu1 %v5030_v7 }
 0xc28   :  { %4575 = vmatpush3.bf16.msra.mxu0 %v4893_v26 }
 0xc29   :  { %4576 = vmatprep.subr.bf16.mxu0 %v4895_v45 }
 0xc2a   :  { %4622 = vmatpush3.bf16.msra.mxu1 %v4894_v32 }
 0xc2b   :  { %4623 = vmatprep.subr.bf16.mxu1 %v5030_v7 }
 0xc2c   :  { %4577 = vmatpush3.bf16.msra.mxu0 %v4896_v4 }
 0xc2d   :  { %4578 = vmatprep.subr.bf16.mxu0 %v4898_v46 }
 0xc2e   :  { %4624 = vmatpush3.bf16.msra.mxu1 %v4897_v55 }
 0xc2f   :  { %4625 = vmatprep.subr.bf16.mxu1 %v5030_v7 }
 0xc30   :  { %4579 = vmatpush3.bf16.msra.mxu0 %v4899_v11 }
 0xc32   :  { %4626 = vmatpush3.bf16.msra.mxu1 %v4900_v47 }
 0xc33   :  { %3866 = vmatmul.mubr.bf16.vlgmr.msra.gmra.mrb[56].mxu0 %v2287_v51 }
 0xc35   :  { %4628 = vmatmul.mubr.bf16.vlgmr.msra.gmra.mrb[56].mxu1 %v2289_v52 }
 0xc86   :  { %v4404_v37 = vpop.f32.mrb[40].mxu0 }
 0xc87   :  { %v4405_v34 = vpop.f32.mrb[41].mxu0 }
 0xc88   :  { %v4426_v53 = vpop.f32.mrb[40].mxu1  ;;  %v4406_v35 = vadd.f32 %v4405_v34, %v4404_v37  ;;  %v4407_v61 = vpop.f32.mrb[42].mxu0 }
 0xc89   :  { %v4427_v60 = vpop.f32.mrb[41].mxu1  ;;  %v4408_v7 = vpop.f32.mrb[43].mxu0 }
 0xc8a   :  { %v4428_v62 = vadd.f32 %v4427_v60, %v4426_v53  ;;  %v4429_v15 = vpop.f32.mrb[42].mxu1  ;;  %v3548_v49 = vadd.f32 %v4406_v35, %v4229_v33 }
 0xc8b   :  { %v4430_v5 = vpop.f32.mrb[43].mxu1 }
 0xc8c   :  { %v3588_v6 = vadd.f32 %v4428_v62, %v3548_v49 }
 0xca6   :  { %v4448_v8 = vpop.f32.mrb[44].mxu0 }
 0xca7   :  { %v4449_v10 = vpop.f32.mrb[45].mxu0 }
 0xca8   :  { %v4470_v9 = vpop.f32.mrb[44].mxu1  ;;  %v4450_v13 = vadd.f32 %v4449_v10, %v4448_v8  ;;  %v4451_v16 = vpop.f32.mrb[46].mxu0 }
 0xca9   :  { %v4471_v14 = vpop.f32.mrb[45].mxu1  ;;  %v4452_v19 = vpop.f32.mrb[47].mxu0 }
 0xcaa   :  { %v4472_v17 = vadd.f32 %v4471_v14, %v4470_v9  ;;  %v4473_v18 = vpop.f32.mrb[46].mxu1  ;;  %v3628_v20 = vadd.f32 %v4450_v13, %v3588_v6 }
 0xcab   :  { %v4474_v48 = vpop.f32.mrb[47].mxu1 }
 0xcac   :  { %v3668_v1 = vadd.f32 %v4472_v17, %v3628_v20 }
 0xcc6   :  { %v4492_v2 = vpop.f32.mrb[48].mxu0 }
 0xcc7   :  { %v4493_v21 = vpop.f32.mrb[49].mxu0 }
 0xcc8   :  { %v4514_v44 = vpop.f32.mrb[48].mxu1  ;;  %v4494_v63 = vadd.f32 %v4493_v21, %v4492_v2  ;;  %v4495_v42 = vpop.f32.mrb[50].mxu0 }
 0xcc9   :  { %v4515_v0 = vpop.f32.mrb[49].mxu1  ;;  %v4496_v27 = vpop.f32.mrb[51].mxu0 }
 0xcca   :  { %v4516_v43 = vadd.f32 %v4515_v0, %v4514_v44  ;;  %v4517_v22 = vpop.f32.mrb[50].mxu1  ;;  %v3708_v28 = vadd.f32 %v4494_v63, %v3668_v1 }
 0xccb   :  { %v4518_v29 = vpop.f32.mrb[51].mxu1 }
 0xccc   :  { %v3748_v36 = vadd.f32 %v4516_v43, %v3708_v28 }
 0xce6   :  { %v4536_v3 = vpop.f32.mrb[52].mxu0 }
 0xce7   :  { %v4537_v54 = vpop.f32.mrb[53].mxu0 }
 0xce8   :  { %v4558_v30 = vpop.f32.mrb[52].mxu1  ;;  %v4538_v38 = vadd.f32 %v4537_v54, %v4536_v3  ;;  %v4539_v58 = vpop.f32.mrb[54].mxu0 }
 0xce9   :  { %v4559_v31 = vpop.f32.mrb[53].mxu1  ;;  %v4540_v41 = vpop.f32.mrb[55].mxu0 }
 0xcea   :  { %v4560_v23 = vadd.f32 %v4559_v31, %v4558_v30  ;;  %v4561_v40 = vpop.f32.mrb[54].mxu1  ;;  %v3788_v59 = vadd.f32 %v4538_v38, %v3748_v36 }
 0xceb   :  { %v4562_v24 = vpop.f32.mrb[55].mxu1 }
 0xcec   :  { %v3828_v56 = vadd.f32 %v4560_v23, %v3788_v59 }
 0xd06   :  { %v4580_v25 = vpop.f32.mrb[56].mxu0 }
 0xd07   :  { %v4581_v39 = vpop.f32.mrb[57].mxu0 }
 0xd08   :  { %v3907_v57 = vpop.f32.mrb[56].mxu1  ;;  %v4582_v26 = vadd.f32 %v4581_v39, %v4580_v25  ;;  %v4583_v45 = vpop.f32.mrb[58].mxu0 }
 0xd09   :  { %v4629_v32 = vpop.f32.mrb[57].mxu1  ;;  %v4584_v55 = vpop.f32.mrb[59].mxu0 }
 0xd0a   :  { %v3910_v4 = vpop.f32.mrb[58].mxu1  ;;  %v3868_v46 = vadd.f32 %v4582_v26, %v3828_v56 }
 0xd0b   :  { %v4630_v11 = vpop.f32.mrb[59].mxu1 }
 0xd0c   :  { %v3908_v47 = vadd.f32 %v3907_v57, %v3868_v46 }
 0xd0e   :  { %v3914_v12 = vsel %vm3913_vm6, %v3908_v47, -inf }
 0xd0f   :  { %3915 = vmax.xlane.f32.xlu0 %v3914_v12 }
 0xd9c   :  { %v3916_v50 = vpop.xlane.xlu0 %3915 }
 0xd9d   :  { %v3917_v51 = vsub.f32 %v3908_v47, %v3916_v50 }
 0xd9f   :  { %v3918_v52 = vmul.f32 1.442695, %v3917_v51 }
 0xda1   :  { %4971 = vpow2.f32 %v3918_v52 }
 0xdab   :  { %v4972_v37 = vpop.eup %4971 }
 0xdac   :  { %v3920_v53 = vsel %vm3913_vm6, %v4972_v37, 0.0 }
 0xdad   :  { %3921 = vadd.xlane.f32.xlu1 %v3920_v53 }
 0xe3a   :  { %v3922_v33 = vpop.xlane.xlu1 %3921 }
 0xe3b   :  { %4973 = vlog2.f32 %v3922_v33 }
 0xe45   :  { %v4974_v34 = vpop.eup %4973 }
 0xe46   :  { %v3924_v35 = vmul.f32 0.6931472, %v4974_v34 }
 0xe48   :  { %v3925_v60 = vsub.f32 %v3917_v51, %v3924_v35 }
 0xe4a   :  { %3926 = vst [vmem:[#allocation7] sm:$0xf] %v3925_v60 }
 0xe4b   :  { %5010 = shalt.err (!%p5007_p0)
}
 0xe4c   :  { %s6808_s1 = sld [smem:[#allocation21_spill]] }
 0xe52   :  { %s5011_s0 = scalar_lea.hbm %s6808_s1, 64 }
 0xe53   :  { %p5012_p1 = scmp.ne.s32.totalorder %s6808_s1, %s5011_s0  ;;  %p5015_p2 = scmp.lt.u32.totalorder %s5011_s0, %s6808_s1 }
 0xe55   :  { %p5017_p3 = pnand %p5015_p2, %p5012_p1 }
 0xe57   :  { %5020 = shalt.err (!%p5017_p3)
}
 0xe58   :  { %3936 = dma.vmem_to_hbm [thread:$0]  %s3934_s14, 64, %s6808_s1, [#allocation3]  }
 0xe59   :  { %5025 = dma.done.wait [#allocation3], 64  }
 0xe5a   :  { %5026 = vsyncadd [#allocation3], 4294967232 }
 0xe5b   :  { %3940 = vsyncpa [#allocation3], 1 }
 0xe5c   :  { %3941 = vsyncpa [#allocation4], 1 }
 0xe5d   :  { %3942 = vsyncpa [#allocation6], 1 }

</bundles_post_ra>
